<compile_context>
chip_gen: v7x
topology: tpu7x:2x2x1
jax: 0.10.0
libtpu: 0.0.40
codegen_flags: <defaults>
</compile_context>

<pallas_src>
import functools

import jax
import jax.numpy as jnp
from jax.experimental import pallas as pl
from jax.experimental.pallas import tpu as pltpu


# ----------------------------------------------------------------------------
# In-kernel helpers (pure jnp on values; traced inside the kernel body)
# ----------------------------------------------------------------------------
def _space_to_depth2(y3d):
    """(h, w, c) -> ((h/2)*(w/2), 4*c) rows with (kh, kw, c) channel packing.

    Implements the 2x2/stride-2 patch flattening with only leading-dim
    reshapes, sublane splits, integer slicing and a minor-dim concat — no
    transpose op (general N-D transposes don't lower well on TPU).
    """
    h, w, c = y3d.shape
    rows = y3d.reshape(h // 2, 2, w, c)               # pure leading-dim split
    taps = []
    for kh in range(2):
        r = rows[:, kh, :, :].reshape(h // 2, w // 2, 2, c)
        for kw in range(2):
            taps.append(r[:, :, kw, :])               # (h/2, w/2, c)
    return jnp.concatenate(taps, axis=-1).reshape((h // 2) * (w // 2), 4 * c)


def _conv3x3_taps(xpad, h, w):
    """Zero-padded (h+2, w+2, c) -> (h*w, 9*c) tap matrix, K packed (kh, kw, c).

    One matmul with K = 9*c replaces nine K=c matmuls + eight accumulator adds.
    """
    c = xpad.shape[-1]
    taps = jnp.concatenate(
        [xpad[a:a + h, b:b + w, :] for a in range(3) for b in range(3)],
        axis=-1)                                      # (h, w, 9*c)
    return taps.reshape(h * w, 9 * c)


# ----------------------------------------------------------------------------
# Fused kernel: PartialConv -> BN/ReLU -> 2x2s2 -> BN/ReLU -> 3x3 -> BN/ReLU
#               -> 2x2s2 -> BN/ReLU -> LayerNorm       (one image per step)
# ----------------------------------------------------------------------------
def fused_patch_embed_kernel(xmp_ref, mp_ref,
                             w1_ref, b1_ref, sc1_ref, sh1_ref,
                             w2_ref, sc2_ref, sh2_ref,
                             w3_ref, sc3_ref, sh3_ref,
                             w4_ref, sc4_ref, sh4_ref,
                             g_ref, be_ref,
                             o_ref, y2p_ref):
    hp, wp, _ = xmp_ref.shape
    h, w = hp - 2, wp - 2
    h2, w2 = h // 2, w // 2
    c1 = sc1_ref.shape[-1]
    c2 = sc2_ref.shape[-1]
    f32 = jnp.float32

    # ---- Stage 1: PartialConv2d(3x3, pad 1) + folded BN + ReLU --------------
    xmp = xmp_ref[...]                                   # (h+2, w+2, cin) bf16
    taps1 = _conv3x3_taps(xmp, h, w)                     # (h*w, 9*cin)  bf16
    acc1 = jnp.dot(taps1, w1_ref[...], preferred_element_type=f32)

    # Mask sum of the 3x3 window, computed in-kernel (9 cheap VPU adds).
    mp = mp_ref[...]                                     # (h+2, w+2, 1) f32
    msum = sum(mp[a:a + h, b:b + w, :] for a in range(3) for b in range(3))
    msum = msum.reshape(h * w, 1)
    upd = jnp.clip(msum, 0.0, 1.0)                       # update_mask
    ratio = 9.0 * pl.reciprocal(msum + 1e-8, approx=True) * upd
    y1 = (acc1 * ratio + b1_ref[...]) * upd              # partial conv + bias
    y1 = jnp.maximum(y1 * sc1_ref[...] + sh1_ref[...], 0.0)   # (h*w, c1) f32

    # ---- Stage 2: Conv2d(2x2, stride 2) + BN + ReLU (bias folded in shift) --
    z2 = _space_to_depth2(y1.reshape(h, w, c1)).astype(jnp.bfloat16)
    y2 = jnp.dot(z2, w2_ref[...], preferred_element_type=f32)
    y2 = jnp.maximum(y2 * sc2_ref[...] + sh2_ref[...], 0.0)   # (h2*w2, c2) f32

    # ---- Stage 3: Conv2d(3x3, pad 1) + BN + ReLU -----------------------------
    # Zero-padded intermediate in a persistent VMEM scratch.  Re-zero the whole
    # scratch every step (a core may never execute step 0 under megacore), then
    # load it back ONCE as a value and slice the value for the taps.
    y2p_ref[...] = jnp.zeros(y2p_ref.shape, y2p_ref.dtype)
    y2p_ref[1:h2 + 1, 1:w2 + 1, :] = y2.reshape(h2, w2, c2)
    y2p = y2p_ref[...]                                   # (h2+2, w2+2, c2) f32
    taps3 = _conv3x3_taps(y2p, h2, w2).astype(jnp.bfloat16)   # (h2*w2, 9*c2)
    y3 = jnp.dot(taps3, w3_ref[...], preferred_element_type=f32)
    y3 = jnp.maximum(y3 * sc3_ref[...] + sh3_ref[...], 0.0)   # (h2*w2, c2) f32

    # ---- Stage 4: Conv2d(2x2, stride 2) + BN + ReLU --------------------------
    z4 = _space_to_depth2(y3.reshape(h2, w2, c2)).astype(jnp.bfloat16)
    y4 = jnp.dot(z4, w4_ref[...], preferred_element_type=f32)
    y4 = jnp.maximum(y4 * sc4_ref[...] + sh4_ref[...], 0.0)   # (h4*w4, c3) f32

    # ---- flatten(2).transpose(1,2) (rows are already raster order) + LN -----
    mu = jnp.mean(y4, axis=-1, keepdims=True)
    var = jnp.mean((y4 - mu) ** 2, axis=-1, keepdims=True)
    yn = (y4 - mu) * jax.lax.rsqrt(var + 1e-5)
    o_ref[...] = (yn * g_ref[...] + be_ref[...]).astype(o_ref.dtype)


# ----------------------------------------------------------------------------
# Host-side parameter construction (synthetic, inference-mode BN folded)
# ----------------------------------------------------------------------------
def init_params(key, in_chans=3, embed_dim=32):
    c1, c2, c3 = embed_dim // 4, embed_dim // 2, embed_dim
    keys = iter(jax.random.split(key, 32))

    def nrm(shape, scale=0.1):
        return scale * jax.random.normal(next(keys), shape, jnp.float32)

    def bn_fold(c, bias=None):
        gamma = 1.0 + nrm((c,))
        beta = nrm((c,))
        rmean = nrm((c,))
        rvar = 0.5 + jax.random.uniform(next(keys), (c,), jnp.float32)
        scale = gamma * jax.lax.rsqrt(rvar + 1e-5)
        shift = beta - rmean * scale
        if bias is not None:                    # fold conv bias into BN shift
            shift = shift + bias * scale
        return scale[None, :], shift[None, :]

    p = {}
    # Stage 1: PartialConv2d(in_chans -> c1, 3x3, pad 1).  Weight packed as
    # ((kh, kw, cin), cout) to match the in-kernel tap matrix; the conv bias
    # stays separate because the partial-conv ratio / update-mask sit between
    # the convolution and the BatchNorm.
    p["w1"] = nrm((3, 3, in_chans, c1)).reshape(9 * in_chans, c1).astype(jnp.bfloat16)
    p["b1"] = nrm((1, c1))
    p["sc1"], p["sh1"] = bn_fold(c1)

    # Stage 2: Conv2d(c1 -> c2, 2x2, stride 2), ((kh, kw, cin), cout) packing.
    b2 = nrm((c2,))
    p["w2"] = nrm((2, 2, c1, c2)).reshape(4 * c1, c2).astype(jnp.bfloat16)
    p["sc2"], p["sh2"] = bn_fold(c2, bias=b2)

    # Stage 3: Conv2d(c2 -> c2, 3x3, pad 1)
    b3 = nrm((c2,))
    p["w3"] = nrm((3, 3, c2, c2)).reshape(9 * c2, c2).astype(jnp.bfloat16)
    p["sc3"], p["sh3"] = bn_fold(c2, bias=b3)

    # Stage 4: Conv2d(c2 -> c3, 2x2, stride 2)
    b4 = nrm((c3,))
    p["w4"] = nrm((2, 2, c2, c3)).reshape(4 * c2, c3).astype(jnp.bfloat16)
    p["sc4"], p["sh4"] = bn_fold(c3, bias=b4)

    # Final LayerNorm(embed_dim)
    p["ln_g"] = (1.0 + nrm((c3,)))[None, :]
    p["ln_b"] = nrm((c3,))[None, :]
    return p


# ----------------------------------------------------------------------------
# Host-side wrapper: one pallas_call for the whole module
# ----------------------------------------------------------------------------
@functools.partial(jax.jit, static_argnames=("img_size", "embed_dim"))
def partial_patch_embed(x_nchw, mask_nchw, params, *, img_size, embed_dim):
    B, Cin, H, W = x_nchw.shape
    assert (H, W) == tuple(img_size), \
        "Input image size doesn't match model input requirement."
    assert H % 4 == 0 and W % 4 == 0
    c1, c2, c3 = embed_dim // 4, embed_dim // 2, embed_dim
    H2, W2, H4, W4 = H // 2, W // 2, H // 4, W // 4

    x = jnp.transpose(x_nchw, (0, 2, 3, 1)).astype(jnp.float32)     # NHWC
    m = jnp.transpose(mask_nchw, (0, 2, 3, 1)).astype(jnp.float32)  # (B,H,W,1)

    # Host prep (one small XLA fusion before the single kernel): masked +
    # zero-padded input in bf16, and the zero-padded mask (the 3x3 mask-sum is
    # computed in-kernel).
    xmp = jnp.pad(x * m, ((0, 0), (1, 1), (1, 1), (0, 0))).astype(jnp.bfloat16)
    mp = jnp.pad(m, ((0, 0), (1, 1), (1, 1), (0, 0)))               # f32

    def wspec(r, c):
        return pl.BlockSpec((r, c), lambda b: (0, 0))   # weights: grid-resident

    out = pl.pallas_call(
        fused_patch_embed_kernel,
        out_shape=jax.ShapeDtypeStruct((B, H4 * W4, c3), jnp.float32),
        grid=(B,),
        in_specs=[
            pl.BlockSpec((None, H + 2, W + 2, Cin), lambda b: (b, 0, 0, 0)),
            pl.BlockSpec((None, H + 2, W + 2, 1), lambda b: (b, 0, 0, 0)),
            wspec(9 * Cin, c1),        # w1
            wspec(1, c1),              # b1
            wspec(1, c1),              # sc1
            wspec(1, c1),              # sh1
            wspec(4 * c1, c2),         # w2
            wspec(1, c2),              # sc2
            wspec(1, c2),              # sh2
            wspec(9 * c2, c2),         # w3
            wspec(1, c2),              # sc3
            wspec(1, c2),              # sh3
            wspec(4 * c2, c3),         # w4
            wspec(1, c3),              # sc4
            wspec(1, c3),              # sh4
            wspec(1, c3),              # ln_g
            wspec(1, c3),              # ln_b
        ],
        out_specs=pl.BlockSpec((None, H4 * W4, c3), lambda b: (b, 0, 0)),
        scratch_shapes=[pltpu.VMEM((H2 + 2, W2 + 2, c2), jnp.float32)],
        compiler_params=pltpu.CompilerParams(
            dimension_semantics=("parallel",)),          # even grid -> v7x TCs
    )(xmp, mp,
      params["w1"], params["b1"], params["sc1"], params["sh1"],
      params["w2"], params["sc2"], params["sh2"],
      params["w3"], params["sc3"], params["sh3"],
      params["w4"], params["sc4"], params["sh4"],
      params["ln_g"], params["ln_b"])

    # Rows are already (h, w) raster order == torch flatten(2).transpose(1, 2).
    return out                                           # (B, num_patches, c3)


if __name__ == "__main__":
    IMG = (16, 16)
    IN_CHANS = 3
    EMBED_DIM = 32
    B = 2

    key = jax.random.PRNGKey(0)
    kx, km, kp = jax.random.split(key, 3)
    x = jax.random.normal(kx, (B, IN_CHANS, *IMG), jnp.float32)           # NCHW
    mask = (jax.random.uniform(km, (B, 1, *IMG)) > 0.3).astype(jnp.float32)
    params = init_params(kp, IN_CHANS, EMBED_DIM)

    out = partial_patch_embed(x, mask, params, img_size=IMG, embed_dim=EMBED_DIM)
    out = jax.block_until_ready(out)

    expected = (B, (IMG[0] // 4) * (IMG[1] // 4), EMBED_DIM)
    assert out.shape == expected, (out.shape, expected)
    assert bool(jnp.all(jnp.isfinite(out)))
    print("KERNEL_OK")
</pallas_src>

<mosaic_0001>
module attributes {stable_mosaic.version = 11 : i64} {
  func.func @fused_patch_embed_kernel(%arg0: i32, %arg1: memref<1x18x18x3xbf16, #tpu.memory_space<vmem>>, %arg2: memref<1x18x18x1xf32, #tpu.memory_space<vmem>>, %arg3: memref<27x8xbf16, #tpu.memory_space<vmem>>, %arg4: memref<1x8xf32, #tpu.memory_space<vmem>>, %arg5: memref<1x8xf32, #tpu.memory_space<vmem>>, %arg6: memref<1x8xf32, #tpu.memory_space<vmem>>, %arg7: memref<32x16xbf16, #tpu.memory_space<vmem>>, %arg8: memref<1x16xf32, #tpu.memory_space<vmem>>, %arg9: memref<1x16xf32, #tpu.memory_space<vmem>>, %arg10: memref<144x16xbf16, #tpu.memory_space<vmem>>, %arg11: memref<1x16xf32, #tpu.memory_space<vmem>>, %arg12: memref<1x16xf32, #tpu.memory_space<vmem>>, %arg13: memref<64x32xbf16, #tpu.memory_space<vmem>>, %arg14: memref<1x32xf32, #tpu.memory_space<vmem>>, %arg15: memref<1x32xf32, #tpu.memory_space<vmem>>, %arg16: memref<1x32xf32, #tpu.memory_space<vmem>>, %arg17: memref<1x32xf32, #tpu.memory_space<vmem>>, %arg18: memref<1x16x32xf32, #tpu.memory_space<vmem>>, %arg19: memref<10x10x16xf32, #tpu.memory_space<vmem>>) attributes {dimension_semantics = [#tpu.dimension_semantics<parallel>], iteration_bounds = array<i64: 2>, scalar_prefetch = 0 : i64, scratch_operands = 1 : i64, tpu.core_type = #tpu.core_type<tc>, window_params = [{transform_indices = @transform_0, window_bounds = array<i64: 1, 18, 18, 3>}, {transform_indices = @transform_1, window_bounds = array<i64: 1, 18, 18, 1>}, {pipeline_mode = #tpu.pipeline_mode<synchronous>, transform_indices = @transform_2, window_bounds = array<i64: 27, 8>}, {pipeline_mode = #tpu.pipeline_mode<synchronous>, transform_indices = @transform_3, window_bounds = array<i64: 1, 8>}, {pipeline_mode = #tpu.pipeline_mode<synchronous>, transform_indices = @transform_4, window_bounds = array<i64: 1, 8>}, {pipeline_mode = #tpu.pipeline_mode<synchronous>, transform_indices = @transform_5, window_bounds = array<i64: 1, 8>}, {pipeline_mode = #tpu.pipeline_mode<synchronous>, transform_indices = @transform_6, window_bounds = array<i64: 32, 16>}, {pipeline_mode = #tpu.pipeline_mode<synchronous>, transform_indices = @transform_7, window_bounds = array<i64: 1, 16>}, {pipeline_mode = #tpu.pipeline_mode<synchronous>, transform_indices = @transform_8, window_bounds = array<i64: 1, 16>}, {pipeline_mode = #tpu.pipeline_mode<synchronous>, transform_indices = @transform_9, window_bounds = array<i64: 144, 16>}, {pipeline_mode = #tpu.pipeline_mode<synchronous>, transform_indices = @transform_10, window_bounds = array<i64: 1, 16>}, {pipeline_mode = #tpu.pipeline_mode<synchronous>, transform_indices = @transform_11, window_bounds = array<i64: 1, 16>}, {pipeline_mode = #tpu.pipeline_mode<synchronous>, transform_indices = @transform_12, window_bounds = array<i64: 64, 32>}, {pipeline_mode = #tpu.pipeline_mode<synchronous>, transform_indices = @transform_13, window_bounds = array<i64: 1, 32>}, {pipeline_mode = #tpu.pipeline_mode<synchronous>, transform_indices = @transform_14, window_bounds = array<i64: 1, 32>}, {pipeline_mode = #tpu.pipeline_mode<synchronous>, transform_indices = @transform_15, window_bounds = array<i64: 1, 32>}, {pipeline_mode = #tpu.pipeline_mode<synchronous>, transform_indices = @transform_16, window_bounds = array<i64: 1, 32>}, {transform_indices = @transform_17, window_bounds = array<i64: 1, 16, 32>}]} {
    %c0 = arith.constant 0 : index
    %c0_0 = arith.constant 0 : index
    %c0_1 = arith.constant 0 : index
    %c0_2 = arith.constant 0 : index
    %0 = vector.load %arg1[%c0, %c0_0, %c0_1, %c0_2] : memref<1x18x18x3xbf16, #tpu.memory_space<vmem>>, vector<1x18x18x3xbf16>
    %1 = vector.shape_cast %0 : vector<1x18x18x3xbf16> to vector<18x18x3xbf16>
    %2 = vector.extract_strided_slice %1 {offsets = [0, 0, 0], sizes = [16, 16, 3], strides = [1, 1, 1]} : vector<18x18x3xbf16> to vector<16x16x3xbf16>
    %3 = vector.extract_strided_slice %1 {offsets = [0, 1, 0], sizes = [16, 16, 3], strides = [1, 1, 1]} : vector<18x18x3xbf16> to vector<16x16x3xbf16>
    %4 = vector.extract_strided_slice %1 {offsets = [0, 2, 0], sizes = [16, 16, 3], strides = [1, 1, 1]} : vector<18x18x3xbf16> to vector<16x16x3xbf16>
    %5 = vector.extract_strided_slice %1 {offsets = [1, 0, 0], sizes = [16, 16, 3], strides = [1, 1, 1]} : vector<18x18x3xbf16> to vector<16x16x3xbf16>
    %6 = vector.extract_strided_slice %1 {offsets = [1, 1, 0], sizes = [16, 16, 3], strides = [1, 1, 1]} : vector<18x18x3xbf16> to vector<16x16x3xbf16>
    %7 = vector.extract_strided_slice %1 {offsets = [1, 2, 0], sizes = [16, 16, 3], strides = [1, 1, 1]} : vector<18x18x3xbf16> to vector<16x16x3xbf16>
    %8 = vector.extract_strided_slice %1 {offsets = [2, 0, 0], sizes = [16, 16, 3], strides = [1, 1, 1]} : vector<18x18x3xbf16> to vector<16x16x3xbf16>
    %9 = vector.extract_strided_slice %1 {offsets = [2, 1, 0], sizes = [16, 16, 3], strides = [1, 1, 1]} : vector<18x18x3xbf16> to vector<16x16x3xbf16>
    %10 = vector.extract_strided_slice %1 {offsets = [2, 2, 0], sizes = [16, 16, 3], strides = [1, 1, 1]} : vector<18x18x3xbf16> to vector<16x16x3xbf16>
    %11 = tpu.concatenate %2, %3, %4, %5, %6, %7, %8, %9, %10 in 2 : vector<16x16x3xbf16>, vector<16x16x3xbf16>, vector<16x16x3xbf16>, vector<16x16x3xbf16>, vector<16x16x3xbf16>, vector<16x16x3xbf16>, vector<16x16x3xbf16>, vector<16x16x3xbf16>, vector<16x16x3xbf16> -> vector<16x16x27xbf16>
    %12 = vector.shape_cast %11 : vector<16x16x27xbf16> to vector<256x27xbf16>
    %c0_3 = arith.constant 0 : index
    %c0_4 = arith.constant 0 : index
    %13 = vector.load %arg3[%c0_3, %c0_4] : memref<27x8xbf16, #tpu.memory_space<vmem>>, vector<27x8xbf16>
    %cst = arith.constant dense<0.000000e+00> : vector<256x8xf32>
    %14 = tpu.matmul %12, %13, %cst {dimension_numbers = #tpu.dot_dimension_numbers<[1], [0], [0], [1], [0, 0, 1, 1], [], []>} : vector<256x27xbf16>, vector<27x8xbf16>, vector<256x8xf32> -> vector<256x8xf32>
    %c0_5 = arith.constant 0 : index
    %c0_6 = arith.constant 0 : index
    %c0_7 = arith.constant 0 : index
    %c0_8 = arith.constant 0 : index
    %15 = vector.load %arg2[%c0_5, %c0_6, %c0_7, %c0_8] : memref<1x18x18x1xf32, #tpu.memory_space<vmem>>, vector<1x18x18x1xf32>
    %16 = vector.shape_cast %15 : vector<1x18x18x1xf32> to vector<18x18x1xf32>
    %17 = vector.extract_strided_slice %16 {offsets = [0, 0, 0], sizes = [16, 16, 1], strides = [1, 1, 1]} : vector<18x18x1xf32> to vector<16x16x1xf32>
    %cst_9 = arith.constant 0.000000e+00 : f32
    %18 = vector.broadcast %cst_9 : f32 to vector<16x16x1xf32>
    %19 = arith.addf %18, %17 : vector<16x16x1xf32>
    %20 = vector.extract_strided_slice %16 {offsets = [0, 1, 0], sizes = [16, 16, 1], strides = [1, 1, 1]} : vector<18x18x1xf32> to vector<16x16x1xf32>
    %21 = arith.addf %19, %20 : vector<16x16x1xf32>
    %22 = vector.extract_strided_slice %16 {offsets = [0, 2, 0], sizes = [16, 16, 1], strides = [1, 1, 1]} : vector<18x18x1xf32> to vector<16x16x1xf32>
    %23 = arith.addf %21, %22 : vector<16x16x1xf32>
    %24 = vector.extract_strided_slice %16 {offsets = [1, 0, 0], sizes = [16, 16, 1], strides = [1, 1, 1]} : vector<18x18x1xf32> to vector<16x16x1xf32>
    %25 = arith.addf %23, %24 : vector<16x16x1xf32>
    %26 = vector.extract_strided_slice %16 {offsets = [1, 1, 0], sizes = [16, 16, 1], strides = [1, 1, 1]} : vector<18x18x1xf32> to vector<16x16x1xf32>
    %27 = arith.addf %25, %26 : vector<16x16x1xf32>
    %28 = vector.extract_strided_slice %16 {offsets = [1, 2, 0], sizes = [16, 16, 1], strides = [1, 1, 1]} : vector<18x18x1xf32> to vector<16x16x1xf32>
    %29 = arith.addf %27, %28 : vector<16x16x1xf32>
    %30 = vector.extract_strided_slice %16 {offsets = [2, 0, 0], sizes = [16, 16, 1], strides = [1, 1, 1]} : vector<18x18x1xf32> to vector<16x16x1xf32>
    %31 = arith.addf %29, %30 : vector<16x16x1xf32>
    %32 = vector.extract_strided_slice %16 {offsets = [2, 1, 0], sizes = [16, 16, 1], strides = [1, 1, 1]} : vector<18x18x1xf32> to vector<16x16x1xf32>
    %33 = arith.addf %31, %32 : vector<16x16x1xf32>
    %34 = vector.extract_strided_slice %16 {offsets = [2, 2, 0], sizes = [16, 16, 1], strides = [1, 1, 1]} : vector<18x18x1xf32> to vector<16x16x1xf32>
    %35 = arith.addf %33, %34 : vector<16x16x1xf32>
    %36 = vector.shape_cast %35 : vector<16x16x1xf32> to vector<256x1xf32>
    %cst_10 = arith.constant 0.000000e+00 : f32
    %cst_11 = arith.constant 1.000000e+00 : f32
    %37 = vector.broadcast %cst_10 : f32 to vector<256x1xf32>
    %38 = arith.maximumf %37, %36 : vector<256x1xf32>
    %39 = vector.broadcast %cst_11 : f32 to vector<256x1xf32>
    %40 = arith.minimumf %39, %38 : vector<256x1xf32>
    %cst_12 = arith.constant 9.99999993E-9 : f32
    %41 = vector.broadcast %cst_12 : f32 to vector<256x1xf32>
    %42 = arith.addf %36, %41 : vector<256x1xf32>
    %43 = tpu.reciprocal %42 {approx = true} : vector<256x1xf32> -> vector<256x1xf32>
    %cst_13 = arith.constant 9.000000e+00 : f32
    %44 = vector.broadcast %cst_13 : f32 to vector<256x1xf32>
    %45 = arith.mulf %44, %43 : vector<256x1xf32>
    %46 = arith.mulf %45, %40 : vector<256x1xf32>
    %47 = vector.broadcast %46 : vector<256x1xf32> to vector<256x8xf32>
    %48 = arith.mulf %14, %47 : vector<256x8xf32>
    %c0_14 = arith.constant 0 : index
    %c0_15 = arith.constant 0 : index
    %49 = vector.load %arg4[%c0_14, %c0_15] : memref<1x8xf32, #tpu.memory_space<vmem>>, vector<1x8xf32>
    %50 = vector.broadcast %49 : vector<1x8xf32> to vector<256x8xf32>
    %51 = arith.addf %48, %50 : vector<256x8xf32>
    %52 = vector.broadcast %40 : vector<256x1xf32> to vector<256x8xf32>
    %53 = arith.mulf %51, %52 : vector<256x8xf32>
    %c0_16 = arith.constant 0 : index
    %c0_17 = arith.constant 0 : index
    %54 = vector.load %arg5[%c0_16, %c0_17] : memref<1x8xf32, #tpu.memory_space<vmem>>, vector<1x8xf32>
    %55 = vector.broadcast %54 : vector<1x8xf32> to vector<256x8xf32>
    %56 = arith.mulf %53, %55 : vector<256x8xf32>
    %c0_18 = arith.constant 0 : index
    %c0_19 = arith.constant 0 : index
    %57 = vector.load %arg6[%c0_18, %c0_19] : memref<1x8xf32, #tpu.memory_space<vmem>>, vector<1x8xf32>
    %58 = vector.broadcast %57 : vector<1x8xf32> to vector<256x8xf32>
    %59 = arith.addf %56, %58 : vector<256x8xf32>
    %cst_20 = arith.constant 0.000000e+00 : f32
    %60 = vector.broadcast %cst_20 : f32 to vector<256x8xf32>
    %61 = arith.maximumf %59, %60 : vector<256x8xf32>
    %62 = vector.shape_cast %61 : vector<256x8xf32> to vector<16x16x8xf32>
    %63 = vector.shape_cast %62 : vector<16x16x8xf32> to vector<8x2x16x8xf32>
    %64 = vector.extract_strided_slice %63 {offsets = [0, 0, 0, 0], sizes = [8, 1, 16, 8], strides = [1, 1, 1, 1]} : vector<8x2x16x8xf32> to vector<8x1x16x8xf32>
    %65 = vector.shape_cast %64 : vector<8x1x16x8xf32> to vector<8x16x8xf32>
    %66 = vector.shape_cast %65 : vector<8x16x8xf32> to vector<8x8x2x8xf32>
    %67 = vector.extract_strided_slice %66 {offsets = [0, 0, 0, 0], sizes = [8, 8, 1, 8], strides = [1, 1, 1, 1]} : vector<8x8x2x8xf32> to vector<8x8x1x8xf32>
    %68 = vector.shape_cast %67 : vector<8x8x1x8xf32> to vector<8x8x8xf32>
    %69 = vector.extract_strided_slice %66 {offsets = [0, 0, 1, 0], sizes = [8, 8, 1, 8], strides = [1, 1, 1, 1]} : vector<8x8x2x8xf32> to vector<8x8x1x8xf32>
    %70 = vector.shape_cast %69 : vector<8x8x1x8xf32> to vector<8x8x8xf32>
    %71 = vector.extract_strided_slice %63 {offsets = [0, 1, 0, 0], sizes = [8, 1, 16, 8], strides = [1, 1, 1, 1]} : vector<8x2x16x8xf32> to vector<8x1x16x8xf32>
    %72 = vector.shape_cast %71 : vector<8x1x16x8xf32> to vector<8x16x8xf32>
    %73 = vector.shape_cast %72 : vector<8x16x8xf32> to vector<8x8x2x8xf32>
    %74 = vector.extract_strided_slice %73 {offsets = [0, 0, 0, 0], sizes = [8, 8, 1, 8], strides = [1, 1, 1, 1]} : vector<8x8x2x8xf32> to vector<8x8x1x8xf32>
    %75 = vector.shape_cast %74 : vector<8x8x1x8xf32> to vector<8x8x8xf32>
    %76 = vector.extract_strided_slice %73 {offsets = [0, 0, 1, 0], sizes = [8, 8, 1, 8], strides = [1, 1, 1, 1]} : vector<8x8x2x8xf32> to vector<8x8x1x8xf32>
    %77 = vector.shape_cast %76 : vector<8x8x1x8xf32> to vector<8x8x8xf32>
    %78 = tpu.concatenate %68, %70, %75, %77 in 2 : vector<8x8x8xf32>, vector<8x8x8xf32>, vector<8x8x8xf32>, vector<8x8x8xf32> -> vector<8x8x32xf32>
    %79 = vector.shape_cast %78 : vector<8x8x32xf32> to vector<64x32xf32>
    %80 = arith.truncf %79 : vector<64x32xf32> to vector<64x32xbf16>
    %c0_21 = arith.constant 0 : index
    %c0_22 = arith.constant 0 : index
    %81 = vector.load %arg7[%c0_21, %c0_22] : memref<32x16xbf16, #tpu.memory_space<vmem>>, vector<32x16xbf16>
    %cst_23 = arith.constant dense<0.000000e+00> : vector<64x16xf32>
    %82 = tpu.matmul %80, %81, %cst_23 {dimension_numbers = #tpu.dot_dimension_numbers<[1], [0], [0], [1], [0, 0, 1, 1], [], []>} : vector<64x32xbf16>, vector<32x16xbf16>, vector<64x16xf32> -> vector<64x16xf32>
    %c0_24 = arith.constant 0 : index
    %c0_25 = arith.constant 0 : index
    %83 = vector.load %arg8[%c0_24, %c0_25] : memref<1x16xf32, #tpu.memory_space<vmem>>, vector<1x16xf32>
    %84 = vector.broadcast %83 : vector<1x16xf32> to vector<64x16xf32>
    %85 = arith.mulf %82, %84 : vector<64x16xf32>
    %c0_26 = arith.constant 0 : index
    %c0_27 = arith.constant 0 : index
    %86 = vector.load %arg9[%c0_26, %c0_27] : memref<1x16xf32, #tpu.memory_space<vmem>>, vector<1x16xf32>
    %87 = vector.broadcast %86 : vector<1x16xf32> to vector<64x16xf32>
    %88 = arith.addf %85, %87 : vector<64x16xf32>
    %cst_28 = arith.constant 0.000000e+00 : f32
    %89 = vector.broadcast %cst_28 : f32 to vector<64x16xf32>
    %90 = arith.maximumf %88, %89 : vector<64x16xf32>
    %cst_29 = arith.constant 0.000000e+00 : f32
    %91 = vector.broadcast %cst_29 : f32 to vector<10x10x16xf32>
    %c0_30 = arith.constant 0 : index
    %c0_31 = arith.constant 0 : index
    %c0_32 = arith.constant 0 : index
    %92 = vector.load %arg19[%c0_30, %c0_31, %c0_32] : memref<10x10x16xf32, #tpu.memory_space<vmem>>, vector<10x10x16xf32>
    tpu.vector_store %arg19[%c0_30, %c0_31, %c0_32], %91 {strides = array<i32>} : memref<10x10x16xf32, #tpu.memory_space<vmem>>, vector<10x10x16xf32>,
    %93 = vector.shape_cast %90 : vector<64x16xf32> to vector<8x8x16xf32>
    %c1 = arith.constant 1 : index
    %c1_33 = arith.constant 1 : index
    %c0_34 = arith.constant 0 : index
    %94 = vector.load %arg19[%c1, %c1_33, %c0_34] : memref<10x10x16xf32, #tpu.memory_space<vmem>>, vector<8x8x16xf32>
    tpu.vector_store %arg19[%c1, %c1_33, %c0_34], %93 {strides = array<i32>} : memref<10x10x16xf32, #tpu.memory_space<vmem>>, vector<8x8x16xf32>,
    %c0_35 = arith.constant 0 : index
    %c0_36 = arith.constant 0 : index
    %c0_37 = arith.constant 0 : index
    %95 = vector.load %arg19[%c0_35, %c0_36, %c0_37] : memref<10x10x16xf32, #tpu.memory_space<vmem>>, vector<10x10x16xf32>
    %96 = vector.extract_strided_slice %95 {offsets = [0, 0, 0], sizes = [8, 8, 16], strides = [1, 1, 1]} : vector<10x10x16xf32> to vector<8x8x16xf32>
    %97 = vector.extract_strided_slice %95 {offsets = [0, 1, 0], sizes = [8, 8, 16], strides = [1, 1, 1]} : vector<10x10x16xf32> to vector<8x8x16xf32>
    %98 = vector.extract_strided_slice %95 {offsets = [0, 2, 0], sizes = [8, 8, 16], strides = [1, 1, 1]} : vector<10x10x16xf32> to vector<8x8x16xf32>
    %99 = vector.extract_strided_slice %95 {offsets = [1, 0, 0], sizes = [8, 8, 16], strides = [1, 1, 1]} : vector<10x10x16xf32> to vector<8x8x16xf32>
    %100 = vector.extract_strided_slice %95 {offsets = [1, 1, 0], sizes = [8, 8, 16], strides = [1, 1, 1]} : vector<10x10x16xf32> to vector<8x8x16xf32>
    %101 = vector.extract_strided_slice %95 {offsets = [1, 2, 0], sizes = [8, 8, 16], strides = [1, 1, 1]} : vector<10x10x16xf32> to vector<8x8x16xf32>
    %102 = vector.extract_strided_slice %95 {offsets = [2, 0, 0], sizes = [8, 8, 16], strides = [1, 1, 1]} : vector<10x10x16xf32> to vector<8x8x16xf32>
    %103 = vector.extract_strided_slice %95 {offsets = [2, 1, 0], sizes = [8, 8, 16], strides = [1, 1, 1]} : vector<10x10x16xf32> to vector<8x8x16xf32>
    %104 = vector.extract_strided_slice %95 {offsets = [2, 2, 0], sizes = [8, 8, 16], strides = [1, 1, 1]} : vector<10x10x16xf32> to vector<8x8x16xf32>
    %105 = tpu.concatenate %96, %97, %98, %99, %100, %101, %102, %103, %104 in 2 : vector<8x8x16xf32>, vector<8x8x16xf32>, vector<8x8x16xf32>, vector<8x8x16xf32>, vector<8x8x16xf32>, vector<8x8x16xf32>, vector<8x8x16xf32>, vector<8x8x16xf32>, vector<8x8x16xf32> -> vector<8x8x144xf32>
    %106 = vector.shape_cast %105 : vector<8x8x144xf32> to vector<64x144xf32>
    %107 = arith.truncf %106 : vector<64x144xf32> to vector<64x144xbf16>
    %c0_38 = arith.constant 0 : index
    %c0_39 = arith.constant 0 : index
    %108 = vector.load %arg10[%c0_38, %c0_39] : memref<144x16xbf16, #tpu.memory_space<vmem>>, vector<144x16xbf16>
    %cst_40 = arith.constant dense<0.000000e+00> : vector<64x16xf32>
    %109 = tpu.matmul %107, %108, %cst_40 {dimension_numbers = #tpu.dot_dimension_numbers<[1], [0], [0], [1], [0, 0, 1, 1], [], []>} : vector<64x144xbf16>, vector<144x16xbf16>, vector<64x16xf32> -> vector<64x16xf32>
    %c0_41 = arith.constant 0 : index
    %c0_42 = arith.constant 0 : index
    %110 = vector.load %arg11[%c0_41, %c0_42] : memref<1x16xf32, #tpu.memory_space<vmem>>, vector<1x16xf32>
    %111 = vector.broadcast %110 : vector<1x16xf32> to vector<64x16xf32>
    %112 = arith.mulf %109, %111 : vector<64x16xf32>
    %c0_43 = arith.constant 0 : index
    %c0_44 = arith.constant 0 : index
    %113 = vector.load %arg12[%c0_43, %c0_44] : memref<1x16xf32, #tpu.memory_space<vmem>>, vector<1x16xf32>
    %114 = vector.broadcast %113 : vector<1x16xf32> to vector<64x16xf32>
    %115 = arith.addf %112, %114 : vector<64x16xf32>
    %cst_45 = arith.constant 0.000000e+00 : f32
    %116 = vector.broadcast %cst_45 : f32 to vector<64x16xf32>
    %117 = arith.maximumf %115, %116 : vector<64x16xf32>
    %118 = vector.shape_cast %117 : vector<64x16xf32> to vector<8x8x16xf32>
    %119 = vector.shape_cast %118 : vector<8x8x16xf32> to vector<4x2x8x16xf32>
    %120 = vector.extract_strided_slice %119 {offsets = [0, 0, 0, 0], sizes = [4, 1, 8, 16], strides = [1, 1, 1, 1]} : vector<4x2x8x16xf32> to vector<4x1x8x16xf32>
    %121 = vector.shape_cast %120 : vector<4x1x8x16xf32> to vector<4x8x16xf32>
    %122 = vector.shape_cast %121 : vector<4x8x16xf32> to vector<4x4x2x16xf32>
    %123 = vector.extract_strided_slice %122 {offsets = [0, 0, 0, 0], sizes = [4, 4, 1, 16], strides = [1, 1, 1, 1]} : vector<4x4x2x16xf32> to vector<4x4x1x16xf32>
    %124 = vector.shape_cast %123 : vector<4x4x1x16xf32> to vector<4x4x16xf32>
    %125 = vector.extract_strided_slice %122 {offsets = [0, 0, 1, 0], sizes = [4, 4, 1, 16], strides = [1, 1, 1, 1]} : vector<4x4x2x16xf32> to vector<4x4x1x16xf32>
    %126 = vector.shape_cast %125 : vector<4x4x1x16xf32> to vector<4x4x16xf32>
    %127 = vector.extract_strided_slice %119 {offsets = [0, 1, 0, 0], sizes = [4, 1, 8, 16], strides = [1, 1, 1, 1]} : vector<4x2x8x16xf32> to vector<4x1x8x16xf32>
    %128 = vector.shape_cast %127 : vector<4x1x8x16xf32> to vector<4x8x16xf32>
    %129 = vector.shape_cast %128 : vector<4x8x16xf32> to vector<4x4x2x16xf32>
    %130 = vector.extract_strided_slice %129 {offsets = [0, 0, 0, 0], sizes = [4, 4, 1, 16], strides = [1, 1, 1, 1]} : vector<4x4x2x16xf32> to vector<4x4x1x16xf32>
    %131 = vector.shape_cast %130 : vector<4x4x1x16xf32> to vector<4x4x16xf32>
    %132 = vector.extract_strided_slice %129 {offsets = [0, 0, 1, 0], sizes = [4, 4, 1, 16], strides = [1, 1, 1, 1]} : vector<4x4x2x16xf32> to vector<4x4x1x16xf32>
    %133 = vector.shape_cast %132 : vector<4x4x1x16xf32> to vector<4x4x16xf32>
    %134 = tpu.concatenate %124, %126, %131, %133 in 2 : vector<4x4x16xf32>, vector<4x4x16xf32>, vector<4x4x16xf32>, vector<4x4x16xf32> -> vector<4x4x64xf32>
    %135 = vector.shape_cast %134 : vector<4x4x64xf32> to vector<16x64xf32>
    %136 = arith.truncf %135 : vector<16x64xf32> to vector<16x64xbf16>
    %c0_46 = arith.constant 0 : index
    %c0_47 = arith.constant 0 : index
    %137 = vector.load %arg13[%c0_46, %c0_47] : memref<64x32xbf16, #tpu.memory_space<vmem>>, vector<64x32xbf16>
    %cst_48 = arith.constant dense<0.000000e+00> : vector<16x32xf32>
    %138 = tpu.matmul %136, %137, %cst_48 {dimension_numbers = #tpu.dot_dimension_numbers<[1], [0], [0], [1], [0, 0, 1, 1], [], []>} : vector<16x64xbf16>, vector<64x32xbf16>, vector<16x32xf32> -> vector<16x32xf32>
    %c0_49 = arith.constant 0 : index
    %c0_50 = arith.constant 0 : index
    %139 = vector.load %arg14[%c0_49, %c0_50] : memref<1x32xf32, #tpu.memory_space<vmem>>, vector<1x32xf32>
    %140 = vector.broadcast %139 : vector<1x32xf32> to vector<16x32xf32>
    %141 = arith.mulf %138, %140 : vector<16x32xf32>
    %c0_51 = arith.constant 0 : index
    %c0_52 = arith.constant 0 : index
    %142 = vector.load %arg15[%c0_51, %c0_52] : memref<1x32xf32, #tpu.memory_space<vmem>>, vector<1x32xf32>
    %143 = vector.broadcast %142 : vector<1x32xf32> to vector<16x32xf32>
    %144 = arith.addf %141, %143 : vector<16x32xf32>
    %cst_53 = arith.constant 0.000000e+00 : f32
    %145 = vector.broadcast %cst_53 : f32 to vector<16x32xf32>
    %146 = arith.maximumf %144, %145 : vector<16x32xf32>
    %cst_54 = arith.constant dense<0.000000e+00> : vector<16xf32>
    %147 = vector.multi_reduction <add>, %146, %cst_54 [1] : vector<16x32xf32> to vector<16xf32>
    %148 = vector.shape_cast %147 : vector<16xf32> to vector<16x1xf32>
    %cst_55 = arith.constant 3.200000e+01 : f32
    %149 = vector.broadcast %cst_55 : f32 to vector<16x1xf32>
    %150 = arith.divf %148, %149 : vector<16x1xf32>
    %151 = vector.broadcast %150 : vector<16x1xf32> to vector<16x32xf32>
    %152 = arith.subf %146, %151 : vector<16x32xf32>
    %153 = arith.mulf %152, %152 : vector<16x32xf32>
    %cst_56 = arith.constant dense<0.000000e+00> : vector<16xf32>
    %154 = vector.multi_reduction <add>, %153, %cst_56 [1] : vector<16x32xf32> to vector<16xf32>
    %155 = vector.shape_cast %154 : vector<16xf32> to vector<16x1xf32>
    %cst_57 = arith.constant 3.200000e+01 : f32
    %156 = vector.broadcast %cst_57 : f32 to vector<16x1xf32>
    %157 = arith.divf %155, %156 : vector<16x1xf32>
    %158 = vector.broadcast %150 : vector<16x1xf32> to vector<16x32xf32>
    %159 = arith.subf %146, %158 : vector<16x32xf32>
    %cst_58 = arith.constant 9.99999974E-6 : f32
    %160 = vector.broadcast %cst_58 : f32 to vector<16x1xf32>
    %161 = arith.addf %157, %160 : vector<16x1xf32>
    %162 = math.rsqrt %161 : vector<16x1xf32>
    %163 = vector.broadcast %162 : vector<16x1xf32> to vector<16x32xf32>
    %164 = arith.mulf %159, %163 : vector<16x32xf32>
    %c0_59 = arith.constant 0 : index
    %c0_60 = arith.constant 0 : index
    %165 = vector.load %arg16[%c0_59, %c0_60] : memref<1x32xf32, #tpu.memory_space<vmem>>, vector<1x32xf32>
    %166 = vector.broadcast %165 : vector<1x32xf32> to vector<16x32xf32>
    %167 = arith.mulf %164, %166 : vector<16x32xf32>
    %c0_61 = arith.constant 0 : index
    %c0_62 = arith.constant 0 : index
    %168 = vector.load %arg17[%c0_61, %c0_62] : memref<1x32xf32, #tpu.memory_space<vmem>>, vector<1x32xf32>
    %169 = vector.broadcast %168 : vector<1x32xf32> to vector<16x32xf32>
    %170 = arith.addf %167, %169 : vector<16x32xf32>
    %c0_63 = arith.constant 0 : index
    %c0_64 = arith.constant 0 : index
    %c0_65 = arith.constant 0 : index
    %171 = vector.load %arg18[%c0_63, %c0_64, %c0_65] : memref<1x16x32xf32, #tpu.memory_space<vmem>>, vector<1x16x32xf32>
    %172 = vector.shape_cast %171 : vector<1x16x32xf32> to vector<16x32xf32>
    %173 = vector.shape_cast %170 : vector<16x32xf32> to vector<1x16x32xf32>
    tpu.vector_store %arg18[%c0_63, %c0_64, %c0_65], %173 {strides = array<i32>} : memref<1x16x32xf32, #tpu.memory_space<vmem>>, vector<1x16x32xf32>,
    return
  }
  func.func @transform_0(%arg0: i32) -> (i32, i32, i32, i32) {
    %c0_i32 = arith.constant 0 : i32
    %c0_i32_0 = arith.constant 0 : i32
    %c0_i32_1 = arith.constant 0 : i32
    %c0_i32_2 = arith.constant 0 : i32
    return %arg0, %c0_i32, %c0_i32_0, %c0_i32_1 : i32, i32, i32, i32
  }
  func.func @transform_1(%arg0: i32) -> (i32, i32, i32, i32) {
    %c0_i32 = arith.constant 0 : i32
    %c0_i32_0 = arith.constant 0 : i32
    %c0_i32_1 = arith.constant 0 : i32
    %c0_i32_2 = arith.constant 0 : i32
    return %arg0, %c0_i32, %c0_i32_0, %c0_i32_1 : i32, i32, i32, i32
  }
  func.func @transform_2(%arg0: i32) -> (i32, i32) {
    %c0_i32 = arith.constant 0 : i32
    %c0_i32_0 = arith.constant 0 : i32
    %c0_i32_1 = arith.constant 0 : i32
    return %c0_i32, %c0_i32_0 : i32, i32
  }
  func.func @transform_3(%arg0: i32) -> (i32, i32) {
    %c0_i32 = arith.constant 0 : i32
    %c0_i32_0 = arith.constant 0 : i32
    %c0_i32_1 = arith.constant 0 : i32
    return %c0_i32, %c0_i32_0 : i32, i32
  }
  func.func @transform_4(%arg0: i32) -> (i32, i32) {
    %c0_i32 = arith.constant 0 : i32
    %c0_i32_0 = arith.constant 0 : i32
    %c0_i32_1 = arith.constant 0 : i32
    return %c0_i32, %c0_i32_0 : i32, i32
  }
  func.func @transform_5(%arg0: i32) -> (i32, i32) {
    %c0_i32 = arith.constant 0 : i32
    %c0_i32_0 = arith.constant 0 : i32
    %c0_i32_1 = arith.constant 0 : i32
    return %c0_i32, %c0_i32_0 : i32, i32
  }
  func.func @transform_6(%arg0: i32) -> (i32, i32) {
    %c0_i32 = arith.constant 0 : i32
    %c0_i32_0 = arith.constant 0 : i32
    %c0_i32_1 = arith.constant 0 : i32
    return %c0_i32, %c0_i32_0 : i32, i32
  }
  func.func @transform_7(%arg0: i32) -> (i32, i32) {
    %c0_i32 = arith.constant 0 : i32
    %c0_i32_0 = arith.constant 0 : i32
    %c0_i32_1 = arith.constant 0 : i32
    return %c0_i32, %c0_i32_0 : i32, i32
  }
  func.func @transform_8(%arg0: i32) -> (i32, i32) {
    %c0_i32 = arith.constant 0 : i32
    %c0_i32_0 = arith.constant 0 : i32
    %c0_i32_1 = arith.constant 0 : i32
    return %c0_i32, %c0_i32_0 : i32, i32
  }
  func.func @transform_9(%arg0: i32) -> (i32, i32) {
    %c0_i32 = arith.constant 0 : i32
    %c0_i32_0 = arith.constant 0 : i32
    %c0_i32_1 = arith.constant 0 : i32
    return %c0_i32, %c0_i32_0 : i32, i32
  }
  func.func @transform_10(%arg0: i32) -> (i32, i32) {
    %c0_i32 = arith.constant 0 : i32
    %c0_i32_0 = arith.constant 0 : i32
    %c0_i32_1 = arith.constant 0 : i32
    return %c0_i32, %c0_i32_0 : i32, i32
  }
  func.func @transform_11(%arg0: i32) -> (i32, i32) {
    %c0_i32 = arith.constant 0 : i32
    %c0_i32_0 = arith.constant 0 : i32
    %c0_i32_1 = arith.constant 0 : i32
    return %c0_i32, %c0_i32_0 : i32, i32
  }
  func.func @transform_12(%arg0: i32) -> (i32, i32) {
    %c0_i32 = arith.constant 0 : i32
    %c0_i32_0 = arith.constant 0 : i32
    %c0_i32_1 = arith.constant 0 : i32
    return %c0_i32, %c0_i32_0 : i32, i32
  }
  func.func @transform_13(%arg0: i32) -> (i32, i32) {
    %c0_i32 = arith.constant 0 : i32
    %c0_i32_0 = arith.constant 0 : i32
    %c0_i32_1 = arith.constant 0 : i32
    return %c0_i32, %c0_i32_0 : i32, i32
  }
  func.func @transform_14(%arg0: i32) -> (i32, i32) {
    %c0_i32 = arith.constant 0 : i32
    %c0_i32_0 = arith.constant 0 : i32
    %c0_i32_1 = arith.constant 0 : i32
    return %c0_i32, %c0_i32_0 : i32, i32
  }
  func.func @transform_15(%arg0: i32) -> (i32, i32) {
    %c0_i32 = arith.constant 0 : i32
    %c0_i32_0 = arith.constant 0 : i32
    %c0_i32_1 = arith.constant 0 : i32
    return %c0_i32, %c0_i32_0 : i32, i32
  }
  func.func @transform_16(%arg0: i32) -> (i32, i32) {
    %c0_i32 = arith.constant 0 : i32
    %c0_i32_0 = arith.constant 0 : i32
    %c0_i32_1 = arith.constant 0 : i32
    return %c0_i32, %c0_i32_0 : i32, i32
  }
  func.func @transform_17(%arg0: i32) -> (i32, i32, i32) {
    %c0_i32 = arith.constant 0 : i32
    %c0_i32_0 = arith.constant 0 : i32
    %c0_i32_1 = arith.constant 0 : i32
    return %arg0, %c0_i32, %c0_i32_0 : i32, i32, i32
  }
}

</mosaic_0001>

<bundles_post_ra>
// kernel: partial_patch_embed.1
= control target key start
LH: loop header
LB: loop body
LE: loop exit
PB: predicated region body
PF: predicated region fallthrough
CT: control target
= control target key end

     0   :  { %s11478_s0 = inlined_call_operand.vmem [shape: bf16[2,18,18,3], index: 0, kind: input, shape index: {}]   ;;  %s11479_s1 = inlined_call_operand.vmem [shape: f32[2,18,18,1], index: 1, kind: input, shape index: {}]   ;;  %s11480_s2 = inlined_call_operand.vmem [shape: bf16[27,8], index: 2, kind: input, shape index: {}]   ;;  %s11481_s3 = inlined_call_operand.vmem [shape: f32[1,8], index: 3, kind: input, shape index: {}]   ;;  %s11482_s4 = inlined_call_operand.vmem [shape: f32[1,8], index: 4, kind: input, shape index: {}]   ;;  %s11483_s5 = inlined_call_operand.vmem [shape: f32[1,8], index: 5, kind: input, shape index: {}]   ;;  %s11484_s6 = inlined_call_operand.vmem [shape: bf16[32,16], index: 6, kind: input, shape index: {}]   ;;  %s11485_s7 = inlined_call_operand.vmem [shape: f32[1,16], index: 7, kind: input, shape index: {}]   ;;  %s11486_s8 = inlined_call_operand.vmem [shape: f32[1,16], index: 8, kind: input, shape index: {}]   ;;  %s11487_s9 = inlined_call_operand.vmem [shape: bf16[144,16], index: 9, kind: input, shape index: {}]   ;;  %s11488_s10 = inlined_call_operand.vmem [shape: f32[1,16], index: 10, kind: input, shape index: {}]   ;;  %s11489_s11 = inlined_call_operand.vmem [shape: f32[1,16], index: 11, kind: input, shape index: {}]   ;;  %s11490_s12 = inlined_call_operand.vmem [shape: bf16[64,32], index: 12, kind: input, shape index: {}]   ;;  %s11491_s13 = inlined_call_operand.vmem [shape: f32[1,32], index: 13, kind: input, shape index: {}]   ;;  %s11492_s14 = inlined_call_operand.vmem [shape: f32[1,32], index: 14, kind: input, shape index: {}]   ;;  %s11493_s15 = inlined_call_operand.vmem [shape: f32[1,32], index: 15, kind: input, shape index: {}]   ;;  %s11494_s16 = inlined_call_operand.vmem [shape: f32[1,32], index: 16, kind: input, shape index: {}]   ;;  %s11495_s17 = inlined_call_operand.hbm [shape: f32[2,16,32], index: 17, kind: output, shape index: {}]  }
   0x1   :  { %11605 = sst [smem:[#allocation45_spill]] %s11478_s0 }
   0x2   :  { %11606 = sst [smem:[#allocation46_spill]] %s11479_s1 }
   0x3   :  { %11607 = sst [smem:[#allocation47_spill]] %s11480_s2 }
   0x4   :  { %11608 = sst [smem:[#allocation48_spill]] %s11495_s17 }
   0x5   :  { %22 = vsyncpa [#allocation4], 0 }
   0x6   :  { %24 = vsyncpa [#allocation4 + $0x1], 0  ;;  %s7292_s24 = smov 0   ;;  %s7294_s25 = smov 0  }
   0x7   :  { %s7296_s26 = smov 0   ;;  %s7298_s27 = smov 0  }
   0x8 LB: > { %11609 = sst [smem:[#allocation6_spill]] %s7165_s24  ;;  %s7313_s28 = sadd.s32 4294967295, %s7177_s27   ;;  %s7177_s27 = sphi %s7298_s27, %s11869_s27   ;;  %s7173_s26 = sphi %s7296_s26, %s11871_s26   ;;  %s7169_s25 = sphi %s7294_s25, %s11873_s25   ;;  %s7165_s24 = sphi %s7292_s24, %s11872_s24  }
   0x9   : > { %11610 = sst [smem:[#allocation7_spill]] %s7173_s26  ;;  %s6523_s29 = sadd.s32 4294967294, %s7177_s27  }
   0xa   : > { %11611 = sst [smem:[#allocation8_spill]] %s7177_s27  ;;  %s7317_s0 = sadd.s32 1, %s7177_s27  }
   0xb   : > { %11612 = sst [smem:[#allocation9_spill]] %s7317_s0  ;;  %s404_s30 = sadd.s32 1, %s7173_s26 }
   0xc   : > { %s401_s18 = ssub.s32 %s7177_s27, %s7317_s0  ;;  %p414_p0 = scmp.ne.s32.totalorder %s7173_s26, %s7169_s25 }
   0xd   : > { %p402_p1 = scmp.eq.s32.totalorder %s401_s18, 0  ;;  %p415_p2 = scmp.eq.s32.totalorder %s7313_s28, 1 }
   0xe   : > { %p420_p3 = scmp.ne.s32.totalorder %s7169_s25, %s7165_s24  ;;  %p421_p4 = scmp.eq.s32.totalorder %s6523_s29, 1 }
   0xf   : > { %s7328_s19 = scalar_select %p402_p1, %s7173_s26, %s404_s30  }
  0x10   : > { %p7330_p5 = por %p415_p2, %p414_p0  ;;  %p7334_p6 = por %p421_p4, %p420_p3 }
  0x11   : > { %11613 = sst [smem:[#allocation10_spill]] %s7328_s19  ;;  %p6526_p7 = scmp.ge.s32.totalorder %s7177_s27, 1 }
  0x12   : > { %s11615_s20 = scalar_select %p7334_p6, 1, 0 }
  0x13   : > { %p500_p8 = scmp.lt.s32.totalorder %s7177_s27, 3 }
  0x14   : > { %11616 = sst [smem:[#allocation11_spill]] %s11615_s20 }
  0x15   : > { %p501_p9 = pnand %p6526_p7, %p500_p8 }
  0x17   : > { %504 = sbr.rel (%p501_p9) target bundleno = 2062 (0x80e), region = 88 }
  0x1e   : > { %p557_p10 = scmp.lt.s32.totalorder %s7313_s28, 1  ;;  %s11617_s30 = sld [smem:[#allocation45_spill]]  ;;  %vm975_vm0 = vcmask 1046528   ;;  %vm750_vm1 = vsmask.f32 7424  ;;  %vm1606_vm2 = vcmask 1044480  }
  0x1f   : > { %s11496_s19 = smov 9   ;;  %s11500_s23 = smov 6   ;;  %vm1607_vm3 = vcmask 1045504   ;;  %v7187_v53 = vmov 65535   ;;  %vm1294_vm4 = vcmask 23552   ;;  %vm1327_vm5 = vcmask 48128  }
  0x20   : > { %s7342_s21 = scalar_select %p557_p10, %s7313_s28, 1  ;;  %v1608_v54 = vsel %vm1606_vm2, 4294967295, %v7187_v53  ;;  %vm1360_vm6 = vcmask 72704   ;;  %vm1393_vm7 = vcmask 97280   ;;  %vm1426_vm8 = vcmask 121856  }
  0x21   : > { %s11502_s29 = smov 3   ;;  %s11618_s2 = sld [smem:[#allocation47_spill]]  ;;  %v1609_v55 = vsel %vm1607_vm3, %v1608_v54, 0  ;;  %vm1459_vm9 = vcmask 146432   ;;  %vm1492_vm10 = vcmask 171008   ;;  %vm1525_vm11 = vcmask 195584  }
  0x22   : > { %s6714_s22 = smul.u32 216, %s7342_s21  ;;  %s11625_s26 = smov 21   ;;  %vm1573_vm12 = vcmask 220160   ;;  %vm3980_vm13 = vcmask 1041409   ;;  %vm3982_vm14 = vcmask 1042434   ;;  %vm3984_vm15 = vcmask 1043459  }
  0x23   : > { %s11626_s0 = smov 24   ;;  %s6715_s20 = smul.u32 432, %s7342_s21  ;;  %vm3988_vm2 = vcmask 1045509  }
  0x24   : > { %s7348_s18 = scalar_lea.vmem %s11617_s30, %s6714_s22  ;;  %s11498_s22 = smov 15  }
  0x25   : > { %v7351_v0 = vld [vmem:[%s7348_s18 + $0x18] sm:$0xff]   ;;  %v7354_v1 = vld [vmem:[%s7348_s18 + $0xc] sm:$0xff]   ;;  %v6981_v2 = vld [vmem:[%s7348_s18 + $0x14] ss:$0 sps:$4 sm:$0x11]   ;;  %s11504_s30 = smov 12  }
  0x26   : > { %1063 = vrot.lane.b32.xlu1 %v7351_v0, %s11496_s19  ;;  %v7360_v3 = vld [vmem:[%s7348_s18] sm:$0xff]   ;;  %1061 = vrot.lane.b32.xlu0 %v7354_v1, %s11496_s19  ;;  %v979_v4 = vrot.slane %v7354_v1, 1  ;;  %v980_v5 = vrot.slane %v6981_v2, 1  ;;  %v6983_v6 = vld [vmem:[%s7348_s18 + $0x8] ss:$0 sps:$4 sm:$0x11]  }
  0x27   : > { %v976_v7 = vrot.slane %v7360_v3, 1  ;;  %v752_v8 = vshrl.u32 %v7360_v3, 16  ;;  %v754_v9 = vshll.u32 %v7360_v3, 16  ;;  %v764_v10 = vshrl.u32 %v7354_v1, 16  ;;  %v7380_v30 = vld [vmem:[%s7348_s18 + $0x24] sm:$0xff]   ;;  %s11506_s19 = smov 18  }
  0x28   : > { %v981_v11 = vsel %vm975_vm0, %v979_v4, %v980_v5  ;;  %v977_v12 = vrot.slane %v6983_v6, 1  ;;  %v759_v13 = vshll.u32 %v6983_v6, 16  ;;  %v6984_v14 = vld [vmem:[%s7348_s18 + $0x20] ss:$0 sps:$4 sm:$0x11]   ;;  %v766_v15 = vshll.u32 %v7354_v1, 16 }
  0x29   : > { %v756_v16 = vrot.slane %v754_v9, 1  ;;  %v771_v17 = vshll.u32 %v6981_v2, 16  ;;  %v778_v18 = vshll.u32 %v7351_v0, 16  ;;  %v982_v23 = vrot.slane %v7351_v0, 1  ;;  %v7000_v44 = vld [vmem:[%s11618_s2] sm:$0xff]   ;;  %v6987_v48 = vld [vmem:[%s7348_s18 + $0x30] sm:$0xff]  }
  0x2a   : > { %1143 = vrot.lane.b32.xlu0 %v981_v11, %s11498_s22  ;;  %v978_v19 = vsel %vm975_vm0, %v976_v7, %v977_v12  ;;  %v761_v20 = vrot.slane %v759_v13, 1  ;;  %v768_v21 = vrot.slane %v766_v15, 1  ;;  %v776_v25 = vshrl.u32 %v7351_v0, 16  ;;  %v6986_v33 = vld [vmem:[%s7348_s18 + $0x2c] ss:$0 sps:$4 sm:$0x11]   ;;  %6654 = vmatprep.subr.bf16.mxu0 %v7000_v44 }
  0x2b   : > { %1024 = vrot.lane.b32.xlu1 %v978_v19, %s11500_s23  ;;  %v757_v22 = vor.u32 %v756_v16, %v752_v8  ;;  %v773_v24 = vrot.slane %v771_v17, 1  ;;  %v983_v26 = vrot.slane %v6984_v14, 1  ;;  %v780_v28 = vrot.slane %v778_v18, 1  ;;  %6655 = vmatpush3.bf16.msra.mxu0 %v7000_v44  ;;  %v6988_v49 = vld [vmem:[%s7348_s18 + $0x38] ss:$0 sps:$4 sm:$0x11]  }
  0x2c   : > { %v769_v27 = vor.u32 %v768_v21, %v764_v10  ;;  %v783_v29 = vshll.u32 %v6984_v14, 16  ;;  %v790_v37 = vshll.u32 %v7380_v30, 16  ;;  %v788_v39 = vshrl.u32 %v7380_v30, 16  ;;  %v7002_v50 = vld [vmem:[%s11618_s2 + $0x8] sm:$0x3f]   ;;  %v6989_v63 = vld [vmem:[%s7348_s18 + $0x3c] sm:$0xff]  }
  0x2d   : > { %v762_v31 = vsel %vm750_vm1, %v757_v22, %v761_v20  ;;  %v984_v34 = vsel %vm975_vm0, %v982_v23, %v983_v26  ;;  %v781_v35 = vor.u32 %v780_v28, %v776_v25  ;;  %v795_v41 = vshll.u32 %v6986_v33, 16  ;;  %v6990_v2 = vld [vmem:[%s7348_s18 + $0x44] ss:$0 sps:$4 sm:$0x11]   ;;  %s11624_s2 = smov 18   ;;  %v6991_v16 = vld [vmem:[%s7348_s18 + $0x48] sm:$0xff]  }
  0x2e   : > { %943 = vrot.lane.b32.xlu0 %v762_v31, %s11502_s29  ;;  %v774_v32 = vsel %vm750_vm1, %v769_v27, %v773_v24  ;;  %v785_v36 = vrot.slane %v783_v29, 1  ;;  %v792_v40 = vrot.slane %v790_v37, 1  ;;  %v985_v46 = vrot.slane %v7380_v30, 1  ;;  %v6992_v18 = vld [vmem:[%s7348_s18 + $0x50] ss:$0 sps:$4 sm:$0x11]  }
  0x2f   : > { %1026 = vrot.lane.b32.xlu1 %v981_v11, %s11500_s23  ;;  %v797_v43 = vrot.slane %v795_v41, 1  ;;  %v986_v47 = vrot.slane %v6986_v33, 1  ;;  %s11619_s23 = smov 3   ;;  %v802_v52 = vshll.u32 %v6987_v48, 16  ;;  %v1611_v56 = vand.u32 %v7002_v50, %v1609_v55  ;;  %v6993_v25 = vld [vmem:[%s7348_s18 + $0x54] sm:$0xff]   ;;  %v6995_v41 = vld [vmem:[%s7348_s18 + $0x60] sm:$0xff]  }
  0x30   : > { %v786_v38 = vsel %vm750_vm1, %v781_v35, %v785_v36  ;;  %v793_v42 = vor.u32 %v792_v40, %v788_v39  ;;  %v800_v57 = vshrl.u32 %v6987_v48, 16  ;;  %v807_v59 = vshll.u32 %v6988_v49, 16  ;;  %v6994_v29 = vld [vmem:[%s7348_s18 + $0x5c] ss:$0 sps:$4 sm:$0x11]   ;;  %v7469_v50 = vld [vmem:[%s7348_s18 + $0x6c] sm:$0xff]  }
  0x31   : > { %v987_v51 = vsel %vm975_vm0, %v985_v46, %v986_v47  ;;  %v804_v58 = vrot.slane %v802_v52, 1  ;;  %6656 = vmatprep.subr.bf16.mxu0 %v1611_v56  ;;  %v988_v62 = vrot.slane %v6987_v48, 1  ;;  %v812_v4 = vshrl.u32 %v6989_v63, 16  ;;  %v6998_v54 = vld [vmem:[%s7348_s18 + $0x74] ss:$0 sps:$4 sm:$0x11]  }
  0x32   : > { %945 = vrot.lane.b32.xlu0 %v774_v32, %s11502_s29  ;;  %v798_v45 = vsel %vm750_vm1, %v793_v42, %v797_v43  ;;  %s11510_s29 = smov 21   ;;  %6657 = vmatpush3.bf16.msra.mxu0 %v1611_v56  ;;  %v809_v61 = vrot.slane %v807_v59, 1  ;;  %v989_v6 = vrot.slane %v6988_v49, 1  ;;  %v814_v7 = vshll.u32 %v6989_v63, 16  ;;  %s11627_s27 = sld [smem:[#allocation46_spill]] }
  0x33   : > { %1145 = vrot.lane.b32.xlu1 %v984_v34, %s11498_s22  ;;  %v805_v60 = vor.u32 %v804_v58, %v800_v57  ;;  %s11621_s22 = smov 9   ;;  %v819_v10 = vshll.u32 %v6990_v2, 16  ;;  %v991_v14 = vrot.slane %v6989_v63, 1  ;;  %v992_v15 = vrot.slane %v6990_v2, 1  ;;  %s7196_s24 = smov 64  }
  0x34   : > { %v990_v8 = vsel %vm975_vm0, %v988_v62, %v989_v6  ;;  %v816_v9 = vrot.slane %v814_v7, 1  ;;  %v826_v19 = vshll.u32 %v6991_v16, 16  ;;  %v824_v20 = vshrl.u32 %v6991_v16, 16  ;;  %v6996_v43 = vld [vmem:[%s7348_s18 + $0x68] ss:$0 sps:$4 sm:$0x11]  }
  0x35   : > { %v810_v5 = vsel %vm750_vm1, %v805_v60, %v809_v61  ;;  %v821_v12 = vrot.slane %v819_v10, 1  ;;  %v993_v17 = vsel %vm975_vm0, %v991_v14, %v992_v15  ;;  %v831_v22 = vshll.u32 %v6992_v18, 16 }
  0x36   : > { %1108 = vrot.lane.b32.xlu0 %v774_v32, %s11504_s30  ;;  %v817_v11 = vor.u32 %v816_v9, %v812_v4  ;;  %v828_v21 = vrot.slane %v826_v19, 1  ;;  %v994_v27 = vrot.slane %v6991_v16, 1  ;;  %v995_v28 = vrot.slane %v6992_v18, 1 }
  0x37   : > { %1110 = vrot.lane.b32.xlu1 %v786_v38, %s11504_s30  ;;  %s11508_s30 = smov 24   ;;  %v833_v24 = vrot.slane %v831_v22, 1  ;;  %v838_v31 = vshll.u32 %v6993_v25, 16  ;;  %v836_v33 = vshrl.u32 %v6993_v25, 16  ;;  %v843_v35 = vshll.u32 %v6994_v29, 16 }
  0x38   : > { %v822_v13 = vsel %vm750_vm1, %v817_v11, %v821_v12  ;;  %v829_v23 = vor.u32 %v828_v21, %v824_v20  ;;  %v996_v32 = vsel %vm975_vm0, %v994_v27, %v995_v28  ;;  %v997_v39 = vrot.slane %v6993_v25, 1  ;;  %v7506_v12 = vld [vmem:[%s7348_s18 + $0x80] ss:$0 sps:$4 sm:$0x11]   ;;  %s7517_s17 = scalar_lea.vmem %s11627_s27, %s6715_s20  ;;  %s7200_s27 = smov [#allocation3]  }
  0x39   : > { %v845_v37 = vrot.slane %v843_v35, 1  ;;  %v998_v40 = vrot.slane %v6994_v29, 1  ;;  %v850_v44 = vshll.u32 %v6995_v41, 16  ;;  %v855_v47 = vshll.u32 %v6996_v43, 16 }
  0x3a   : > { %1180 = vrot.lane.b32.xlu0 %v7351_v0, %s11506_s19  ;;  %v834_v26 = vsel %vm750_vm1, %v829_v23, %v833_v24  ;;  %v1000_v52 = vrot.slane %v6995_v41, 1  ;;  %v1001_v53 = vrot.slane %v6996_v43, 1  ;;  %v862_v55 = vshll.u32 %v7469_v50, 16  ;;  %v7527_v23 = vld [vmem:[%s7348_s18 + $0x84] sm:$0xff]   ;;  %v7530_v24 = vld [vmem:[%s7517_s17 + $0x30] sm:$0xff] }
  0x3b   : > { %1182 = vrot.lane.b32.xlu1 %v7380_v30, %s11506_s19  ;;  %s11620_s19 = smov 6   ;;  %v999_v42 = vsel %vm975_vm0, %v997_v39, %v998_v40  ;;  %v852_v46 = vrot.slane %v850_v44, 1  ;;  %v857_v49 = vrot.slane %v855_v47, 1  ;;  %v860_v57 = vshrl.u32 %v7469_v50, 16 }
  0x3c   : > { %v1002_v56 = vsel %vm975_vm0, %v1000_v52, %v1001_v53  ;;  %v864_v58 = vrot.slane %v862_v55, 1  ;;  %v867_v59 = vshll.u32 %v6998_v54, 16  ;;  %v1003_v6 = vrot.slane %v7469_v50, 1  ;;  %v7584_v55 = vld [vmem:[%s7517_s17] sm:$0xff] }
  0x3d   : > { %v1004_v7 = vrot.slane %v6998_v54, 1  ;;  %v879_v19 = vshll.u32 %v7506_v12, 16  ;;  %v886_v35 = vshll.u32 %v7527_v23, 16  ;;  %v1007_v40 = vrot.slane %v7506_v12, 1 }
  0x3e   : > { %1227 = vrot.lane.b32.xlu0 %v786_v38, %s11510_s29  ;;  %v865_v62 = vor.u32 %v864_v58, %v860_v57  ;;  %v2063_v44 = vrot.slane %v7530_v24, 2  ;;  %v884_v47 = vshrl.u32 %v7527_v23, 16  ;;  %v1909_v12 = vrot.slane %v7584_v55, 1 }
  0x3f   : > { %1229 = vrot.lane.b32.xlu1 %v798_v45, %s11510_s29  ;;  %s11623_s29 = smov 15   ;;  %v7503_v11 = vsel %vm975_vm0, %v1003_v6, %v1004_v7  ;;  %v881_v28 = vrot.slane %v879_v19, 1  ;;  %v7608_v6 = vld [vmem:[%s7517_s17 + $0x18] sm:$0xff]  ;;  %v7611_v7 = vld [vmem:[%s7517_s17 + $0x20] sm:$0xff] }
  0x40   : > { %11631 = vst [vmem:[#allocation15_spill] sm:$0xff] %v7611_v7 }
  0x42   : > { %1262 = vrot.lane.b32.xlu0 %v984_v34, %s11508_s30 }
  0x43   : > { %947 = vrot.lane.b32.xlu1 %v786_v38, %s11619_s23 }
  0x46   : > { %1264 = vrot.lane.b32.xlu0 %v987_v51, %s11508_s30  ;;  %s11622_s30 = smov 12  }
  0x47   : > { %949 = vrot.lane.b32.xlu1 %v798_v45, %s11619_s23 }
  0x4a   : > { %1028 = vrot.lane.b32.xlu0 %v984_v34, %s11620_s19  ;;  %v840_v34 = vrot.slane %v838_v31, 1  ;;  %v1919_v31 = vrot.slane %v7530_v24, 1 }
  0x4b   : > { %1030 = vrot.lane.b32.xlu1 %v987_v51, %s11620_s19 }
  0x4c   : > { %v841_v36 = vor.u32 %v840_v34, %v836_v33 }
  0x4e   : > { %1065 = vrot.lane.b32.xlu0 %v7380_v30, %s11621_s22  ;;  %v846_v38 = vsel %vm750_vm1, %v841_v36, %v845_v37 }
  0x4f   : > { %1067 = vrot.lane.b32.xlu1 %v6987_v48, %s11621_s22 }
  0x52   : > { %1112 = vrot.lane.b32.xlu0 %v798_v45, %s11622_s30  ;;  %v848_v45 = vshrl.u32 %v6995_v41, 16 }
  0x53   : > { %1114 = vrot.lane.b32.xlu1 %v810_v5, %s11622_s30 }
  0x56   : > { %1147 = vrot.lane.b32.xlu0 %v987_v51, %s11623_s29 }
  0x57   : > { %1149 = vrot.lane.b32.xlu1 %v990_v8, %s11623_s29 }
  0x5a   : > { %1184 = vrot.lane.b32.xlu0 %v6987_v48, %s11624_s2  ;;  %v853_v48 = vor.u32 %v852_v46, %v848_v45 }
  0x5b   : > { %1186 = vrot.lane.b32.xlu1 %v6989_v63, %s11624_s2 }
  0x5c   : > { %v858_v51 = vsel %vm750_vm1, %v853_v48, %v857_v49  ;;  %v888_v48 = vrot.slane %v886_v35, 1 }
  0x5e   : > { %1231 = vrot.lane.b32.xlu0 %v810_v5, %s11625_s26 }
  0x5f   : > { %1233 = vrot.lane.b32.xlu1 %v822_v13, %s11625_s26 }
  0x62   : > { %1266 = vrot.lane.b32.xlu0 %v990_v8, %s11626_s0 }
  0x63   : > { %951 = vrot.lane.b32.xlu1 %v810_v5, %s11619_s23 }
  0x66   : > { %1268 = vrot.lane.b32.xlu0 %v993_v17, %s11626_s0 }
  0x67   : > { %953 = vrot.lane.b32.xlu1 %v822_v13, %s11619_s23 }
  0x6a   : > { %1032 = vrot.lane.b32.xlu0 %v990_v8, %s11620_s19  ;;  %v7497_v8 = vld [vmem:[%s7348_s18 + $0x78] sm:$0xff]  }
  0x6b   : > { %1034 = vrot.lane.b32.xlu1 %v993_v17, %s11620_s19  ;;  %v1006_v39 = vrot.slane %v7497_v8, 1 }
  0x6e   : > { %1069 = vrot.lane.b32.xlu0 %v6989_v63, %s11621_s22  ;;  %v869_v63 = vrot.slane %v867_v59, 1  ;;  %v7591_v59 = vsel %vm975_vm0, %v1006_v39, %v1007_v40  ;;  %v7659_v39 = vld [vmem:[%s7517_s17 + $0x68] sm:$0xff] }
  0x6f   : > { %1071 = vrot.lane.b32.xlu1 %v6991_v16, %s11621_s22  ;;  %11632 = vst [vmem:[#allocation16_spill] sm:$0xff] %v7659_v39 }
  0x70   : > { %v7490_v4 = vsel %vm750_vm1, %v865_v62, %v869_v63 }
  0x72   : > { %1116 = vrot.lane.b32.xlu0 %v822_v13, %s11622_s30  ;;  %v874_v13 = vshll.u32 %v7497_v8, 16 }
  0x73   : > { %1118 = vrot.lane.b32.xlu1 %v834_v26, %s11622_s30 }
  0x74   : > { %v876_v18 = vrot.slane %v874_v13, 1 }
  0x76   : > { %1151 = vrot.lane.b32.xlu0 %v993_v17, %s11623_s29  ;;  %v872_v17 = vshrl.u32 %v7497_v8, 16 }
  0x77   : > { %1153 = vrot.lane.b32.xlu1 %v996_v32, %s11623_s29 }
  0x7a   : > { %1188 = vrot.lane.b32.xlu0 %v6991_v16, %s11624_s2  ;;  %v11519_v16 = vmov 0  }
  0x7b   : > { %1190 = vrot.lane.b32.xlu1 %v6993_v25, %s11624_s2  ;;  %6777 = vset.pattern.permute.xlu0 %v11519_v16 }
  0x7c   : > { %6778 = vset.pattern.permute.xlu1 %v11519_v16 }
  0x7e   : > { %1235 = vrot.lane.b32.xlu0 %v834_v26, %s11625_s26 }
  0x7f   : > { %1237 = vrot.lane.b32.xlu1 %v846_v38, %s11625_s26 }
  0x82   : > { %1270 = vrot.lane.b32.xlu0 %v996_v32, %s11626_s0 }
  0x83   : > { %955 = vrot.lane.b32.xlu1 %v834_v26, %s11619_s23 }
  0x86   : > { %1272 = vrot.lane.b32.xlu0 %v999_v42, %s11626_s0 }
  0x87   : > { %957 = vrot.lane.b32.xlu1 %v846_v38, %s11619_s23 }
  0x8a   : > { %1036 = vrot.lane.b32.xlu0 %v996_v32, %s11620_s19 }
  0x8b   : > { %1038 = vrot.lane.b32.xlu1 %v999_v42, %s11620_s19 }
  0x8e   : > { %1073 = vrot.lane.b32.xlu0 %v6993_v25, %s11621_s22  ;;  %v7533_v25 = vld [vmem:[%s7517_s17 + $0x38] sm:$0xff] }
  0x8f   : > { %1075 = vrot.lane.b32.xlu1 %v6995_v41, %s11621_s22  ;;  %11628 = vst [vmem:[#allocation12_spill] sm:$0xff] %v7533_v25  ;;  %v11528_v32 = vrot.slane %v7533_v25, 1  ;;  %v11525_v45 = vrot.slane %v7533_v25, 2 }
  0x91   : > { %v7564_v43 = vsel %vm975_vm0, %v1919_v31, %v11528_v32  ;;  %v7602_v62 = vsel %vm1607_vm3, %v2063_v44, %v11525_v45 }
  0x92   : > { %1120 = vrot.lane.b32.xlu0 %v846_v38, %s11622_s30  ;;  %v2025_v54 = vadd.f32 %v7564_v43, %v7530_v24 }
  0x93   : > { %1122 = vrot.lane.b32.xlu1 %v858_v51, %s11622_s30 }
  0x96   : > { %1155 = vrot.lane.b32.xlu0 %v999_v42, %s11623_s29 }
  0x97   : > { %1157 = vrot.lane.b32.xlu1 %v1002_v56, %s11623_s29 }
  0x98   : > { %v7482_v60 = vpop.permute.xlu1 %1063  ;;  %v1062_v61 = vpop.permute.xlu0 %1061 }
  0x9a   : > { %1192 = vrot.lane.b32.xlu0 %v6995_v41, %s11624_s2 }
  0x9b   : > { %1194 = vrot.lane.b32.xlu1 %v7469_v50, %s11624_s2 }
  0x9c   : > { %v7487_v2 = vpop.permute.xlu0 %1143 }
  0x9d   : > { %v1025_v5 = vpop.permute.xlu1 %1024 }
  0x9e   : > { %1239 = vrot.lane.b32.xlu0 %v858_v51, %s11625_s26 }
  0x9f   : > { %1241 = vrot.lane.b32.xlu1 %v7490_v4, %s11625_s26 }
  0xa0   : > { %v944_v9 = vpop.permute.xlu0 %943 }
  0xa1   : > { %v1027_v10 = vpop.permute.xlu1 %1026  ;;  %v1296_v20 = vsel %vm1294_vm4, %v7360_v3, %v944_v9  ;;  %v877_v3 = vor.u32 %v876_v18, %v872_v17 }
  0xa2   : > { %1274 = vrot.lane.b32.xlu0 %v1002_v56, %s11626_s0  ;;  %v1329_v27 = vsel %vm1327_vm5, %v1296_v20, %v1025_v5  ;;  %v1009_v20 = vrot.slane %v7527_v23, 1 }
  0xa3   : > { %959 = vrot.lane.b32.xlu1 %v858_v51, %s11619_s23  ;;  %v1362_v36 = vsel %vm1360_vm6, %v1329_v27, %v1062_v61  ;;  %v7555_v38 = vsel %vm750_vm1, %v877_v3, %v881_v28  ;;  %v7575_v51 = vld [vmem:[%s7348_s18 + $0x90] sm:$0xff]  }
  0xa4   : > { %v946_v14 = vpop.permute.xlu0 %945  ;;  %v7597_v61 = vld [vmem:[%s7517_s17 + $0x50] sm:$0xff]  ;;  %v896_v31 = vshrl.u32 %v7575_v51, 16  ;;  %v1012_v16 = vrot.slane %v7575_v51, 1 }
  0xa5   : > { %v7509_v15 = vpop.permute.xlu1 %1145  ;;  %v1298_v26 = vsel %vm1294_vm4, %v7354_v1, %v946_v14  ;;  %v7545_v1 = vld [vmem:[%s7348_s18 + $0x8c] ss:$0 sps:$4 sm:$0x11]   ;;  %11630 = vst [vmem:[#allocation14_spill] sm:$0xff] %v7597_v61 }
  0xa6   : > { %1276 = vrot.lane.b32.xlu0 %v7503_v11, %s11626_s0  ;;  %v1331_v33 = vsel %vm1327_vm5, %v1298_v26, %v1027_v10  ;;  %v891_v49 = vshll.u32 %v7545_v1, 16  ;;  %v898_v10 = vshll.u32 %v7575_v51, 16  ;;  %v11527_v26 = vrot.slane %v7611_v7, 1 }
  0xa7   : > { %961 = vrot.lane.b32.xlu1 %v7490_v4, %s11619_s23  ;;  %v1364_v41 = vsel %vm1360_vm6, %v1331_v33, %v7482_v60  ;;  %v7594_v60 = vld [vmem:[%s7517_s17 + $0x48] sm:$0xff]  ;;  %v7643_v33 = vld [vmem:[%s7348_s18 + $0x9c] sm:$0xff]  }
  0xa8   : > { %v1109_v21 = vpop.permute.xlu0 %1108  ;;  %v893_v5 = vrot.slane %v891_v49, 1  ;;  %v1924_v17 = vrot.slane %v7594_v60, 1  ;;  %v2068_v40 = vrot.slane %v7594_v60, 2  ;;  %v2058_v49 = vrot.slane %v7608_v6, 2 }
  0xa9   : > { %v1111_v22 = vpop.permute.xlu1 %1110  ;;  %v1395_v37 = vsel %vm1393_vm7, %v1362_v36, %v1109_v21  ;;  %v7630_v21 = vld [vmem:[%s7348_s18 + $0x98] ss:$0 sps:$4 sm:$0x11]   ;;  %v2053_v36 = vrot.slane %v7584_v55, 2 }
  0xaa   : > { %1040 = vrot.lane.b32.xlu0 %v1002_v56, %s11620_s19  ;;  %v1397_v52 = vsel %vm1393_vm7, %v1364_v41, %v1111_v22  ;;  %v7587_v56 = vld [vmem:[%s7517_s17 + $0x8] sm:$0xff]  ;;  %v1914_v22 = vrot.slane %v7608_v6, 1  ;;  %v11521_v41 = vrot.slane %v7597_v61, 2 }
  0xab   : > { %1042 = vrot.lane.b32.xlu1 %v7503_v11, %s11620_s19  ;;  %11629 = vst [vmem:[#allocation13_spill] sm:$0xff] %v7587_v56  ;;  %v1430_v9 = vsel %vm1426_vm8, %v1397_v52, %v7509_v15  ;;  %v11529_v13 = vrot.slane %v7587_v56, 1  ;;  %v11524_v15 = vrot.slane %v7597_v61, 1  ;;  %v7778_v61 = vld [vmem:[%s7348_s18 + $0xc0] sm:$0xff]  }
  0xac   : > { %v1181_v29 = vpop.permute.xlu0 %1180  ;;  %11633 = vst [vmem:[#allocation17_spill] sm:$0xff] %v7778_v61 }
  0xad   : > { %v1183_v34 = vpop.permute.xlu1 %1182  ;;  %v1911_v35 = vsel %vm975_vm0, %v1909_v12, %v11529_v13 }
  0xae   : > { %1077 = vrot.lane.b32.xlu0 %v7469_v50, %s11621_s22  ;;  %v1428_v50 = vsel %vm1426_vm8, %v1395_v37, %v7487_v2  ;;  %v1463_v14 = vsel %vm1459_vm9, %v1430_v9, %v1183_v34  ;;  %v900_v34 = vrot.slane %v898_v10, 1  ;;  %v11526_v37 = vrot.slane %v7587_v56, 2 }
  0xaf   : > { %1079 = vrot.lane.b32.xlu1 %v7497_v8, %s11621_s22  ;;  %v1461_v53 = vsel %vm1459_vm9, %v1428_v50, %v1181_v29  ;;  %v1010_v29 = vrot.slane %v7545_v1, 1  ;;  %v7656_v1 = vld [vmem:[%s7517_s17 + $0x60] sm:$0xff]  ;;  %v11522_v50 = vrot.slane %v7611_v7, 2 }
  0xb0   : > { %v1228_v42 = vpop.permute.xlu0 %1227  ;;  %v2055_v10 = vsel %vm1607_vm3, %v2053_v36, %v11526_v37  ;;  %v901_v12 = vor.u32 %v900_v34, %v896_v31 }
  0xb1   : > { %v1230_v46 = vpop.permute.xlu1 %1229  ;;  %v1494_v57 = vsel %vm1492_vm10, %v1461_v53, %v1228_v42  ;;  %v7685_v53 = vsel %vm975_vm0, %v1009_v20, %v1010_v29  ;;  %v7718_v20 = vld [vmem:[%s7348_s18 + $0xb0] ss:$0 sps:$4 sm:$0x11]  }
  0xb2   : > { %1124 = vrot.lane.b32.xlu0 %v7490_v4, %s11622_s30  ;;  %v889_v4 = vor.u32 %v888_v48, %v884_v47  ;;  %v1496_v18 = vsel %vm1492_vm10, %v1463_v14, %v1230_v46  ;;  %v903_v46 = vshll.u32 %v7630_v21, 16  ;;  %v7673_v47 = vld [vmem:[%s7348_s18 + $0xa8] sm:$0xff]   ;;  %v7678_v48 = vsel %vm975_vm0, %v1914_v22, %v11527_v26 }
  0xb3   : > { %1126 = vrot.lane.b32.xlu1 %v7555_v38, %s11622_s30  ;;  %v922_v22 = vshll.u32 %v7673_v47, 16 }
  0xb4   : > { %v1263_v58 = vpop.permute.xlu0 %1262  ;;  %v7638_v28 = vsel %vm750_vm1, %v889_v4, %v893_v5  ;;  %v1929_v4 = vrot.slane %v7656_v1, 1  ;;  %v11523_v5 = vrot.slane %v7659_v39, 1 }
  0xb5   : > { %v7604_v63 = vpop.permute.xlu1 %947  ;;  %v1527_v2 = vsel %vm1525_vm11, %v1494_v57, %v1263_v58  ;;  %v910_v57 = vshll.u32 %v7643_v33, 16  ;;  %v7692_v58 = vld [vmem:[%s7348_s18 + $0xb4] sm:$0xff]  }
  0xb6   : > { %1159 = vrot.lane.b32.xlu0 %v7503_v11, %s11623_s29  ;;  %6658 = vmatprep.mubr.msk.bf16.mxu0 %vm1573_vm12, %v1527_v2  ;;  %v2169_v11 = vadd.f32 %v7602_v62, %v2025_v54  ;;  %v7688_v54 = vld [vmem:[%s7348_s18 + $0xa4] ss:$0 sps:$4 sm:$0x11]   ;;  %v2021_v2 = vadd.f32 %v1911_v35, %v7584_v55  ;;  %v7709_v55 = vsel %vm1607_vm3, %v2068_v40, %v11521_v41  ;;  %v7730_v35 = vld [vmem:[%s7348_s18 + $0xbc] ss:$0 sps:$4 sm:$0x11]  }
  0xb7   : > { %1161 = vrot.lane.b32.xlu1 %v7591_v59, %s11623_s29  ;;  %v912_v31 = vrot.slane %v910_v57, 1  ;;  %v915_v34 = vshll.u32 %v7688_v54, 16  ;;  %v934_v36 = vshll.u32 %v7692_v58, 16  ;;  %v1016_v13 = vrot.slane %v7688_v54, 1 }
  0xb8   : > { %v1265_v19 = vpop.permute.xlu0 %1264  ;;  %v2201_v42 = vadd.f32 %v2169_v11, %v7594_v60  ;;  %v2165_v40 = vadd.f32 %v2055_v10, %v2021_v2  ;;  %v1013_v2 = vrot.slane %v7630_v21, 1  ;;  %v939_v21 = vshll.u32 %v7730_v35, 16 }
  0xb9   : > { %v7634_v27 = vpop.permute.xlu1 %949  ;;  %v1529_v3 = vsel %vm1525_vm11, %v1496_v18, %v1265_v19  ;;  %v905_v18 = vrot.slane %v903_v46, 1  ;;  %v908_v19 = vshrl.u32 %v7643_v33, 16  ;;  %v2073_v46 = vrot.slane %v7656_v1, 2 }
  0xba   : > { %1196 = vrot.lane.b32.xlu0 %v7497_v8, %s11624_s2  ;;  %6659 = vmatmul.mubr.msk.bf16.vlgmr.msra.gmra.mrb[0].mxu0 %vm1573_vm12, %v1529_v3  ;;  %v7664_v8 = vsel %vm975_vm0, %v1924_v17, %v11524_v15  ;;  %v2023_v17 = vadd.f32 %v7678_v48, %v7608_v6  ;;  %v7724_v3 = vsel %vm1607_vm3, %v2058_v49, %v11522_v50  ;;  %v11532_v49 = vrot.slane %v7659_v39, 2 }
  0xbb   : > { %1198 = vrot.lane.b32.xlu1 %v7527_v23, %s11624_s2  ;;  %v2027_v9 = vadd.f32 %v7664_v8, %v7594_v60  ;;  %v2243_v14 = vadd.f32 %v2201_v42, %v7664_v8  ;;  %v1931_v42 = vsel %vm975_vm0, %v1929_v4, %v11523_v5  ;;  %v920_v4 = vshrl.u32 %v7673_v47, 16 }
  0xbc   : > { %v7669_v44 = vpop.permute.xlu0 %1028  ;;  %v2167_v41 = vadd.f32 %v7724_v3, %v2023_v17  ;;  %v924_v5 = vrot.slane %v922_v22, 1  ;;  %v927_v15 = vshll.u32 %v7718_v20, 16  ;;  %v2197_v17 = vadd.f32 %v2165_v40, %v7608_v6  ;;  %v7768_v6 = vld [vmem:[%s7517_s17 + $0x78] sm:$0xff] }
  0xbd   : > { %v7682_v52 = vpop.permute.xlu1 %1030  ;;  %v2171_v57 = vadd.f32 %v7709_v55, %v2027_v9  ;;  %v2282_v10 = vadd.f32 %v2243_v14, %v7709_v55  ;;  %v932_v9 = vshrl.u32 %v7692_v58, 16  ;;  %v2029_v14 = vadd.f32 %v1931_v42, %v7656_v1 }
  0xbe   : > { %1243 = vrot.lane.b32.xlu0 %v7555_v38, %s11625_s26  ;;  %v913_v37 = vor.u32 %v912_v31, %v908_v19  ;;  %v917_v22 = vrot.slane %v915_v34, 1  ;;  %v2075_v26 = vsel %vm1607_vm3, %v2073_v46, %v11532_v49  ;;  %v2199_v19 = vadd.f32 %v2167_v41, %v7530_v24  ;;  %v7773_v31 = vld [vmem:[%s7517_s17 + $0x80] sm:$0xff] }
  0xbf   : > { %1245 = vrot.lane.b32.xlu1 %v7638_v28, %s11625_s26  ;;  %v2203_v32 = vadd.f32 %v2171_v57, %v7656_v1  ;;  %v2314_v40 = vadd.f32 %v2282_v10, %v7656_v1  ;;  %v925_v39 = vor.u32 %v924_v5, %v920_v4  ;;  %v929_v46 = vrot.slane %v927_v15, 1 }
  0xc0   : > { %v7714_v11 = vpop.permute.xlu0 %1065  ;;  %v1018_v57 = vrot.slane %v7673_v47, 1  ;;  %v1019_v49 = vrot.slane %v7718_v20, 1  ;;  %v941_v25 = vrot.slane %v939_v21, 1  ;;  %v2173_v56 = vadd.f32 %v2075_v26, %v2029_v14 }
  0xc1   : > { %v7726_v29 = vpop.permute.xlu1 %1067  ;;  %v2239_v1 = vadd.f32 %v2197_v17, %v7678_v48  ;;  %v7786_v41 = vsel %vm750_vm1, %v901_v12, %v905_v18  ;;  %v2245_v15 = vadd.f32 %v2203_v32, %v1931_v42  ;;  %v1934_v5 = vrot.slane %v7768_v6, 1 }
  0xc2   : > { %1278 = vrot.lane.b32.xlu0 %v7591_v59, %s11626_s0  ;;  %v11545_v20 = vrot.slane %v7773_v31, 1  ;;  %v7793_v10 = vsel %vm975_vm0, %v1012_v16, %v1013_v2  ;;  %v7796_v4 = vsel %vm750_vm1, %v913_v37, %v917_v22  ;;  %v2356_v48 = vadd.f32 %v2314_v40, %v1931_v42 }
  0xc3   : > { %963 = vrot.lane.b32.xlu1 %v7555_v38, %s11619_s23  ;;  %v936_v38 = vrot.slane %v934_v36, 1  ;;  %v1015_v36 = vrot.slane %v7643_v33, 1  ;;  %v7803_v32 = vsel %vm750_vm1, %v925_v39, %v929_v46  ;;  %v7806_v18 = vsel %vm975_vm0, %v1018_v57, %v1019_v49  ;;  %v7842_v46 = vld [vmem:[%s7348_s18 + $0xcc] sm:$0xff]  }
  0xc4   : > { %v7747_v50 = vpop.permute.xlu0 %1112  ;;  %v1021_v42 = vrot.slane %v7692_v58, 1  ;;  %v2205_v2 = vadd.f32 %v2173_v56, %v7768_v6  ;;  %v1300_v39 = vsel %vm1294_vm4, %v7351_v0, %v7604_v63  ;;  %v1022_v49 = vrot.slane %v7730_v35, 1  ;;  %11634 = vst [vmem:[#allocation18_spill] sm:$0xff] %v7842_v46 }
  0xc5   : > { %v7752_v45 = vpop.permute.xlu1 %1114  ;;  %v937_v54 = vor.u32 %v936_v38, %v932_v9  ;;  %v7800_v12 = vsel %vm975_vm0, %v1015_v36, %v1016_v13  ;;  %v1099_v38 = vshll.u32 %v7778_v61, 16  ;;  %v2278_v13 = vadd.f32 %v2239_v1, %v7724_v3  ;;  %v1800_v3 = vld [vmem:[%s7517_s17 + $0xd0] sm:$0x3] }
  0xc6   : > { %1280 = vrot.lane.b32.xlu0 %v7685_v53, %s11626_s0  ;;  %v2284_v21 = vadd.f32 %v2245_v15, %v2075_v26  ;;  %v1333_v56 = vsel %vm1327_vm5, %v1300_v39, %v7669_v44  ;;  %v1097_v0 = vshrl.u32 %v7778_v61, 16  ;;  %v7829_v63 = vadd.f32 %v2356_v48, %v2075_v26 }
  0xc7   : > { %965 = vrot.lane.b32.xlu1 %v7638_v28, %s11619_s23  ;;  %v7810_v37 = vsel %vm750_vm1, %v937_v54, %v941_v25  ;;  %v1936_v25 = vsel %vm975_vm0, %v1934_v5, %v11545_v20  ;;  %v1366_v14 = vsel %vm1360_vm6, %v1333_v56, %v7714_v11  ;;  %v7835_v22 = vrot.slane %v1099_v38, 1  ;;  %v7847_v11 = vld [vmem:[%s7517_s17 + $0xc8] sm:$0xff] }
  0xc8   : > { %v1148_v34 = vpop.permute.xlu0 %1147  ;;  %v2078_v36 = vrot.slane %v7768_v6, 2  ;;  %v11543_v44 = vrot.slane %v7773_v31, 2  ;;  %v1399_v40 = vsel %vm1393_vm7, %v1366_v14, %v7747_v50  ;;  %v2310_v26 = vadd.f32 %v2278_v13, %v7530_v24  ;;  %11635 = vst [vmem:[#allocation19_spill] sm:$0xff] %v7847_v11  ;;  %v7882_v13 = vld [vmem:[%s7348_s18 + $0xc8] ss:$0 sps:$4 sm:$0x11]  }
  0xc9   : > { %v7780_v7 = vpop.permute.xlu1 %1149  ;;  %v2031_v57 = vadd.f32 %v1936_v25, %v7768_v6  ;;  %v2247_v54 = vadd.f32 %v2205_v2, %v1936_v25  ;;  %v1302_v1 = vsel %vm1294_vm4, %v7380_v30, %v7634_v27  ;;  %v1432_v15 = vsel %vm1426_vm8, %v1399_v40, %v1148_v34  ;;  %v7867_v34 = vld [vmem:[%s7517_s17 + $0x90] sm:$0xff]  ;;  %v8019_v20 = vld [vmem:[%s7517_s17 + $0x28] sm:$0x3] }
  0xca   : > { %1044 = vrot.lane.b32.xlu0 %v7591_v59, %s11620_s19  ;;  %v2241_v59 = vadd.f32 %v2199_v19, %v7564_v43  ;;  %v2316_v50 = vadd.f32 %v2284_v21, %v7768_v6  ;;  %v1952_v5 = vrot.slane %v1800_v3, 1  ;;  %v1335_v24 = vsel %vm1327_vm5, %v1302_v1, %v7682_v52 }
  0xcb   : > { %1046 = vrot.lane.b32.xlu1 %v7685_v53, %s11620_s19  ;;  %v1368_v27 = vsel %vm1360_vm6, %v1335_v24, %v7726_v29  ;;  %v2080_v52 = vsel %vm1607_vm3, %v2078_v36, %v11543_v44  ;;  %v11548_v38 = vrot.slane %v7847_v11, 1  ;;  %v1218_v39 = vshll.u32 %v7842_v46, 16 }
  0xcc   : > { %v1185_v9 = vpop.permute.xlu0 %1184  ;;  %v1401_v2 = vsel %vm1393_vm7, %v1368_v27, %v7752_v45  ;;  %v2352_v21 = vadd.f32 %v2310_v26, %v7564_v43  ;;  %v11547_v45 = vrot.slane %v7847_v11, 2  ;;  %v2096_v14 = vrot.slane %v1800_v3, 2  ;;  %v7906_v26 = vld [vmem:[%s7348_s18 + $0xd4] ss:$0 sps:$4 sm:$0x11]   ;;  %v7927_v27 = vld [vmem:[%s7517_s17 + $0xa8] sm:$0xff] }
  0xcd   : > { %v1187_v16 = vpop.permute.xlu1 %1186  ;;  %v1465_v48 = vsel %vm1459_vm9, %v1432_v15, %v1185_v9  ;;  %v7873_v9 = vld [vmem:[%s7517_s17 + $0x98] sm:$0xff]  ;;  %v1434_v56 = vsel %vm1426_vm8, %v1401_v2, %v7780_v7  ;;  %v1939_v43 = vrot.slane %v7867_v34, 1  ;;  %v2175_v24 = vadd.f32 %v2080_v52, %v2031_v57 }
  0xce   : > { %1081 = vrot.lane.b32.xlu0 %v7527_v23, %s11621_s22  ;;  %v2280_v23 = vadd.f32 %v2241_v59, %v7602_v62  ;;  %v2491_v59 = vadd.f32 1e-08, %v7829_v63  ;;  %11636 = vst [vmem:[#allocation20_spill] sm:$0xff] %v7873_v9  ;;  %v11544_v7 = vrot.slane %v7873_v9, 1  ;;  %v7912_v1 = vsel %vm1607_vm3, %v11547_v45, %v2096_v14 }
  0xcf   : > { %1083 = vrot.lane.b32.xlu1 %v7575_v51, %s11621_s22  ;;  %11638 = vst [vmem:[#allocation22_spill] sm:$0xff] %v7912_v1  ;;  %v2083_v57 = vrot.slane %v7867_v34, 2  ;;  %v11542_v2 = vrot.slane %v7873_v9, 2  ;;  %v7960_v14 = vsel %vm975_vm0, %v1021_v42, %v1022_v49  ;;  %v7973_v42 = vld [vmem:[%s7517_s17 + $0x10] sm:$0x3]  ;;  %v1141_v49 = vrot.slane %v7882_v13, 1 }
  0xd0   : > { %v1232_v17 = vpop.permute.xlu0 %1231  ;;  %v2312_v30 = vadd.f32 %v2280_v23, %v7594_v60  ;;  %v7895_v23 = vsel %vm975_vm0, %v11548_v38, %v1952_v5  ;;  %7032 = vrcp.f32 %v2491_v59  ;;  %11641 = vst [vmem:[#allocation25_spill] sm:$0xff] %v7960_v14 }
  0xd1   : > { %v1234_v19 = vpop.permute.xlu1 %1233  ;;  %11637 = vst [vmem:[#allocation21_spill] sm:$0xff] %v7895_v23 }
  0xd2   : > { %1128 = vrot.lane.b32.xlu0 %v7638_v28, %s11622_s30  ;;  %v1498_v28 = vsel %vm1492_vm10, %v1465_v48, %v1232_v17  ;;  %v1467_v17 = vsel %vm1459_vm9, %v1434_v56, %v1187_v16  ;;  %v2354_v3 = vadd.f32 %v2312_v30, %v7664_v8  ;;  %v2358_v16 = vadd.f32 %v2316_v50, %v1936_v25 }
  0xd3   : > { %1130 = vrot.lane.b32.xlu1 %v7786_v41, %s11622_s30  ;;  %v1500_v36 = vsel %vm1492_vm10, %v1467_v17, %v1234_v19  ;;  %v1104_v19 = vshll.u32 %v7882_v13, 16  ;;  %v1216_v8 = vshrl.u32 %v7842_v46, 16  ;;  %v1220_v25 = vrot.slane %v1218_v39, 1 }
  0xd4   : > { %v1267_v6 = vpop.permute.xlu0 %1266  ;;  %v7924_v50 = vadd.f32 %v2352_v21, %v7602_v62  ;;  %v2286_v30 = vadd.f32 %v2247_v54, %v2080_v52  ;;  %v7949_v39 = vadd.f32 %v2354_v3, %v7709_v55  ;;  %v7951_v21 = vadd.f32 %v2358_v16, %v2080_v52 }
  0xd5   : > { %v7878_v60 = vpop.permute.xlu1 %951  ;;  %v1531_v29 = vsel %vm1525_vm11, %v1498_v28, %v1267_v6  ;;  %v7930_v28 = vld [vmem:[%s7517_s17 + $0xb0] sm:$0xff]  ;;  %v7933_v6 = vld [vmem:[%s7517_s17 + $0xe0] sm:$0xff]  ;;  %v2207_v17 = vadd.f32 %v2175_v24, %v7867_v34  ;;  %v1102_v55 = vor.u32 %v7835_v22, %v1097_v0  ;;  %v1106_v35 = vrot.slane %v1104_v19, 1 }
  0xd6   : > { %1163 = vrot.lane.b32.xlu0 %v7685_v53, %s11623_s29  ;;  %6662 = vmatprep.mubr.msk.bf16.mxu0 %vm1573_vm12, %v1531_v29  ;;  %v2038_v53 = vadd.f32 %v7895_v23, %v7847_v11  ;;  %11639 = vst [vmem:[#allocation23_spill] sm:$0xff] %v7930_v28  ;;  %v1223_v29 = vshll.u32 %v7906_v26, 16  ;;  %v11541_v59 = vrot.slane %v7930_v28, 1  ;;  %v1140_v52 = vrot.slane %v7778_v61, 1  ;;  %v7983_v0 = vld [vmem:[%s7517_s17 + $0x40] sm:$0x3] }
  0xd7   : > { %1165 = vrot.lane.b32.xlu1 %v7793_v10, %s11623_s29  ;;  %v2085_v3 = vsel %vm1607_vm3, %v2083_v57, %v11542_v2  ;;  %v2493_v19 = vadd.f32 1e-08, %v7951_v21  ;;  %v2318_v24 = vadd.f32 %v2286_v30, %v7867_v34  ;;  %v11546_v57 = vrot.slane %v7930_v28, 2 }
  0xd8   : > { %v1269_v40 = vpop.permute.xlu0 %1268  ;;  %v2182_v48 = vadd.f32 %v7912_v1, %v2038_v53  ;;  %v1225_v16 = vrot.slane %v1223_v29, 1  ;;  %v1259_v29 = vrot.slane %v7842_v46, 1  ;;  %v1922_v2 = vrot.slane %v7983_v0, 1 }
  0xd9   : > { %v7914_v15 = vpop.permute.xlu1 %953  ;;  %v1533_v5 = vsel %vm1525_vm11, %v1500_v36, %v1269_v40  ;;  %v1221_v36 = vor.u32 %v1220_v25, %v1216_v8  ;;  %v2487_v40 = vadd.f32 1e-08, %v7924_v50  ;;  %v2088_v25 = vrot.slane %v7927_v27, 2 }
  0xda   : > { %1200 = vrot.lane.b32.xlu0 %v7575_v51, %s11624_s2  ;;  %6663 = vmatmul.mubr.msk.bf16.gmra.mrb[4].mxu0 %vm1573_vm12, %v1533_v5  ;;  %v1941_v51 = vsel %vm975_vm0, %v1939_v43, %v11544_v7  ;;  %v7943_v62 = vadd.f32 %v2182_v48, %v7933_v6  ;;  %v1944_v43 = vrot.slane %v7927_v27, 1  ;;  %v2489_v5 = vadd.f32 1e-08, %v7949_v39 }
  0xdb   : > { %1202 = vrot.lane.b32.xlu1 %v7643_v33, %s11624_s2  ;;  %v2033_v53 = vadd.f32 %v1941_v51, %v7867_v34  ;;  %v2249_v13 = vadd.f32 %v2207_v17, %v1941_v51  ;;  %v1260_v34 = vrot.slane %v7906_v26, 1  ;;  %v1912_v17 = vrot.slane %v7973_v42, 1 }
  0xdc   : > { %11640 = vst [vmem:[#allocation24_spill] sm:$0xff] %v7943_v62  ;;  %v7945_v54 = vpop.permute.xlu0 %1032  ;;  %v7995_v8 = vsel %vm975_vm0, %v1944_v43, %v11541_v59  ;;  %v8007_v43 = vsel %vm750_vm1, %v1102_v55, %v1106_v35  ;;  %v8010_v59 = vsel %vm975_vm0, %v1140_v52, %v1141_v49  ;;  %7034 = vrcp.f32 %v2487_v40  ;;  %v8028_v52 = vld [vmem:[%s7517_s17 + $0xc0] sm:$0xff] }
  0xdd   : > { %v7953_v56 = vpop.permute.xlu1 %1034  ;;  %v2177_v30 = vadd.f32 %v2085_v3, %v2033_v53  ;;  %11642 = vst [vmem:[#allocation26_spill] sm:$0xff] %v8007_v43  ;;  %11643 = vst [vmem:[#allocation27_spill] sm:$0xff] %v8010_v59  ;;  %v2427_v26 = vmax.f32 %v7829_v63, 0.0  ;;  %7036 = vrcp.f32 %v2489_v5  ;;  %v2360_v53 = vadd.f32 %v2318_v24, %v1941_v51  ;;  %v7033_v51 = vpop.eup %7032  ;;  %v11648_v24 = vld [vmem:[#allocation12_spill] sm:$0xff] }
  0xde   : > { %1247 = vrot.lane.b32.xlu0 %v7786_v41, %s11625_s26  ;;  %v2035_v7 = vadd.f32 %v7995_v8, %v7927_v27  ;;  %v8024_v55 = vsel %vm750_vm1, %v1221_v36, %v1225_v16  ;;  %v2423_v35 = vmax.f32 %v7924_v50, 0.0  ;;  %7038 = vrcp.f32 %v2493_v19  ;;  %v11646_v16 = vld [vmem:[#allocation13_spill] sm:$0xff] }
  0xdf   : > { %1249 = vrot.lane.b32.xlu1 %v7796_v4, %s11625_s26  ;;  %11644 = vst [vmem:[#allocation28_spill] sm:$0xff] %v8024_v55  ;;  %v8033_v63 = vsel %vm1607_vm3, %v2088_v25, %v11546_v57  ;;  %v8038_v49 = vsel %vm975_vm0, %v1259_v29, %v1260_v34  ;;  %v2209_v36 = vadd.f32 %v2177_v30, %v7927_v27  ;;  %v11647_v50 = vrot.slane %v11646_v16, 1 }
  0xe0   : > { %v7985_v22 = vpop.permute.xlu0 %1069  ;;  %11645 = vst [vmem:[#allocation29_spill] sm:$0xff] %v8038_v49  ;;  %v2288_v40 = vadd.f32 %v2249_v13, %v2085_v3  ;;  %v1917_v19 = vrot.slane %v8019_v20, 1  ;;  %v11649_v25 = vrot.slane %v11648_v24, 1  ;;  %v2056_v29 = vrot.slane %v7973_v42, 2  ;;  %v1785_v13 = vld [vmem:[%s7517_s17 + $0x58] sm:$0x3] }
  0xe1   : > { %v7990_v48 = vpop.permute.xlu1 %1071  ;;  %v1913_v5 = vsel %vm975_vm0, %v11647_v50, %v1912_v17  ;;  %v2066_v34 = vrot.slane %v7983_v0, 2  ;;  %v8055_v45 = vmin.f32 %v2427_v26, 1.0  ;;  %v8057_v17 = vadd.f32 %v2360_v53, %v2085_v3  ;;  %v8076_v53 = vld [vmem:[%s7517_s17 + $0x70] sm:$0x3] }
  0xe2   : > { %1282 = vrot.lane.b32.xlu0 %v7793_v10, %s11626_s0  ;;  %v8050_v57 = vsel %vm975_vm0, %v11649_v25, %v1922_v2  ;;  %v1949_v50 = vrot.slane %v8028_v52, 1  ;;  %v2179_v38 = vadd.f32 %v8033_v63, %v2035_v7  ;;  %v8063_v62 = vmul.f32 9.0, %v7033_v51 }
  0xe3   : > { %967 = vrot.lane.b32.xlu1 %v7786_v41, %s11619_s23  ;;  %v8065_v2 = vmin.f32 %v2423_v35, 1.0  ;;  %v2093_v0 = vrot.slane %v8028_v52, 2  ;;  %v2022_v26 = vadd.f32 %v1913_v5, %v11646_v16  ;;  %v2026_v7 = vadd.f32 %v8050_v57, %v11648_v24  ;;  %v11651_v35 = vld [vmem:[#allocation15_spill] sm:$0xff] }
  0xe4   : > { %v8013_v44 = vpop.permute.xlu0 %1116  ;;  %v1927_v51 = vrot.slane %v1785_v13, 1  ;;  %v11652_v25 = vrot.slane %v11651_v35, 1  ;;  %v2061_v5 = vrot.slane %v8019_v20, 2  ;;  %v11654_v55 = vrot.slane %v11648_v24, 2 }
  0xe5   : > { %v8021_v41 = vpop.permute.xlu1 %1118  ;;  %11650 = vst [vmem:[#allocation13_spill] sm:$0xff] %v8065_v2  ;;  %v8095_v59 = vadd.f32 1e-08, %v8057_v17  ;;  %v11655_v23 = vrot.slane %v7847_v11, 1  ;;  %v2251_v43 = vadd.f32 %v2209_v36, %v7995_v8  ;;  %v11657_v2 = vld [vmem:[#allocation14_spill] sm:$0xff]  ;;  %vm3986_vm1 = vcmask 1044484  }
  0xe6   : > { %1284 = vrot.lane.b32.xlu0 %v7800_v12, %s11626_s0  ;;  %v8083_v42 = vsel %vm975_vm0, %v11652_v25, %v1917_v19  ;;  %v8092_v46 = vsel %vm1607_vm3, %v11654_v55, %v2066_v34  ;;  %v8105_v20 = vpop.eup %7034  ;;  %v11656_v55 = vrot.slane %v7847_v11, 2 }
  0xe7   : > { %969 = vrot.lane.b32.xlu1 %v7796_v4, %s11619_s23  ;;  %v8100_v19 = vsel %vm975_vm0, %v1949_v50, %v11655_v23  ;;  %v1932_v23 = vrot.slane %v8076_v53, 1  ;;  %v2071_v50 = vrot.slane %v1785_v13, 2  ;;  %v8117_v61 = vpop.eup %7036  ;;  %v2170_v11 = vadd.f32 %v8092_v46, %v2026_v7 }
  0xe8   : > { %v1152_v30 = vpop.permute.xlu0 %1151  ;;  %v8113_v34 = vsel %vm1607_vm3, %v2093_v0, %v11656_v55  ;;  %v11658_v0 = vrot.slane %v11657_v2, 1  ;;  %v8130_v36 = vpop.eup %7038  ;;  %7040 = vrcp.f32 %v8095_v59 }
  0xe9   : > { %v8061_v49 = vpop.permute.xlu1 %1153  ;;  %11659 = vst [vmem:[#allocation12_spill] sm:$0xff] %v8130_v36 }
  0xea   : > { %1048 = vrot.lane.b32.xlu0 %v7793_v10, %s11620_s19  ;;  %v11653_v10 = vrot.slane %v11646_v16, 2  ;;  %v2211_v16 = vadd.f32 %v2179_v38, %v8028_v52  ;;  %v7100_v38 = vld [vmem:[%s7348_s18 + $0x30] sm:$0xff]   ;;  %v8128_v55 = vsel %vm975_vm0, %v11658_v0, %v1927_v51 }
  0xeb   : > { %1050 = vrot.lane.b32.xlu1 %v7800_v12, %s11620_s19  ;;  %v1304_v28 = vsel %vm1294_vm4, %v7100_v38, %v7878_v60  ;;  %v2320_v60 = vadd.f32 %v2288_v40, %v7927_v27  ;;  %v11661_v40 = vld [vmem:[#allocation16_spill] sm:$0xff] }
  0xec   : > { %v2057_v3 = vsel %vm1607_vm3, %v11653_v10, %v2056_v29  ;;  %v1189_v1 = vpop.permute.xlu0 %1188  ;;  %v2024_v29 = vadd.f32 %v8083_v42, %v11651_v35  ;;  %v8108_v10 = vld [vmem:[%s7517_s17 + $0xd8] sm:$0xff]  ;;  %v1337_v13 = vsel %vm1327_vm5, %v1304_v28, %v7945_v54  ;;  %v2253_v38 = vadd.f32 %v2211_v16, %v8100_v19 }
  0xed   : > { %v1191_v25 = vpop.permute.xlu1 %1190  ;;  %v2166_v14 = vadd.f32 %v2057_v3, %v2022_v26  ;;  %v2028_v26 = vadd.f32 %v8128_v55, %v11657_v2  ;;  %v1370_v7 = vsel %vm1360_vm6, %v1337_v13, %v7985_v22  ;;  %v1954_v28 = vrot.slane %v8108_v10, 1  ;;  %v7101_v16 = vld [vmem:[%s7348_s18 + $0x3c] sm:$0xff]  }
  0xee   : > { %1085 = vrot.lane.b32.xlu0 %v7643_v33, %s11621_s22  ;;  %v11660_v33 = vrot.slane %v11651_v35, 2  ;;  %v1403_v0 = vsel %vm1393_vm7, %v1370_v7, %v8013_v44  ;;  %v11662_v36 = vrot.slane %v11661_v40, 1  ;;  %v2076_v22 = vrot.slane %v8076_v53, 2 }
  0xef   : > { %1087 = vrot.lane.b32.xlu1 %v7673_v47, %s11621_s22  ;;  %v1436_v13 = vsel %vm1426_vm8, %v1403_v0, %v1152_v30  ;;  %v2198_v44 = vadd.f32 %v2166_v14, %v11651_v35  ;;  %v2290_v53 = vadd.f32 %v2251_v43, %v8033_v63 }
  0xf0   : > { %v2062_v3 = vsel %vm1607_vm3, %v11660_v33, %v2061_v5  ;;  %v1236_v51 = vpop.permute.xlu0 %1235  ;;  %v8151_v5 = vsel %vm975_vm0, %v11662_v36, %v1932_v23  ;;  %v11663_v33 = vrot.slane %v11657_v2, 2  ;;  %v2202_v23 = vadd.f32 %v2170_v11, %v11657_v2 }
  0xf1   : > { %v2168_v54 = vadd.f32 %v2062_v3, %v2024_v29  ;;  %v1238_v27 = vpop.permute.xlu1 %1237  ;;  %v1306_v29 = vsel %vm1294_vm4, %v7101_v16, %v7914_v15  ;;  %v2292_v11 = vadd.f32 %v2253_v38, %v8113_v34  ;;  %v2240_v38 = vadd.f32 %v2198_v44, %v8083_v42 }
  0xf2   : > { %v8156_v9 = vsel %vm1607_vm3, %v11663_v33, %v2071_v50  ;;  %1132 = vrot.lane.b32.xlu0 %v7796_v4, %s11622_s30  ;;  %v1339_v36 = vsel %vm1327_vm5, %v1306_v29, %v7953_v56  ;;  %v1469_v50 = vsel %vm1459_vm9, %v1436_v13, %v1189_v1  ;;  %v2030_v56 = vadd.f32 %v8151_v5, %v11661_v40 }
  0xf3   : > { %1134 = vrot.lane.b32.xlu1 %v7803_v32, %s11622_s30  ;;  %v2172_v15 = vadd.f32 %v8156_v9, %v2028_v26  ;;  %v1372_v30 = vsel %vm1360_vm6, %v1339_v36, %v7990_v48  ;;  %v1502_v4 = vsel %vm1492_vm10, %v1469_v50, %v1236_v51  ;;  %v2200_v26 = vadd.f32 %v2168_v54, %v11648_v24  ;;  %v1791_v54 = vld [vmem:[%s7517_s17 + $0x88] sm:$0x3] }
  0xf4   : > { %v1271_v14 = vpop.permute.xlu0 %1270  ;;  %v1405_v1 = vsel %vm1393_vm7, %v1372_v30, %v8021_v41  ;;  %v11664_v48 = vrot.slane %v11661_v40, 2  ;;  %v1955_v41 = vrot.slane %v7933_v6, 1  ;;  %v2244_v0 = vadd.f32 %v2202_v23, %v8128_v55 }
  0xf5   : > { %v8182_v35 = vpop.permute.xlu1 %955  ;;  %v1535_v43 = vsel %vm1525_vm11, %v1502_v4, %v1271_v14  ;;  %v1438_v51 = vsel %vm1426_vm8, %v1405_v1, %v8061_v49  ;;  %v2362_v49 = vadd.f32 %v2320_v60, %v7995_v8  ;;  %v2322_v42 = vadd.f32 %v2290_v53, %v8028_v52  ;;  %v1794_v60 = vld [vmem:[%s7517_s17 + $0xa0] sm:$0x3] }
  0xf6   : > { %v8189_v7 = vsel %vm1607_vm3, %v11664_v48, %v2076_v22  ;;  %1167 = vrot.lane.b32.xlu0 %v7800_v12, %s11623_s29  ;;  %6666 = vmatprep.mubr.msk.bf16.mxu0 %vm1573_vm12, %v1535_v43  ;;  %v1471_v33 = vsel %vm1459_vm9, %v1438_v51, %v1191_v25  ;;  %v2204_v12 = vadd.f32 %v2172_v15, %v11661_v40  ;;  %v2098_v29 = vrot.slane %v8108_v10, 2 }
  0xf7   : > { %1169 = vrot.lane.b32.xlu1 %v7806_v18, %s11623_s29  ;;  %v1504_v22 = vsel %vm1492_vm10, %v1471_v33, %v1238_v27  ;;  %v2174_v13 = vadd.f32 %v8189_v7, %v2030_v56  ;;  %v2324_v23 = vadd.f32 %v2292_v11, %v8108_v10  ;;  %v2242_v59 = vadd.f32 %v2200_v26, %v8050_v57 }
  0xf8   : > { %v1273_v16 = vpop.permute.xlu0 %1272  ;;  %v1937_v8 = vrot.slane %v1791_v54, 1  ;;  %v8222_v27 = vsel %vm975_vm0, %v1954_v28, %v1955_v41  ;;  %v2099_v36 = vrot.slane %v7933_v6, 2  ;;  %v2279_v50 = vadd.f32 %v2240_v38, %v2062_v3 }
  0xf9   : > { %v8210_v44 = vpop.permute.xlu1 %957  ;;  %v1537_v25 = vsel %vm1525_vm11, %v1504_v22, %v1273_v16  ;;  %v2283_v53 = vadd.f32 %v2244_v0, %v8156_v9  ;;  %v8230_v15 = vmul.f32 %v8063_v62, %v8055_v45  ;;  %v8237_v4 = vadd.f32 %v2362_v49, %v8033_v63 }
  0xfa   : > { %1204 = vrot.lane.b32.xlu0 %v7673_v47, %s11624_s2  ;;  %6667 = vmatmul.mubr.msk.bf16.gmra.mrb[8].mxu0 %vm1573_vm12, %v1537_v25  ;;  %v11665_v47 = vmax.f32 %v7949_v39, 0.0  ;;  %v2246_v28 = vadd.f32 %v2204_v12, %v8151_v5  ;;  %v11667_v3 = vmax.f32 %v7951_v21, 0.0  ;;  %v2364_v56 = vadd.f32 %v2322_v42, %v8100_v19  ;;  %v1797_v25 = vld [vmem:[%s7517_s17 + $0xb8] sm:$0x3] }
  0xfb   : > { %1206 = vrot.lane.b32.xlu1 %v7692_v58, %s11624_s2  ;;  %v2206_v62 = vadd.f32 %v2174_v13, %v7773_v31  ;;  %v1942_v1 = vrot.slane %v1794_v60, 1  ;;  %v2366_v39 = vadd.f32 %v2324_v23, %v8222_v27  ;;  %v2281_v63 = vadd.f32 %v2242_v59, %v8092_v46 }
  0xfc   : > { %v8234_v30 = vmin.f32 %v11665_v47, 1.0  ;;  %v8240_v14 = vpop.permute.xlu0 %1036  ;;  %v8244_v11 = vmin.f32 %v11667_v3, 1.0  ;;  %v11668_v26 = vrot.slane %v7773_v31, 1  ;;  %v2081_v51 = vrot.slane %v1791_v54, 2  ;;  %v11672_v47 = vld [vmem:[#allocation13_spill] sm:$0xff] }
  0xfd   : > { %v8248_v43 = vpop.permute.xlu1 %1038  ;;  %v2551_v21 = vmul.f32 9.0, %v8105_v20  ;;  %v8261_v38 = vsel %vm1607_vm3, %v2098_v29, %v2099_v36  ;;  %v2311_v0 = vadd.f32 %v2279_v50, %v11648_v24  ;;  %v2315_v33 = vadd.f32 %v2283_v53, %v11661_v40  ;;  %v11669_v24 = vld [vmem:[#allocation20_spill] sm:$0xff] }
  0xfe   : > { %11666 = vst [vmem:[#allocation15_spill] sm:$0xff] %v8234_v30  ;;  %v1938_v48 = vsel %vm975_vm0, %v11668_v26, %v1937_v8  ;;  %1251 = vrot.lane.b32.xlu0 %v7803_v32, %s11625_s26  ;;  %v2553_v54 = vmul.f32 9.0, %v8117_v61  ;;  %v2431_v49 = vmax.f32 %v8057_v17, 0.0  ;;  %v2497_v12 = vadd.f32 1e-08, %v8237_v4  ;;  %v7041_v61 = vpop.eup %7040 }
  0xff   : > { %1253 = vrot.lane.b32.xlu1 %v7810_v37, %s11625_s26  ;;  %v2285_v20 = vadd.f32 %v2246_v28, %v8189_v7  ;;  %v8274_v16 = vadd.f32 %v2364_v56, %v8113_v34  ;;  %v2248_v42 = vadd.f32 %v2206_v62, %v1938_v48  ;;  %v11670_v29 = vrot.slane %v11669_v24, 1 }
 0x100   : > { %v8271_v22 = vpop.permute.xlu0 %1073  ;;  %v2086_v13 = vrot.slane %v1794_v60, 2  ;;  %v8285_v17 = vadd.f32 %v2366_v39, %v8261_v38  ;;  %v2313_v59 = vadd.f32 %v2281_v63, %v11657_v2  ;;  %v2032_v8 = vadd.f32 %v1938_v48, %v7773_v31  ;;  %v11673_v2 = vld [vmem:[#allocation12_spill] sm:$0xff] }
 0x101   : > { %v8279_v40 = vsel %vm975_vm0, %v11670_v29, %v1942_v1  ;;  %v8282_v23 = vpop.permute.xlu1 %1075  ;;  %v11671_v50 = vrot.slane %v7773_v31, 2  ;;  %v8295_v60 = vmul.f32 %v2551_v21, %v11672_v47  ;;  %v2037_v28 = vadd.f32 %v8100_v19, %v8028_v52 }
 0x102   : > { %1286 = vrot.lane.b32.xlu0 %v7806_v18, %s11626_s0  ;;  %v2353_v3 = vadd.f32 %v2311_v0, %v8050_v57  ;;  %v2357_v56 = vadd.f32 %v2315_v33, %v8151_v5  ;;  %v2557_v62 = vmul.f32 9.0, %v11673_v2  ;;  %v2317_v1 = vadd.f32 %v2285_v20, %v7773_v31  ;;  %v11676_v33 = vld [vmem:[#allocation25_spill] sm:$0xff] }
 0x103   : > { %v2082_v53 = vsel %vm1607_vm3, %v11671_v50, %v2081_v51  ;;  %971 = vrot.lane.b32.xlu1 %v7803_v32, %s11619_s23  ;;  %v2034_v39 = vadd.f32 %v8279_v40, %v11669_v24  ;;  %v1947_v63 = vrot.slane %v1797_v25, 1  ;;  %v8309_v51 = vmin.f32 %v2431_v49, 1.0 }
 0x104   : > { %v8307_v26 = vpop.permute.xlu0 %1120  ;;  %v2499_v52 = vadd.f32 1e-08, %v8274_v16  ;;  %v2287_v57 = vadd.f32 %v2248_v42, %v2082_v53  ;;  %v11675_v19 = vrot.slane %v11669_v24, 2  ;;  %7042 = vrcp.f32 %v2497_v12 }
 0x105   : > { %11674 = vst [vmem:[#allocation14_spill] sm:$0xff] %v8309_v51  ;;  %v8317_v32 = vpop.permute.xlu1 %1122  ;;  %v2501_v31 = vadd.f32 1e-08, %v8285_v17  ;;  %v2355_v21 = vadd.f32 %v2313_v59, %v8128_v55  ;;  %v2176_v0 = vadd.f32 %v2082_v53, %v2032_v8  ;;  %v2559_v49 = vmul.f32 9.0, %v7041_v61  ;;  %v11677_v55 = vld [vmem:[#allocation23_spill] sm:$0xff] }
 0x106   : > { %v8315_v5 = vsel %vm1607_vm3, %v11675_v19, %v2086_v13  ;;  %1288 = vrot.lane.b32.xlu0 %v11676_v33, %s11626_s0  ;;  %v2181_v20 = vadd.f32 %v8113_v34, %v2037_v28  ;;  %v8325_v42 = vadd.f32 %v2353_v3, %v8092_v46  ;;  %v8328_v29 = vadd.f32 %v2357_v56, %v8189_v7 }
 0x107   : > { %973 = vrot.lane.b32.xlu1 %v7810_v37, %s11619_s23  ;;  %v2359_v12 = vadd.f32 %v2317_v1, %v1938_v48  ;;  %v2178_v13 = vadd.f32 %v8315_v5, %v2034_v39  ;;  %v11678_v59 = vrot.slane %v11677_v55, 1  ;;  %v2091_v61 = vrot.slane %v1797_v25, 2  ;;  %s7198_s23 = smov 112  }
 0x108   : > { %v1156_v50 = vpop.permute.xlu0 %1155  ;;  %7044 = vrcp.f32 %v2499_v52  ;;  %v2039_v46 = vadd.f32 %v8222_v27, %v8108_v10  ;;  %v2319_v34 = vadd.f32 %v2287_v57, %v11669_v24  ;;  %v2433_v48 = vmax.f32 %v8237_v4, 0.0 }
 0x109   : > { %v8336_v8 = vsel %vm975_vm0, %v11678_v59, %v1947_v63  ;;  %v8343_v28 = vpop.permute.xlu1 %1157  ;;  %7046 = vrcp.f32 %v2501_v31  ;;  %v8347_v3 = vadd.f32 %v2355_v21, %v8156_v9  ;;  %v2208_v25 = vadd.f32 %v2176_v0, %v11669_v24 }
 0x10a   : > { %v2036_v7 = vadd.f32 %v8336_v8, %v11677_v55  ;;  %1052 = vrot.lane.b32.xlu0 %v7806_v18, %s11620_s19  ;;  %v8353_v56 = vmul.f32 %v2553_v54, %v8234_v30  ;;  %v2213_v2 = vadd.f32 %v2181_v20, %v8108_v10  ;;  %v2435_v1 = vmax.f32 %v8274_v16, 0.0  ;;  %v7102_v20 = vld [vmem:[%s7348_s18 + $0x48] sm:$0xff]  }
 0x10b   : > { %v2488_v39 = vadd.f32 1e-08, %v8325_v42  ;;  %1054 = vrot.lane.b32.xlu1 %v11676_v33, %s11620_s19  ;;  %v2492_v9 = vadd.f32 1e-08, %v8328_v29  ;;  %v8361_v4 = vadd.f32 %v2359_v12, %v2082_v53  ;;  %v2210_v24 = vadd.f32 %v2178_v13, %v11677_v55  ;;  %s7193_s19 = smov 48  }
 0x10c   : > { %v11679_v18 = vrot.slane %v11677_v55, 2  ;;  %v1193_v10 = vpop.permute.xlu0 %1192  ;;  %v8370_v16 = vmul.f32 %v2557_v62, %v8244_v11  ;;  %v2183_v63 = vadd.f32 %v8261_v38, %v2039_v46  ;;  %v2361_v52 = vadd.f32 %v2319_v34, %v8279_v40 }
 0x10d   : > { %v1195_v53 = vpop.permute.xlu1 %1194  ;;  %v8376_v19 = vmul.f32 %v2559_v49, %v8309_v51  ;;  %v8378_v31 = vmin.f32 %v2433_v48, 1.0  ;;  %v2490_v21 = vadd.f32 1e-08, %v8347_v3  ;;  %v2250_v0 = vadd.f32 %v2208_v25, %v8279_v40  ;;  %v8395_v40 = vld [vmem:[%s7517_s17 + $0xf0] sm:$0xff] }
 0x10e   : > { %v8367_v54 = vsel %vm1607_vm3, %v11679_v18, %v2091_v61  ;;  %v1308_v62 = vsel %vm1294_vm4, %v7102_v20, %v8182_v35  ;;  %1089 = vrot.lane.b32.xlu0 %v7692_v58, %s11621_s22  ;;  %v8387_v12 = vmin.f32 %v2435_v1, 1.0  ;;  %v2255_v13 = vadd.f32 %v2213_v2, %v8222_v27  ;;  %v7043_v49 = vpop.eup %7042  ;;  %v11682_v61 = vld [vmem:[#allocation17_spill] sm:$0xff] }
 0x10f   : > { %v2180_v57 = vadd.f32 %v8367_v54, %v2036_v7  ;;  %11680 = vst [vmem:[#allocation16_spill] sm:$0xff] %v8378_v31  ;;  %7048 = vrcp.f32 %v2488_v39  ;;  %v1341_v59 = vsel %vm1327_vm5, %v1308_v62, %v8240_v14  ;;  %1091 = vrot.lane.b32.xlu1 %v11682_v61, %s11621_s22  ;;  %v2494_v35 = vadd.f32 1e-08, %v8361_v4  ;;  %v11683_v7 = vld [vmem:[#allocation19_spill] sm:$0xff] }
 0x110   : > { %11681 = vst [vmem:[#allocation20_spill] sm:$0xff] %v8387_v12  ;;  %7050 = vrcp.f32 %v2492_v9  ;;  %v2252_v58 = vadd.f32 %v2210_v24, %v8336_v8  ;;  %v1374_v46 = vsel %vm1360_vm6, %v1341_v59, %v8271_v22  ;;  %v1240_v27 = vpop.permute.xlu0 %1239  ;;  %v8402_v34 = vadd.f32 %v2183_v63, %v8395_v40  ;;  %v7103_v22 = vld [vmem:[%s7348_s18 + $0x54] sm:$0xff]  }
 0x111   : > { %v8405_v14 = vadd.f32 %v2361_v52, %v8315_v5  ;;  %v2212_v48 = vadd.f32 %v2180_v57, %v11683_v7  ;;  %v1407_v25 = vsel %vm1393_vm7, %v1374_v46, %v8307_v26  ;;  %v1242_v2 = vpop.permute.xlu1 %1241  ;;  %v2437_v1 = vmax.f32 %v8285_v17, 0.0  ;;  %v11684_v57 = vld [vmem:[#allocation26_spill] sm:$0xff] }
 0x112   : > { %7052 = vrcp.f32 %v2490_v21  ;;  %v2289_v39 = vadd.f32 %v2250_v0, %v8315_v5  ;;  %v7045_v9 = vpop.eup %7044  ;;  %v1310_v24 = vsel %vm1294_vm4, %v7103_v22, %v8210_v44  ;;  %v1440_v18 = vsel %vm1426_vm8, %v1407_v25, %v1156_v50  ;;  %1136 = vrot.lane.b32.xlu0 %v7810_v37, %s11622_s30  ;;  %v11685_v0 = vld [vmem:[#allocation21_spill] sm:$0xff]  ;;  %v11688_v22 = vld [vmem:[#allocation22_spill] sm:$0xff] }
 0x113   : > { %v2561_v63 = vmul.f32 9.0, %v7043_v49  ;;  %v8419_v52 = vadd.f32 %v2255_v13, %v8261_v38  ;;  %v7047_v26 = vpop.eup %7046  ;;  %v1343_v17 = vsel %vm1327_vm5, %v1310_v24, %v8248_v43  ;;  %v1473_v5 = vsel %vm1459_vm9, %v1440_v18, %v1193_v10  ;;  %1138 = vrot.lane.b32.xlu1 %v11684_v57, %s11622_s30  ;;  %s7197_s30 = smov 80  }
 0x114   : > { %7054 = vrcp.f32 %v2494_v35  ;;  %v2291_v44 = vadd.f32 %v2252_v58, %v8367_v54  ;;  %v1376_v50 = vsel %vm1360_vm6, %v1343_v17, %v8282_v23  ;;  %v1506_v37 = vsel %vm1492_vm10, %v1473_v5, %v1240_v27  ;;  %v1275_v38 = vpop.permute.xlu0 %1274  ;;  %v8449_v58 = vld [vmem:[%s7517_s17 + $0xe8] sm:$0x3]  ;;  %v11687_v27 = vld [vmem:[#allocation27_spill] sm:$0xff] }
 0x115   : > { %v2496_v21 = vadd.f32 1e-08, %v8405_v14  ;;  %v2254_v20 = vadd.f32 %v2212_v48, %v11685_v0  ;;  %v1409_v43 = vsel %vm1393_vm7, %v1376_v50, %v8317_v32  ;;  %v8434_v10 = vpop.permute.xlu1 %959  ;;  %v1539_v62 = vsel %vm1525_vm11, %v1506_v37, %v1275_v38  ;;  %v8458_v48 = vld [vmem:[%s7517_s17 + $0xf8] sm:$0xff] }
 0x116   : > { %v8437_v13 = vmin.f32 %v2437_v1, 1.0  ;;  %v2321_v23 = vadd.f32 %v2289_v39, %v11677_v55  ;;  %v1442_v49 = vsel %vm1426_vm8, %v1409_v43, %v8343_v28  ;;  %1171 = vrot.lane.b32.xlu0 %v11676_v33, %s11623_s29  ;;  %6670 = vmatprep.mubr.msk.bf16.mxu0 %vm1573_vm12, %v1539_v62  ;;  %v2563_v59 = vmul.f32 9.0, %v7045_v9 }
 0x117   : > { %v8446_v32 = vmul.f32 %v2561_v63, %v8378_v31  ;;  %v2565_v35 = vmul.f32 9.0, %v7047_v26  ;;  %v1475_v46 = vsel %vm1459_vm9, %v1442_v49, %v1195_v53  ;;  %1173 = vrot.lane.b32.xlu1 %v11687_v27, %s11623_s29  ;;  %v2424_v55 = vmax.f32 %v8325_v42, 0.0  ;;  %s7191_s29 = smov 16  }
 0x118   : > { %11686 = vst [vmem:[#allocation13_spill] sm:$0xff] %v8437_v13  ;;  %v2426_v28 = vmax.f32 %v8347_v3, 0.0  ;;  %v2323_v33 = vadd.f32 %v2291_v44, %v11683_v7  ;;  %v1508_v1 = vsel %vm1492_vm10, %v1475_v46, %v1242_v2  ;;  %v1277_v39 = vpop.permute.xlu0 %1276  ;;  %v2428_v9 = vmax.f32 %v8328_v29, 0.0 }
 0x119   : > { %v7049_v25 = vpop.eup %7048  ;;  %7056 = vrcp.f32 %v2496_v21  ;;  %v2293_v53 = vadd.f32 %v2254_v20, %v11688_v22  ;;  %v8463_v18 = vpop.permute.xlu1 %961  ;;  %v1541_v42 = vsel %vm1525_vm11, %v1508_v1, %v1277_v39  ;;  %v2430_v3 = vmax.f32 %v8361_v4, 0.0  ;;  %v8519_v1 = vld [vmem:[%s7517_s17 + $0x108] sm:$0xff]  ;;  %v8522_v39 = vld [vmem:[%s7517_s17 + $0x110] sm:$0xff] }
 0x11a   : > { %v7051_v24 = vpop.eup %7050  ;;  %v2363_v7 = vadd.f32 %v2321_v23, %v8336_v8  ;;  %v1957_v63 = vrot.slane %v8449_v58, 1  ;;  %1208 = vrot.lane.b32.xlu0 %v11682_v61, %s11624_s2  ;;  %6671 = vmatmul.mubr.msk.bf16.gmra.mrb[12].mxu0 %vm1573_vm12, %v1541_v42  ;;  %v8473_v29 = vmul.f32 %v2563_v59, %v8387_v12  ;;  %v8476_v2 = vmul.f32 %v2565_v35, %v8437_v13  ;;  %v11689_v8 = vld [vmem:[#allocation18_spill] sm:$0xff]  ;;  %v7104_v12 = vld [vmem:[%s7348_s18 + $0x60] sm:$0xff]  }
 0x11b   : > { %v1959_v26 = vrot.slane %v8395_v40, 1  ;;  %v11567_v17 = vrot.slane %v8458_v48, 1  ;;  %1210 = vrot.lane.b32.xlu1 %v11689_v8, %s11624_s2  ;;  %v8482_v5 = vmin.f32 %v2424_v55, 1.0  ;;  %v8484_v44 = vmin.f32 %v2426_v28, 1.0  ;;  %v8540_v8 = vld [vmem:[%s7517_s17 + $0x120] sm:$0xff]  ;;  %s7194_s2 = smov 96  }
 0x11c   : > { %v7053_v4 = vpop.eup %7052  ;;  %v2432_v61 = vmax.f32 %v8405_v14, 0.0  ;;  %v2365_v50 = vadd.f32 %v2323_v33, %v11685_v0  ;;  %v8488_v37 = vpop.permute.xlu0 %1040  ;;  %v2552_v38 = vmul.f32 9.0, %v7049_v25  ;;  %v8490_v21 = vmin.f32 %v2428_v9, 1.0 }
 0x11d   : > { %11690 = vst [vmem:[#allocation12_spill] sm:$0xff] %v8482_v5  ;;  %11691 = vst [vmem:[#allocation25_spill] sm:$0xff] %v8484_v44  ;;  %v2556_v20 = vmul.f32 9.0, %v7051_v24  ;;  %v2325_v43 = vadd.f32 %v2293_v53, %v7933_v6  ;;  %v8493_v23 = vpop.permute.xlu1 %1042  ;;  %v8495_v49 = vmin.f32 %v2430_v3, 1.0  ;;  %v2402_v59 = vadd.f32 %v2363_v7, %v8367_v54  ;;  %v11694_v54 = vld [vmem:[#allocation28_spill] sm:$0xff] }
 0x11e   : > { %11692 = vst [vmem:[#allocation23_spill] sm:$0xff] %v8490_v21  ;;  %v7055_v62 = vpop.eup %7054  ;;  %v1958_v14 = vsel %vm975_vm0, %v1955_v41, %v1957_v63  ;;  %v2101_v0 = vrot.slane %v8449_v58, 2  ;;  %1255 = vrot.lane.b32.xlu0 %v11684_v57, %s11625_s26  ;;  %v2554_v35 = vmul.f32 9.0, %v7053_v4  ;;  %v8507_v46 = vsel %vm975_vm0, %v1959_v26, %v11567_v17  ;;  %v11695_v58 = vld [vmem:[#allocation24_spill] sm:$0xff] }
 0x11f   : > { %11693 = vst [vmem:[#allocation17_spill] sm:$0xff] %v8495_v49  ;;  %v2103_v55 = vrot.slane %v8395_v40, 2  ;;  %v11566_v28 = vrot.slane %v8458_v48, 2  ;;  %1257 = vrot.lane.b32.xlu1 %v11694_v54, %s11625_s26  ;;  %v8513_v33 = vmin.f32 %v2432_v61, 1.0  ;;  %v2404_v41 = vadd.f32 %v2365_v50, %v11688_v22  ;;  %v8543_v61 = vld [vmem:[%s7517_s17 + $0x128] sm:$0xff] }
 0x120   : > { %v2040_v57 = vadd.f32 %v1958_v14, %v7933_v6  ;;  %v2256_v25 = vadd.f32 %v11695_v58, %v1958_v14  ;;  %v8524_v9 = vpop.permute.xlu0 %1077  ;;  %v8527_v53 = vmul.f32 %v2552_v38, %v8482_v5  ;;  %v8530_v24 = vmul.f32 %v2556_v20, %v8490_v21  ;;  %v8623_v5 = vld [vmem:[%s7517_s17 + $0x168] sm:$0xff] }
 0x121   : > { %v2558_v42 = vmul.f32 9.0, %v7055_v62  ;;  %v2367_v3 = vadd.f32 %v2325_v43, %v1958_v14  ;;  %v8532_v22 = vpop.permute.xlu1 %1079  ;;  %v2434_v7 = vmax.f32 %v2402_v59, 0.0  ;;  %v2498_v63 = vadd.f32 1e-08, %v2402_v59  ;;  %v11696_v43 = vld [vmem:[#allocation29_spill] sm:$0xff] }
 0x122   : > { %v2102_v26 = vsel %vm1607_vm3, %v2099_v36, %v2101_v0  ;;  %v2041_v4 = vadd.f32 %v8507_v46, %v8395_v40  ;;  %1290 = vrot.lane.b32.xlu0 %v11687_v27, %s11626_s0  ;;  %v8548_v38 = vmul.f32 %v2554_v35, %v8484_v44  ;;  %v8553_v6 = vsel %vm1607_vm3, %v2103_v55, %v11566_v28  ;;  %v8573_v28 = vld [vmem:[%s7517_s17 + $0x150] sm:$0xff] }
 0x123   : > { %v7057_v50 = vpop.eup %7056  ;;  %v1964_v36 = vrot.slane %v8519_v1, 1  ;;  %v11568_v20 = vrot.slane %v8522_v39, 1  ;;  %1292 = vrot.lane.b32.xlu1 %v11696_v43, %s11626_s0  ;;  %v2436_v62 = vmax.f32 %v2404_v41, 0.0  ;;  %v2500_v59 = vadd.f32 1e-08, %v2404_v41  ;;  %v8576_v41 = vld [vmem:[%s7517_s17 + $0x158] sm:$0xff] }
 0x124   : > { %v8559_v14 = vadd.f32 %v2102_v26, %v2040_v57  ;;  %v8561_v27 = vadd.f32 %v2256_v25, %v2102_v26  ;;  %v8563_v0 = vpop.permute.xlu0 %1124  ;;  %v8566_v35 = vmul.f32 %v2558_v42, %v8495_v49  ;;  %v8568_v55 = vadd.f32 %v2367_v3, %v2102_v26  ;;  %11698 = vst [vmem:[#allocation26_spill] sm:$0xff] %v8576_v41 }
 0x125   : > { %v1969_v54 = vrot.slane %v8540_v8, 1  ;;  %v11572_v58 = vrot.slane %v8543_v61, 1  ;;  %v8578_v57 = vpop.permute.xlu1 %1126  ;;  %v8580_v25 = vmul.f32 9.0, %v7057_v50  ;;  %v8582_v43 = vmin.f32 %v2434_v7, 1.0 }
 0x126   : > { %11697 = vst [vmem:[#allocation19_spill] sm:$0xff] %v8561_v27  ;;  %7058 = vrcp.f32 %v2498_v63  ;;  %v2185_v42 = vadd.f32 %v8553_v6, %v2041_v4  ;;  %2617 = vperm.xlu0 %6777, %v8295_v60   ;;  %v2326_v3 = vadd.f32 %v8419_v52, %v8395_v40  ;;  %v8591_v26 = vsel %vm975_vm0, %v1964_v36, %v11568_v20  ;;  %v8599_v60 = vld [vmem:[%s7517_s17 + $0x138] sm:$0xff]  ;;  %v8602_v63 = vld [vmem:[%s7517_s17 + $0x140] sm:$0xff] }
 0x127   : > { %v2108_v17 = vrot.slane %v8519_v1, 2  ;;  %2637 = vperm.xlu1 %6778, %v8230_v15   ;;  %v8596_v7 = vmin.f32 %v2436_v62, 1.0  ;;  %7060 = vrcp.f32 %v2500_v59  ;;  %v1979_v40 = vrot.slane %v8573_v28, 1 }
 0x128   : > { %v1160_v4 = vpop.permute.xlu0 %1159  ;;  %v2502_v36 = vadd.f32 1e-08, %v8568_v55  ;;  %v8610_v15 = vsel %vm975_vm0, %v1969_v54, %v11572_v58  ;;  %v2113_v62 = vrot.slane %v8540_v8, 2  ;;  %v2217_v44 = vadd.f32 %v2185_v42, %v8519_v1  ;;  %v8626_v54 = vld [vmem:[%s7517_s17 + $0x170] sm:$0xff] }
 0x129   : > { %v8614_v20 = vpop.permute.xlu1 %1161  ;;  %v2257_v52 = vadd.f32 %v8402_v34, %v8507_v46  ;;  %v2043_v49 = vadd.f32 %v8591_v26, %v8519_v1  ;;  %v2368_v58 = vadd.f32 %v2326_v3, %v8507_v46  ;;  %v11699_v59 = vrot.slane %v8522_v39, 2 }
 0x12a   : > { %2647 = vperm.xlu0 %6777, %v8370_v16   ;;  %v1974_v42 = vrot.slane %v8599_v60, 1  ;;  %v2045_v21 = vadd.f32 %v8610_v15, %v8540_v8  ;;  %v11700_v31 = vrot.slane %v8576_v41, 1  ;;  %v2123_v46 = vrot.slane %v8573_v28, 2 }
 0x12b   : > { %v8633_v50 = vsel %vm1607_vm3, %v2108_v17, %v11699_v59  ;;  %2627 = vperm.xlu1 %6778, %v8353_v56   ;;  %7062 = vrcp.f32 %v2502_v36  ;;  %v11701_v59 = vrot.slane %v8543_v61, 2  ;;  %v1984_v56 = vrot.slane %v8623_v5, 1 }
 0x12c   : > { %v8643_v16 = vsel %vm975_vm0, %v1979_v40, %v11700_v31  ;;  %v1197_v3 = vpop.permute.xlu0 %1196  ;;  %v2296_v51 = vadd.f32 %v2257_v52, %v8553_v6  ;;  %v2187_v31 = vadd.f32 %v8633_v50, %v2043_v49  ;;  %v2259_v40 = vadd.f32 %v2217_v44, %v8591_v26 }
 0x12d   : > { %v8650_v34 = vsel %vm1607_vm3, %v2113_v62, %v11701_v59  ;;  %v1199_v27 = vpop.permute.xlu1 %1198  ;;  %v2118_v17 = vrot.slane %v8599_v60, 2  ;;  %v1312_v36 = vsel %vm1294_vm4, %v7104_v12, %v8434_v10  ;;  %v11702_v62 = vrot.slane %v8602_v63, 1 }
 0x12e   : > { %2677 = vperm.xlu0 %6777, %v8473_v29   ;;  %v2049_v49 = vadd.f32 %v8643_v16, %v8573_v28  ;;  %v1345_v44 = vsel %vm1327_vm5, %v1312_v36, %v8488_v37  ;;  %v8676_v12 = vadd.f32 %v2368_v58, %v8553_v6  ;;  %v2189_v10 = vadd.f32 %v8650_v34, %v2045_v21 }
 0x12f   : > { %v8665_v59 = vsel %vm975_vm0, %v1974_v42, %v11702_v62  ;;  %2657 = vperm.xlu1 %6778, %v8376_v19   ;;  %v11703_v29 = vrot.slane %v8576_v41, 2  ;;  %v1378_v62 = vsel %vm1360_vm6, %v1345_v44, %v8524_v9  ;;  %v11704_v37 = vrot.slane %v8626_v54, 1  ;;  %v8700_v44 = vld [vmem:[%s7517_s17 + $0x100] sm:$0x3] }
 0x130   : > { %v8670_v52 = vpop.eup %7058  ;;  %v1244_v13 = vpop.permute.xlu0 %1243  ;;  %v2128_v19 = vrot.slane %v8623_v5, 2  ;;  %v1411_v21 = vsel %vm1393_vm7, %v1378_v62, %v8563_v0  ;;  %v2047_v9 = vadd.f32 %v8665_v59, %v8599_v60  ;;  %v11705_v0 = vrot.slane %v8602_v63, 2 }
 0x131   : > { %v8682_v42 = vsel %vm1607_vm3, %v2123_v46, %v11703_v29  ;;  %v8689_v36 = vsel %vm975_vm0, %v1984_v56, %v11704_v37  ;;  %v7061_v58 = vpop.eup %7060  ;;  %v1246_v30 = vpop.permute.xlu1 %1245  ;;  %v2219_v46 = vadd.f32 %v2187_v31, %v8540_v8  ;;  %v2298_v29 = vadd.f32 %v2259_v40, %v8633_v50  ;;  %v7105_v56 = vld [vmem:[%s7348_s18 + $0x6c] sm:$0xff]  }
 0x132   : > { %v1314_v37 = vsel %vm1294_vm4, %v7105_v56, %v8463_v18  ;;  %v1444_v6 = vsel %vm1426_vm8, %v1411_v21, %v1160_v4  ;;  %2687 = vperm.xlu0 %6777, %v8476_v2   ;;  %v8710_v31 = vsel %vm1607_vm3, %v2118_v17, %v11705_v0  ;;  %v2193_v40 = vadd.f32 %v8682_v42, %v2049_v49  ;;  %v8724_v49 = vld [vmem:[%s7517_s17 + $0x180] sm:$0xff] }
 0x133   : > { %v1347_v62 = vsel %vm1327_vm5, %v1314_v37, %v8493_v23  ;;  %v1477_v41 = vsel %vm1459_vm9, %v1444_v6, %v1197_v3  ;;  %2667 = vperm.xlu1 %6778, %v8446_v32   ;;  %v2221_v18 = vadd.f32 %v2189_v10, %v8599_v60  ;;  %v2051_v2 = vadd.f32 %v8689_v36, %v8623_v5 }
 0x134   : > { %v1380_v4 = vsel %vm1360_vm6, %v1347_v62, %v8532_v22  ;;  %v1510_v17 = vsel %vm1492_vm10, %v1477_v41, %v1244_v13  ;;  %v1279_v21 = vpop.permute.xlu0 %1278  ;;  %v11706_v23 = vrot.slane %v8626_v54, 2  ;;  %v1962_v32 = vrot.slane %v8700_v44, 1  ;;  %v8740_v41 = vld [vmem:[%s7517_s17 + $0x188] sm:$0xff] }
 0x135   : > { %v1413_v3 = vsel %vm1393_vm7, %v1380_v4, %v8578_v57  ;;  %v8734_v10 = vpop.permute.xlu1 %963  ;;  %v1543_v6 = vsel %vm1525_vm11, %v1510_v17, %v1279_v21  ;;  %v2261_v22 = vadd.f32 %v2219_v46, %v8610_v15  ;;  %v2191_v13 = vadd.f32 %v8710_v31, %v2047_v9  ;;  %v7063_v37 = vpop.eup %7062 }
 0x136   : > { %v8729_v56 = vsel %vm1607_vm3, %v2128_v19, %v11706_v23  ;;  %v1446_v19 = vsel %vm1426_vm8, %v1413_v3, %v8614_v20  ;;  %2642 = vperm.xlu0 %6777, %v8530_v24   ;;  %6674 = vmatprep.mubr.msk.bf16.mxu0 %vm1573_vm12, %v1543_v6  ;;  %v11707_v57 = vmax.f32 %v8568_v55, 0.0  ;;  %v2328_v62 = vadd.f32 %v2296_v51, %v8519_v1 }
 0x137   : > { %v2225_v46 = vadd.f32 %v2193_v40, %v8623_v5  ;;  %v1479_v9 = vsel %vm1459_vm9, %v1446_v19, %v1199_v27  ;;  %2622 = vperm.xlu1 %6778, %v8527_v53   ;;  %v2330_v4 = vadd.f32 %v2298_v29, %v8540_v8  ;;  %v2195_v20 = vadd.f32 %v8729_v56, %v2051_v2 }
 0x138   : > { %v8748_v0 = vmin.f32 %v11707_v57, 1.0  ;;  %v2232_v24 = vrot.slane %v8724_v49, 1  ;;  %v1512_v17 = vsel %vm1492_vm10, %v1479_v9, %v1246_v30  ;;  %v1281_v21 = vpop.permute.xlu0 %1280  ;;  %v11582_v55 = vrot.slane %v8740_v41, 1 }
 0x139   : > { %v11708_v23 = vrot.slane %v8458_v48, 1  ;;  %v2106_v1 = vrot.slane %v8700_v44, 2  ;;  %v8765_v27 = vpop.permute.xlu1 %965  ;;  %v1545_v53 = vsel %vm1525_vm11, %v1512_v17, %v1281_v21  ;;  %v2300_v8 = vadd.f32 %v2261_v22, %v8650_v34 }
 0x13a   : > { %v2223_v29 = vadd.f32 %v2191_v13, %v8573_v28  ;;  %v2263_v30 = vadd.f32 %v2221_v18, %v8665_v59  ;;  %2868 = vperm.xlu0 %6777, %v8055_v45   ;;  %6675 = vmatmul.mubr.msk.bf16.gmra.mrb[16].mxu0 %vm1573_vm12, %v1545_v53  ;;  %v2564_v40 = vmul.f32 9.0, %v7061_v58  ;;  %v2503_v2 = vadd.f32 1e-08, %v8676_v12 }
 0x13b   : > { %v8762_v51 = vsel %vm975_vm0, %v11708_v23, %v1962_v32  ;;  %v2370_v44 = vadd.f32 %v2328_v62, %v8591_v26  ;;  %v2267_v32 = vadd.f32 %v2225_v46, %v8689_v36  ;;  %2848 = vperm.xlu1 %6778, %v11672_v47   ;;  %v2562_v3 = vmul.f32 9.0, %v8670_v52 }
 0x13c   : > { %v2566_v6 = vmul.f32 9.0, %v7063_v37  ;;  %v2227_v22 = vadd.f32 %v2195_v20, %v8724_v49  ;;  %v2042_v45 = vadd.f32 %v8762_v51, %v8458_v48  ;;  %v8781_v18 = vpop.permute.xlu0 %1044  ;;  %v2234_v58 = vsel %vm975_vm0, %v2232_v24, %v11582_v55  ;;  %v1809_v37 = vld [vmem:[%s7517_s17 + $0x118] sm:$0x3] }
 0x13d   : > { %v2271_v26 = vrot.slane %v8724_v49, 2  ;;  %v11581_v13 = vrot.slane %v8740_v41, 2  ;;  %v11709_v47 = vrot.slane %v8458_v48, 2  ;;  %v8794_v19 = vpop.permute.xlu1 %1046  ;;  %v2372_v57 = vadd.f32 %v2330_v4, %v8610_v15  ;;  %v1812_v4 = vld [vmem:[%s7517_s17 + $0x130] sm:$0x3] }
 0x13e   : > { %v2302_v62 = vadd.f32 %v2263_v30, %v8710_v31  ;;  %v2332_v46 = vadd.f32 %v2300_v8, %v8599_v60  ;;  %v2265_v9 = vadd.f32 %v2223_v29, %v8643_v16  ;;  %2652 = vperm.xlu0 %6777, %v8566_v35   ;;  %v2596_v20 = vmul.f32 %v2564_v40, %v8596_v7 }
 0x13f   : > { %v8791_v52 = vsel %vm1607_vm3, %v11709_v47, %v2106_v1  ;;  %v8804_v24 = vadd.f32 %v8559_v14, %v8458_v48  ;;  %v8807_v17 = vadd.f32 %v2370_v44, %v8633_v50  ;;  %v2306_v21 = vadd.f32 %v2267_v32, %v8729_v56  ;;  %2632 = vperm.xlu1 %6778, %v8548_v38   ;;  %v1818_v1 = vld [vmem:[%s7517_s17 + $0x160] sm:$0x3]  ;;  %v1825_v44 = vld [vmem:[%s7517_s17 + $0x198] sm:$0xff] }
 0x140   : > { %v2592_v60 = vmul.f32 %v8580_v25, %v8513_v33  ;;  %v2269_v15 = vadd.f32 %v2234_v58, %v2227_v22  ;;  %v2186_v35 = vadd.f32 %v8791_v52, %v2042_v45  ;;  %v1967_v23 = vrot.slane %v1809_v37, 1  ;;  %v8816_v14 = vpop.permute.xlu0 %1081  ;;  %v8837_v32 = vld [vmem:[%s7517_s17 + $0x1a0] sm:$0xff] }
 0x141   : > { %v8819_v50 = vmul.f32 %v2562_v3, %v8582_v43  ;;  %v8822_v53 = vmul.f32 %v2566_v6, %v8748_v0  ;;  %7064 = vrcp.f32 %v2503_v2  ;;  %v2273_v38 = vsel %vm1607_vm3, %v2271_v26, %v11581_v13  ;;  %v8827_v25 = vpop.permute.xlu1 %1083 }
 0x142   : > { %v8830_v8 = vadd.f32 %v2372_v57, %v8650_v34  ;;  %v2374_v29 = vadd.f32 %v2332_v46, %v8665_v59  ;;  %v2304_v30 = vadd.f32 %v2265_v9, %v8682_v42  ;;  %v2334_v40 = vadd.f32 %v2302_v62, %v8573_v28  ;;  %2682 = vperm.xlu0 %6777, %v2596_v20  }
 0x143   : > { %v2505_v2 = vadd.f32 1e-08, %v8807_v17  ;;  %v2338_v3 = vadd.f32 %v2306_v21, %v8724_v49  ;;  %v1972_v6 = vrot.slane %v1812_v4, 1  ;;  %v1982_v22 = vrot.slane %v1818_v1, 1  ;;  %2662 = vperm.xlu1 %6778, %v2592_v60  }
 0x144   : > { %v2308_v45 = vadd.f32 %v2273_v38, %v2269_v15  ;;  %v2218_v34 = vadd.f32 %v2186_v35, %v8522_v39  ;;  %v11710_v59 = vrot.slane %v8522_v39, 1  ;;  %v2111_v28 = vrot.slane %v1809_v37, 2  ;;  %v8847_v47 = vpop.permute.xlu0 %1128 }
 0x145   : > { %v2345_v62 = vrot.slane %v1825_v44, 1  ;;  %v11583_v46 = vrot.slane %v8837_v32, 1  ;;  %v8853_v9 = vpop.permute.xlu1 %1130  ;;  %v2507_v20 = vadd.f32 1e-08, %v8830_v8  ;;  %v8857_v21 = vadd.f32 %v2374_v29, %v8710_v31  ;;  %v11714_v31 = vld [vmem:[#allocation15_spill] sm:$0xff] }
 0x146   : > { %v8845_v26 = vsel %vm975_vm0, %v11710_v59, %v1967_v23  ;;  %v2376_v60 = vadd.f32 %v2334_v40, %v8643_v16  ;;  %v2336_v37 = vadd.f32 %v2304_v30, %v8623_v5  ;;  %2878 = vperm.xlu0 %6777, %v8244_v11   ;;  %v11711_v15 = vrot.slane %v8543_v61, 1  ;;  %v11712_v59 = vld [vmem:[#allocation26_spill] sm:$0xff] }
 0x147   : > { %v2044_v49 = vadd.f32 %v8845_v26, %v8522_v39  ;;  %v2116_v23 = vrot.slane %v1812_v4, 2  ;;  %v11713_v13 = vrot.slane %v11712_v59, 1  ;;  %v2126_v57 = vrot.slane %v1818_v1, 2  ;;  %2858 = vperm.xlu1 %6778, %v11714_v31  }
 0x148   : > { %v8865_v35 = vsel %vm975_vm0, %v11711_v15, %v1972_v6  ;;  %v2380_v29 = vadd.f32 %v2338_v3, %v2234_v58  ;;  %v2340_v16 = vadd.f32 %v2308_v45, %v1825_v44  ;;  %v11715_v5 = vrot.slane %v8522_v39, 2  ;;  %v1164_v40 = vpop.permute.xlu0 %1163  ;;  %v8904_v15 = vld [vmem:[%s7517_s17 + $0x148] sm:$0x3] }
 0x149   : > { %v8870_v55 = vsel %vm975_vm0, %v11713_v13, %v1982_v22  ;;  %v2260_v30 = vadd.f32 %v2218_v34, %v8845_v26  ;;  %v2347_v4 = vsel %vm975_vm0, %v2345_v62, %v11583_v46  ;;  %v2384_v13 = vrot.slane %v1825_v44, 2  ;;  %v8884_v58 = vpop.permute.xlu1 %1165  ;;  %v11719_v46 = vld [vmem:[#allocation14_spill] sm:$0xff] }
 0x14a   : > { %v8876_v11 = vsel %vm1607_vm3, %v11715_v5, %v2111_v28  ;;  %v2385_v1 = vrot.slane %v8837_v32, 2  ;;  %7066 = vrcp.f32 %v2505_v2  ;;  %v2509_v3 = vadd.f32 1e-08, %v8857_v21  ;;  %v11716_v28 = vld [vmem:[#allocation20_spill] sm:$0xff] }
 0x14b   : > { %v2188_v6 = vadd.f32 %v8876_v11, %v2044_v49  ;;  %v2046_v22 = vadd.f32 %v8865_v35, %v8543_v61  ;;  %v2050_v45 = vadd.f32 %v8870_v55, %v11712_v59  ;;  %v8891_v34 = vpop.eup %7064  ;;  %2908 = vperm.xlu0 %6777, %v11716_v28   ;;  %v8895_v44 = vadd.f32 %v2376_v60, %v8682_v42 }
 0x14c   : > { %v2378_v62 = vadd.f32 %v2336_v37, %v8689_v36  ;;  %v11717_v2 = vrot.slane %v8543_v61, 2  ;;  %v11718_v31 = vrot.slane %v11712_v59, 2  ;;  %2888 = vperm.xlu1 %6778, %v11719_v46   ;;  %7068 = vrcp.f32 %v2507_v20  ;;  %v1821_v37 = vld [vmem:[%s7517_s17 + $0x178] sm:$0x3]  ;;  %v1201_v28 = vpop.permute.xlu0 %1200 }
 0x14d   : > { %v8912_v42 = vadd.f32 %v2380_v29, %v2273_v38  ;;  %v2382_v60 = vadd.f32 %v2347_v4, %v2340_v16  ;;  %v2299_v36 = vadd.f32 %v2260_v30, %v8876_v11  ;;  %v2220_v46 = vadd.f32 %v2188_v6, %v8543_v61  ;;  %v1203_v20 = vpop.permute.xlu1 %1202  ;;  %v7106_v30 = vld [vmem:[%s7348_s18 + $0x78] sm:$0xff]  }
 0x14e   : > { %v8901_v49 = vsel %vm1607_vm3, %v11717_v2, %v2116_v23  ;;  %v8909_v5 = vsel %vm1607_vm3, %v11718_v31, %v2126_v57  ;;  %v2386_v23 = vsel %vm1607_vm3, %v2384_v13, %v2385_v1  ;;  %v2258_v2 = vadd.f32 %v8804_v24, %v8762_v51  ;;  %v11720_v57 = vld [vmem:[#allocation19_spill] sm:$0xff] }
 0x14f   : > { %v2327_v31 = vadd.f32 %v11720_v57, %v8458_v48  ;;  %7070 = vrcp.f32 %v2509_v3  ;;  %v2190_v38 = vadd.f32 %v8901_v49, %v2046_v22  ;;  %v1977_v29 = vrot.slane %v8904_v15, 1  ;;  %2692 = vperm.xlu0 %6777, %v8822_v53  }
 0x150   : > { %v2194_v16 = vadd.f32 %v8909_v5, %v2050_v45  ;;  %v1316_v4 = vsel %vm1294_vm4, %v7106_v30, %v8734_v10  ;;  %v8932_v24 = vadd.f32 1e-08, %v8895_v44  ;;  %v8935_v48 = vadd.f32 %v2378_v62, %v8729_v56  ;;  %2672 = vperm.xlu1 %6778, %v8819_v50   ;;  %v1248_v45 = vpop.permute.xlu0 %1247 }
 0x151   : > { %v1987_v13 = vrot.slane %v1821_v37, 1  ;;  %v1349_v6 = vsel %vm1327_vm5, %v1316_v4, %v8781_v18  ;;  %v2515_v3 = vadd.f32 1e-08, %v8912_v42  ;;  %v8941_v22 = vadd.f32 %v2386_v23, %v2382_v60  ;;  %v1250_v50 = vpop.permute.xlu1 %1249  ;;  %v11724_v4 = vld [vmem:[#allocation16_spill] sm:$0xff] }
 0x152   : > { %v2331_v10 = vadd.f32 %v2299_v36, %v8543_v61  ;;  %v1382_v53 = vsel %vm1360_vm6, %v1349_v6, %v8816_v14  ;;  %v2297_v56 = vadd.f32 %v2258_v2, %v8791_v52  ;;  %v2369_v62 = vadd.f32 %v2327_v31, %v8762_v51  ;;  %v7107_v36 = vld [vmem:[%s7348_s18 + $0x84] sm:$0xff]  }
 0x153   : > { %v2262_v57 = vadd.f32 %v2220_v46, %v8865_v35  ;;  %v1415_v18 = vsel %vm1393_vm7, %v1382_v53, %v8847_v47  ;;  %v2222_v30 = vadd.f32 %v2190_v38, %v8602_v63  ;;  %v11721_v60 = vrot.slane %v8602_v63, 1  ;;  %v11722_v2 = vld [vmem:[#allocation13_spill] sm:$0xff] }
 0x154   : > { %v2226_v14 = vadd.f32 %v2194_v16, %v8626_v54  ;;  %v1318_v23 = vsel %vm1294_vm4, %v7107_v36, %v8765_v27  ;;  %v1448_v51 = vsel %vm1426_vm8, %v1415_v18, %v1164_v40  ;;  %2918 = vperm.xlu0 %6777, %v11722_v2   ;;  %v11723_v47 = vrot.slane %v8626_v54, 1  ;;  %v8968_v38 = vpop.eup %7066  ;;  %2898 = vperm.xlu1 %6778, %v11724_v4   ;;  %v1283_v53 = vpop.permute.xlu0 %1282 }
 0x155   : > { %v8955_v61 = vsel %vm975_vm0, %v11721_v60, %v1977_v29  ;;  %v2131_v46 = vrot.slane %v1821_v37, 2  ;;  %v1351_v29 = vsel %vm1327_vm5, %v1318_v23, %v8794_v19  ;;  %v1481_v16 = vsel %vm1459_vm9, %v1448_v51, %v1201_v28  ;;  %v8984_v60 = vpop.permute.xlu1 %967 }
 0x156   : > { %v8966_v31 = vsel %vm975_vm0, %v11723_v47, %v1987_v13  ;;  %v2373_v27 = vadd.f32 %v2331_v10, %v8865_v35  ;;  %v2121_v40 = vrot.slane %v8904_v15, 2  ;;  %v1384_v6 = vsel %vm1360_vm6, %v1351_v29, %v8827_v25  ;;  %v7069_v19 = vpop.eup %7068 }
 0x157   : > { %v1514_v13 = vsel %vm1492_vm10, %v1481_v16, %v1248_v45  ;;  %v2301_v37 = vadd.f32 %v2262_v57, %v8901_v49  ;;  %v2048_v18 = vadd.f32 %v8955_v61, %v8602_v63  ;;  %v1417_v28 = vsel %vm1393_vm7, %v1384_v6, %v8853_v9  ;;  %v11725_v45 = vld [vmem:[#allocation23_spill] sm:$0xff]  ;;  %v1824_v16 = vld [vmem:[%s7517_s17 + $0x190] sm:$0x3] }
 0x158   : > { %v1547_v35 = vsel %vm1525_vm11, %v1514_v13, %v1283_v53  ;;  %v2052_v25 = vadd.f32 %v8966_v31, %v8626_v54  ;;  %v2268_v15 = vadd.f32 %v2226_v14, %v8966_v31  ;;  %v1450_v10 = vsel %vm1426_vm8, %v1417_v28, %v8884_v58  ;;  %2873 = vperm.xlu0 %6777, %v11725_v45   ;;  %v11727_v14 = vld [vmem:[#allocation12_spill] sm:$0xff]  ;;  %v1285_v4 = vpop.permute.xlu0 %1284 }
 0x159   : > { %6678 = vmatprep.mubr.msk.bf16.mxu0 %vm1573_vm12, %v1547_v35  ;;  %v2513_v57 = vadd.f32 1e-08, %v8935_v48  ;;  %v2264_v9 = vadd.f32 %v2222_v30, %v8955_v61  ;;  %v11726_v36 = vrot.slane %v8626_v54, 2  ;;  %v7071_v51 = vpop.eup %7070  ;;  %v1483_v2 = vsel %vm1459_vm9, %v1450_v10, %v1203_v20  ;;  %2853 = vperm.xlu1 %6778, %v11727_v14   ;;  %v9016_v13 = vpop.permute.xlu1 %969 }
 0x15a   : > { %7072 = vrcp.f32 %v2515_v3  ;;  %v2517_v58 = vadd.f32 1e-08, %v8941_v22  ;;  %v11728_v47 = vrot.slane %v8602_v63, 2  ;;  %v1516_v30 = vsel %vm1492_vm10, %v1483_v2, %v1250_v50  ;;  %v11729_v50 = vld [vmem:[#allocation17_spill] sm:$0xff] }
 0x15b   : > { %v8999_v23 = vsel %vm1607_vm3, %v11726_v36, %v2131_v46  ;;  %v9010_v6 = vadd.f32 %v2369_v62, %v8791_v52  ;;  %v9013_v46 = vadd.f32 %v2373_v27, %v8901_v49  ;;  %v2329_v20 = vadd.f32 %v2297_v56, %v8522_v39  ;;  %v11730_v39 = vld [vmem:[#allocation25_spill] sm:$0xff] }
 0x15c   : > { %v2122_v29 = vsel %vm1607_vm3, %v11728_v47, %v2121_v40  ;;  %v1549_v3 = vsel %vm1525_vm11, %v1516_v30, %v1285_v4  ;;  %v2333_v53 = vadd.f32 %v2301_v37, %v8602_v63  ;;  %v2196_v40 = vadd.f32 %v8999_v23, %v2052_v25  ;;  %2883 = vperm.xlu0 %6777, %v11729_v50   ;;  %v9032_v35 = vpop.permute.xlu0 %1048 }
 0x15d   : > { %v2307_v28 = vadd.f32 %v2268_v15, %v8999_v23  ;;  %6679 = vmatmul.mubr.msk.bf16.gmra.mrb[20].mxu0 %vm1573_vm12, %v1549_v3  ;;  %7074 = vrcp.f32 %v8932_v24  ;;  %v2192_v52 = vadd.f32 %v2122_v29, %v2048_v18  ;;  %v2303_v49 = vadd.f32 %v2264_v9, %v2122_v29  ;;  %2863 = vperm.xlu1 %6778, %v11730_v39   ;;  %v9036_v15 = vpop.permute.xlu1 %1050 }
 0x15e   : > { %v2235_v62 = vrot.slane %v1824_v16, 1  ;;  %v2439_v56 = vmax.f32 %v8676_v12, 0.0  ;;  %v11731_v27 = vmax.f32 %v8830_v8, 0.0  ;;  %v2445_v37 = vmax.f32 %v8857_v21, 0.0 }
 0x15f   : > { %7076 = vrcp.f32 %v2517_v58  ;;  %v2571_v25 = vmul.f32 9.0, %v7069_v19  ;;  %v2508_v24 = vadd.f32 1e-08, %v9013_v46  ;;  %v2371_v18 = vadd.f32 %v2329_v20, %v8845_v26 }
 0x160   : > { %v9029_v63 = vmin.f32 %v11731_v27, 1.0  ;;  %7078 = vrcp.f32 %v2513_v57  ;;  %v2504_v10 = vadd.f32 1e-08, %v9010_v6  ;;  %v2375_v12 = vadd.f32 %v2333_v53, %v8955_v61  ;;  %2913 = vperm.xlu0 %6777, %v8596_v7   ;;  %v9055_v7 = vpop.permute.xlu0 %1085 }
 0x161   : > { %v2228_v8 = vadd.f32 %v2196_v40, %v8740_v41  ;;  %v2339_v45 = vadd.f32 %v2307_v28, %v8740_v41  ;;  %v2224_v21 = vadd.f32 %v2192_v52, %v11712_v59  ;;  %v2335_v19 = vadd.f32 %v2303_v49, %v11712_v59  ;;  %2893 = vperm.xlu1 %6778, %v8513_v33   ;;  %v9062_v33 = vpop.permute.xlu1 %1087 }
 0x162   : > { %v11732_v57 = vrot.slane %v8740_v41, 1  ;;  %v2274_v9 = vrot.slane %v1824_v16, 2  ;;  %v9049_v36 = vmin.f32 %v2439_v56, 1.0  ;;  %v2567_v61 = vmul.f32 9.0, %v8891_v34 }
 0x163   : > { %v2441_v2 = vmax.f32 %v8807_v17, 0.0  ;;  %v9053_v14 = vmin.f32 %v2445_v37, 1.0  ;;  %v2603_v58 = vmul.f32 %v2571_v25, %v9029_v63  ;;  %v2451_v59 = vmax.f32 %v8912_v42, 0.0 }
 0x164   : > { %v2236_v26 = vsel %vm975_vm0, %v11732_v57, %v2235_v62  ;;  %7080 = vrcp.f32 %v2508_v24  ;;  %v9060_v47 = vadd.f32 %v2371_v18, %v8876_v11  ;;  %v7073_v16 = vpop.eup %7072  ;;  %v2573_v30 = vmul.f32 9.0, %v7071_v51  ;;  %2923 = vperm.xlu0 %6777, %v8748_v0   ;;  %v1827_v0 = vld [vmem:[%s7517_s17 + $0x1a8] sm:$0x3]  ;;  %v9079_v50 = vpop.permute.xlu0 %1132  ;;  %s7195_s17 = smov 32  }
 0x165   : > { %v9064_v34 = vadd.f32 %v2375_v12, %v2122_v29  ;;  %v2270_v17 = vadd.f32 %v2236_v26, %v2228_v8  ;;  %v2381_v4 = vadd.f32 %v2339_v45, %v2236_v26  ;;  %7082 = vrcp.f32 %v2504_v10  ;;  %2903 = vperm.xlu1 %6778, %v8582_v43   ;;  %v9085_v62 = vpop.permute.xlu1 %1134 }
 0x166   : > { %v2266_v20 = vadd.f32 %v2224_v21, %v8870_v55  ;;  %v2377_v42 = vadd.f32 %v2335_v19, %v8870_v55  ;;  %v11733_v3 = vrot.slane %v8740_v41, 2  ;;  %v2599_v53 = vmul.f32 %v2567_v61, %v9049_v36 }
 0x167   : > { %v9074_v51 = vmin.f32 %v2441_v2, 1.0  ;;  %v2569_v29 = vmul.f32 9.0, %v8968_v38  ;;  %v2447_v40 = vmax.f32 %v8895_v44, 0.0  ;;  %v7075_v28 = vpop.eup %7074  ;;  %v9081_v52 = vmin.f32 %v2451_v59, 1.0 }
 0x168   : > { %v2275_v11 = vsel %vm1607_vm3, %v11733_v3, %v2274_v9  ;;  %v2579_v55 = vmul.f32 9.0, %v7073_v16  ;;  %v2453_v41 = vmax.f32 %v8941_v22, 0.0  ;;  %v2506_v49 = vadd.f32 1e-08, %v9060_v47  ;;  %2717 = vperm.xlu0 %6777, %v2603_v58   ;;  %v1168_v8 = vpop.permute.xlu0 %1167 }
 0x169   : > { %v7077_v43 = vpop.eup %7076  ;;  %v2510_v39 = vadd.f32 1e-08, %v9064_v34  ;;  %v2309_v56 = vadd.f32 %v2275_v11, %v2270_v17  ;;  %v9088_v38 = vadd.f32 %v2381_v4, %v2275_v11  ;;  %v2605_v27 = vmul.f32 %v2573_v30, %v9053_v14  ;;  %2697 = vperm.xlu1 %6778, %v2599_v53   ;;  %v9102_v57 = vpop.permute.xlu1 %1169 }
 0x16a   : > { %v7079_v44 = vpop.eup %7078  ;;  %v2305_v37 = vadd.f32 %v2266_v20, %v8909_v5  ;;  %v9093_v25 = vadd.f32 %v2377_v42, %v8909_v5  ;;  %v2348_v22 = vrot.slane %v1827_v0, 1  ;;  %v2601_v24 = vmul.f32 %v2569_v29, %v9074_v51 }
 0x16b   : > { %v9096_v18 = vmin.f32 %v2447_v40, 1.0  ;;  %v2575_v10 = vmul.f32 9.0, %v7075_v28  ;;  %v2449_v12 = vmax.f32 %v8935_v48, 0.0  ;;  %v2611_v45 = vmul.f32 %v2579_v55, %v9081_v52  ;;  %v7108_v40 = vld [vmem:[%s7348_s18 + $0x90] sm:$0xff]  }
 0x16c   : > { %v9100_v21 = vmin.f32 %v2453_v41, 1.0  ;;  %v2581_v19 = vmul.f32 9.0, %v7077_v43  ;;  %7084 = vrcp.f32 %v2506_v49  ;;  %v2444_v5 = vmax.f32 %v9013_v46, 0.0  ;;  %2727 = vperm.xlu0 %6777, %v2605_v27   ;;  %v1205_v42 = vpop.permute.xlu0 %1204 }
 0x16d   : > { %7086 = vrcp.f32 %v2510_v39  ;;  %v2516_v26 = vadd.f32 1e-08, %v9088_v38  ;;  %v2341_v9 = vadd.f32 %v2309_v56, %v8837_v32  ;;  %v2512_v48 = vadd.f32 1e-08, %v9093_v25  ;;  %2707 = vperm.xlu1 %6778, %v2601_v24   ;;  %v1207_v11 = vpop.permute.xlu1 %1206 }
 0x16e   : > { %v7081_v61 = vpop.eup %7080  ;;  %v2337_v2 = vadd.f32 %v2305_v37, %v8626_v54  ;;  %v11734_v58 = vrot.slane %v8837_v32, 1  ;;  %v2387_v16 = vrot.slane %v1827_v0, 2  ;;  %v2607_v46 = vmul.f32 %v2575_v10, %v9096_v18 }
 0x16f   : > { %v9113_v30 = vmin.f32 %v2449_v12, 1.0  ;;  %v2577_v17 = vmul.f32 9.0, %v7079_v44  ;;  %v2440_v4 = vmax.f32 %v9010_v6, 0.0  ;;  %v7083_v20 = vpop.eup %7082  ;;  %v2613_v3 = vmul.f32 %v2581_v19, %v9100_v21 }
 0x170   : > { %v2349_v59 = vsel %vm975_vm0, %v11734_v58, %v2348_v22  ;;  %v9117_v54 = vmin.f32 %v2444_v5, 1.0  ;;  %v2572_v53 = vmul.f32 9.0, %v7081_v61  ;;  %7088 = vrcp.f32 %v2516_v26  ;;  %2757 = vperm.xlu0 %6777, %v2611_v45   ;;  %v1252_v39 = vpop.permute.xlu0 %1251 }
 0x171   : > { %v2383_v29 = vadd.f32 %v2349_v59, %v2341_v9  ;;  %v1320_v0 = vsel %vm1294_vm4, %v7108_v40, %v8984_v60  ;;  %7090 = vrcp.f32 %v2512_v48  ;;  %v2379_v28 = vadd.f32 %v2337_v2, %v8966_v31  ;;  %2737 = vperm.xlu1 %6778, %v2607_v46   ;;  %v1254_v56 = vpop.permute.xlu1 %1253 }
 0x172   : > { %v2388_v6 = vsel %vm1607_vm3, %v2385_v1, %v2387_v16  ;;  %v1353_v55 = vsel %vm1327_vm5, %v1320_v0, %v9032_v35  ;;  %v2609_v41 = vmul.f32 %v2577_v17, %v9113_v30  ;;  %v9129_v49 = vmin.f32 %v2440_v4, 1.0  ;;  %v7109_v35 = vld [vmem:[%s7348_s18 + $0x9c] sm:$0xff]  }
 0x173   : > { %v2568_v43 = vmul.f32 9.0, %v7083_v20  ;;  %v1386_v60 = vsel %vm1360_vm6, %v1353_v55, %v9055_v7  ;;  %v2446_v32 = vmax.f32 %v9064_v34, 0.0  ;;  %v9136_v1 = vadd.f32 %v2388_v6, %v2383_v29 }
 0x174   : > { %v1419_v31 = vsel %vm1393_vm7, %v1386_v60, %v9079_v50  ;;  %v1322_v27 = vsel %vm1294_vm4, %v7109_v35, %v9016_v13  ;;  %2767 = vperm.xlu0 %6777, %v2613_v3   ;;  %v2604_v22 = vmul.f32 %v2572_v53, %v9117_v54  ;;  %v9144_v7 = vadd.f32 %v2379_v28, %v8999_v23  ;;  %v1287_v45 = vpop.permute.xlu0 %1286 }
 0x175   : > { %v1452_v37 = vsel %vm1426_vm8, %v1419_v31, %v1168_v8  ;;  %v1355_v50 = vsel %vm1327_vm5, %v1322_v27, %v9036_v15  ;;  %2747 = vperm.xlu1 %6778, %v2609_v41   ;;  %v2600_v10 = vmul.f32 %v2568_v43, %v9129_v49  ;;  %v2442_v12 = vmax.f32 %v9060_v47, 0.0  ;;  %v9156_v19 = vpop.permute.xlu1 %971 }
 0x176   : > { %v7085_v44 = vpop.eup %7084  ;;  %v1485_v34 = vsel %vm1459_vm9, %v1452_v37, %v1205_v42  ;;  %v1388_v13 = vsel %vm1360_vm6, %v1355_v50, %v9062_v33  ;;  %v9159_v5 = vmin.f32 %v2446_v32, 1.0  ;;  %v2518_v26 = vadd.f32 1e-08, %v9136_v1  ;;  %v7111_v50 = vld [vmem:[%s7348_s18 + $0xb4] sm:$0xff]  }
 0x177   : > { %v7087_v24 = vpop.eup %7086  ;;  %v1518_v8 = vsel %vm1492_vm10, %v1485_v34, %v1252_v39  ;;  %v1421_v23 = vsel %vm1393_vm7, %v1388_v13, %v9085_v62  ;;  %v2452_v9 = vmax.f32 %v9088_v38, 0.0  ;;  %v2514_v61 = vadd.f32 1e-08, %v9144_v7 }
 0x178   : > { %v1551_v15 = vsel %vm1525_vm11, %v1518_v8, %v1287_v45  ;;  %v1454_v47 = vsel %vm1426_vm8, %v1421_v23, %v9102_v57  ;;  %2722 = vperm.xlu0 %6777, %v2604_v22   ;;  %v2574_v33 = vmul.f32 9.0, %v7087_v24  ;;  %v9168_v2 = vmin.f32 %v2442_v12, 1.0  ;;  %v1289_v46 = vpop.permute.xlu0 %1288 }
 0x179   : > { %6682 = vmatprep.mubr.msk.bf16.mxu0 %vm1573_vm12, %v1551_v15  ;;  %v1487_v48 = vsel %vm1459_vm9, %v1454_v47, %v1207_v11  ;;  %2702 = vperm.xlu1 %6778, %v2600_v10   ;;  %v2570_v58 = vmul.f32 9.0, %v7085_v44  ;;  %v2448_v59 = vmax.f32 %v9093_v25, 0.0  ;;  %v974_v17 = vpop.permute.xlu1 %973  ;;  %7092 = vrcp.f32 %v2518_v26 }
 0x17a   : > { %v7089_v62 = vpop.eup %7088  ;;  %v1520_v57 = vsel %vm1492_vm10, %v1487_v48, %v1254_v56  ;;  %v2606_v38 = vmul.f32 %v2574_v33, %v9159_v5  ;;  %v9176_v20 = vmin.f32 %v2452_v9, 1.0  ;;  %7094 = vrcp.f32 %v2514_v61 }
 0x17b   : > { %v7091_v16 = vpop.eup %7090  ;;  %v1553_v4 = vsel %vm1525_vm11, %v1520_v57, %v1289_v46  ;;  %v2580_v42 = vmul.f32 9.0, %v7089_v62  ;;  %v2602_v25 = vmul.f32 %v2570_v58, %v9168_v2  ;;  %v9180_v3 = vmin.f32 %v2448_v59, 1.0 }
 0x17c   : > { %2948 = vperm.xlu0 %6777, %v9029_v63   ;;  %6683 = vmatmul.mubr.msk.bf16.gmra.mrb[24].mxu0 %vm1573_vm12, %v1553_v4  ;;  %v2576_v11 = vmul.f32 9.0, %v7091_v16  ;;  %v1053_v53 = vpop.permute.xlu0 %1052  ;;  %v2454_v6 = vmax.f32 %v9136_v1, 0.0  ;;  %v1326_v34 = vsel %vm1294_vm4, %v7111_v50, %v974_v17 }
 0x17d   : > { %2928 = vperm.xlu1 %6778, %v9049_v36   ;;  %v1055_v29 = vpop.permute.xlu1 %1054  ;;  %v2612_v63 = vmul.f32 %v2580_v42, %v9176_v20  ;;  %v2450_v36 = vmax.f32 %v9144_v7, 0.0 }
 0x17e   : > { %v2608_v40 = vmul.f32 %v2576_v11, %v9180_v3  ;;  %v2486_v39 = vmin.f32 %v2454_v6, 1.0  ;;  %v9242_v11 = vld [vmem:[%s11481_s3] ss:$0 sm:$0xff] }
 0x17f   : > { %v2482_v56 = vmin.f32 %v2450_v36, 1.0 }
 0x180   : > { %2732 = vperm.xlu0 %6777, %v2606_v38   ;;  %v1090_v0 = vpop.permute.xlu0 %1089 }
 0x181   : > { %2712 = vperm.xlu1 %6778, %v2602_v25   ;;  %v1092_v28 = vpop.permute.xlu1 %1091 }
 0x183   : > { %v7093_v55 = vpop.eup %7092 }
 0x184   : > { %2762 = vperm.xlu0 %6777, %v2612_v63   ;;  %v7095_v41 = vpop.eup %7094  ;;  %v1137_v43 = vpop.permute.xlu0 %1136  ;;  %v2582_v31 = vmul.f32 9.0, %v7093_v55 }
 0x185   : > { %2742 = vperm.xlu1 %6778, %v2608_v40   ;;  %v1139_v60 = vpop.permute.xlu1 %1138  ;;  %v2578_v32 = vmul.f32 9.0, %v7095_v41  ;;  %v3168_v40 = vlaneseq }
 0x186   : > { %v2614_v1 = vmul.f32 %v2582_v31, %v2486_v39 }
 0x187   : > { %v2610_v27 = vmul.f32 %v2578_v32, %v2482_v56  ;;  %v3169_v41 = vshrl.u32 %v3168_v40, 7 }
 0x188   : > { %2958 = vperm.xlu0 %6777, %v9053_v14   ;;  %v1172_v44 = vpop.permute.xlu0 %1171  ;;  %v7110_v14 = vld [vmem:[%s7348_s18 + $0xa8] sm:$0xff]   ;;  %s7190_s18 = smov 8  }
 0x189   : > { %2938 = vperm.xlu1 %6778, %v9074_v51   ;;  %v1174_v35 = vpop.permute.xlu1 %1173  ;;  %v1324_v24 = vsel %vm1294_vm4, %v7110_v14, %v9156_v19  ;;  %vm3990_vm4 = vcmask 1046534  }
 0x18a   : > { %v1357_v10 = vsel %vm1327_vm5, %v1324_v24, %v1053_v53 }
 0x18b   : > { %v1390_v12 = vsel %vm1360_vm6, %v1357_v10, %v1090_v0 }
 0x18c   : > { %2988 = vperm.xlu0 %6777, %v9081_v52   ;;  %v1209_v37 = vpop.permute.xlu0 %1208  ;;  %v1423_v23 = vsel %vm1393_vm7, %v1390_v12, %v1137_v43 }
 0x18d   : > { %2968 = vperm.xlu1 %6778, %v9096_v18   ;;  %v1211_v22 = vpop.permute.xlu1 %1210  ;;  %v9190_v7 = vpop.f32.mrb[0].mxu0  ;;  %v1359_v18 = vsel %vm1327_vm5, %v1326_v34, %v1055_v29  ;;  %v1456_v26 = vsel %vm1426_vm8, %v1423_v23, %v1172_v44  ;;  %v7189_v29 = vmov 1983009808   ;;  %vm3992_vm5 = vcmask 1047559  }
 0x18e   : > { %v1647_v51 = vpop.f32.mrb[1].mxu0  ;;  %v1392_v45 = vsel %vm1360_vm6, %v1359_v18, %v1092_v28  ;;  %v1489_v33 = vsel %vm1459_vm9, %v1456_v26, %v1209_v37  ;;  %v3166_v63 = vunpack.c.l.s4 %v7189_v29  ;;  %v9250_v28 = vld [vmem:[%s11482_s4] ss:$0 sm:$0xff]  ;;  %vm5059_vm6 = vcmask 64512  }
 0x18f   : > { %v9198_v52 = vpop.f32.mrb[2].mxu0  ;;  %v1425_v15 = vsel %vm1393_vm7, %v1392_v45, %v1139_v60  ;;  %vm5068_vm7 = vcmask 130048  }
 0x190   : > { %2772 = vperm.xlu0 %6777, %v2614_v1   ;;  %v9202_v13 = vpop.f32.mrb[3].mxu0  ;;  %v1256_v8 = vpop.permute.xlu0 %1255  ;;  %v1458_v47 = vsel %vm1426_vm8, %v1425_v15, %v1174_v35  ;;  %v3167_v36 = vunpack.c.0.s8 %v3166_v63  ;;  %vm5105_vm8 = vcmask 261120  }
 0x191   : > { %2752 = vperm.xlu1 %6778, %v2610_v27   ;;  %v1258_v19 = vpop.permute.xlu1 %1257  ;;  %v1491_v9 = vsel %vm1459_vm9, %v1458_v47, %v1211_v22  ;;  %v1522_v61 = vsel %vm1492_vm10, %v1489_v33, %v1256_v8  ;;  %vm5222_vm9 = vcmask 123904  }
 0x192   : > { %v1524_v48 = vsel %vm1492_vm10, %v1491_v9, %v1258_v19  ;;  %v9262_v35 = vsub.s32 %v3167_v36, %v3169_v41  ;;  %vm5552_vm10 = vcmask 523264  }
 0x194   : > { %2998 = vperm.xlu0 %6777, %v9100_v21   ;;  %v1291_v62 = vpop.permute.xlu0 %1290 }
 0x195   : > { %2978 = vperm.xlu1 %6778, %v9113_v30   ;;  %v1293_v58 = vpop.permute.xlu1 %1292  ;;  %v1555_v59 = vsel %vm1525_vm11, %v1522_v61, %v1291_v62 }
 0x196   : > { %v1557_v16 = vsel %vm1525_vm11, %v1524_v48, %v1293_v58  ;;  %6686 = vmatprep.mubr.msk.bf16.mxu0 %vm1573_vm12, %v1555_v59 }
 0x197   : > { %6687 = vmatmul.mubr.msk.bf16.gmra.mrb[28].mxu0 %vm1573_vm12, %v1557_v16  ;;  %vm5570_vm12 = vcmask 785408  }
 0x198   : > { %2953 = vperm.xlu0 %6777, %v9117_v54  }
 0x199   : > { %2933 = vperm.xlu1 %6778, %v9129_v49  }
 0x19c   : > { %2963 = vperm.xlu0 %6777, %v9159_v5  }
 0x19d   : > { %2943 = vperm.xlu1 %6778, %v9168_v2  }
 0x1a0   : > { %2993 = vperm.xlu0 %6777, %v9176_v20  }
 0x1a1   : > { %2973 = vperm.xlu1 %6778, %v9180_v3  }
 0x1a4   : > { %3003 = vperm.xlu0 %6777, %v2486_v39   ;;  %v9256_v39 = vld [vmem:[%s11483_s5] ss:$0 sm:$0xff] }
 0x1a5   : > { %2983 = vperm.xlu1 %6778, %v2482_v56   ;;  %v2618_v21 = vpop.permute.xlu0 %2617 }
 0x1a6   : > { %v2638_v30 = vpop.permute.xlu1 %2637  ;;  %v2775_v25 = vmul.f32 %v2618_v21, %v1647_v51  ;;  %v9270_v51 = vsub.s32 0, %v3169_v41 }
 0x1a8   : > { %v2814_v6 = vadd.f32 %v9242_v11, %v2775_v25 }
 0x1a9   : > { %v2648_v57 = vpop.permute.xlu0 %2647 }
 0x1aa   : > { %v2628_v54 = vpop.permute.xlu1 %2627 }
 0x1ab   : > { %v2777_v23 = vmul.f32 %v9190_v7, %v2628_v54 }
 0x1ad   : > { %v6664_v46 = vpop.f32.mrb[4].mxu0  ;;  %v9225_v17 = vpop.permute.xlu0 %2677 }
 0x1ae   : > { %v9227_v49 = vpop.permute.xlu1 %2657  ;;  %v1663_v4 = vpop.f32.mrb[5].mxu0  ;;  %v2781_v19 = vmul.f32 %v6664_v46, %v2648_v57 }
 0x1af   : > { %v9229_v38 = vpop.f32.mrb[6].mxu0  ;;  %v2779_v42 = vmul.f32 %v2638_v30, %v1663_v4  ;;  %v2816_v4 = vadd.f32 %v9242_v11, %v2777_v23 }
 0x1b0   : > { %v9231_v5 = vpop.f32.mrb[7].mxu0  ;;  %v2820_v57 = vadd.f32 %v9242_v11, %v2781_v19 }
 0x1b1   : > { %v9233_v2 = vpop.permute.xlu0 %2687  ;;  %v2818_v0 = vadd.f32 %v9242_v11, %v2779_v42 }
 0x1b2   : > { %v9235_v20 = vpop.permute.xlu1 %2667 }
 0x1b5   : > { %v9237_v3 = vpop.permute.xlu0 %2642 }
 0x1b6   : > { %v9244_v53 = vpop.permute.xlu1 %2622 }
 0x1b9   : > { %v2869_v55 = vpop.permute.xlu0 %2868 }
 0x1ba   : > { %v2849_v43 = vpop.permute.xlu1 %2848  ;;  %v3010_v60 = vmul.f32 %v2869_v55, %v2818_v0 }
 0x1bb   : > { %v3006_v31 = vmul.f32 %v2849_v43, %v2814_v6  ;;  %v9316_v6 = vsub.s32 1, %v3169_v41 }
 0x1bc   : > { %v3049_v56 = vmul.f32 %v9250_v28, %v3010_v60 }
 0x1bd   : > { %v3045_v32 = vmul.f32 %v9250_v28, %v3006_v31  ;;  %v9260_v44 = vpop.permute.xlu0 %2652 }
 0x1be   : > { %v3088_v1 = vadd.f32 %v9256_v39, %v3049_v56  ;;  %v9265_v27 = vpop.permute.xlu1 %2632 }
 0x1bf   : > { %v3084_v37 = vadd.f32 %v9256_v39, %v3045_v32 }
 0x1c0   : > { %v3120_v22 = vmax.f32 %v3088_v1, 0.0 }
 0x1c1   : > { %v3116_v14 = vmax.f32 %v3084_v37, 0.0  ;;  %v9268_v24 = vpop.permute.xlu0 %2682 }
 0x1c2   : > { %v3198_v50 = vcombine.high %v3120_v22, %v3120_v22  ;;  %v9273_v34 = vrot.slane %v3120_v22, %v9262_v35  ;;  %v9275_v10 = vpop.permute.xlu1 %2662 }
 0x1c3   : > { %v3164_v18 = vcombine.high %v3116_v14, %v3116_v14  ;;  %v3171_v12 = vrot.slane %v3116_v14, %v9262_v35 }
 0x1c4   : > { %v9279_v8 = vrot.slane %v3198_v50, %v9262_v35  ;;  %v3213_v45 = vcombine.high %v9273_v34, %v9273_v34  ;;  %v3759_v9 = vrot.slane %v9273_v34, %v9270_v51 }
 0x1c5   : > { %v9285_v15 = vrot.slane %v3164_v18, %v9262_v35  ;;  %v3179_v26 = vcombine.high %v3171_v12, %v3171_v12  ;;  %v2879_v47 = vpop.permute.xlu0 %2878  ;;  %v3727_v58 = vrot.slane %v3171_v12, %v9270_v51  ;;  %v4054_v18 = vrot.slane %v3171_v12, %v9316_v6 }
 0x1c6   : > { %v9289_v33 = vcombine.high %v9279_v8, %v9279_v8  ;;  %v3763_v61 = vrot.slane %v3213_v45, %v9270_v51  ;;  %v3767_v62 = vrot.slane %v9279_v8, %v9270_v51  ;;  %v2859_v48 = vpop.permute.xlu1 %2858  ;;  %v3012_v0 = vmul.f32 %v2879_v47, %v2820_v57 }
 0x1c7   : > { %v9298_v7 = vcombine.high %v9285_v15, %v9285_v15  ;;  %v3731_v59 = vrot.slane %v3179_v26, %v9270_v51  ;;  %v3735_v16 = vrot.slane %v9285_v15, %v9270_v51  ;;  %v3008_v40 = vmul.f32 %v2859_v48, %v2816_v4 }
 0x1c8   : > { %v3771_v21 = vrot.slane %v9289_v33, %v9270_v51  ;;  %v3994_v30 = vsel %vm3980_vm13, %v3763_v61, %v3759_v9  ;;  %v3051_v60 = vmul.f32 %v9250_v28, %v3012_v0  ;;  %v4058_v32 = vrot.slane %v3179_v26, %v9316_v6 }
 0x1c9   : > { %v3739_v54 = vrot.slane %v9298_v7, %v9270_v51  ;;  %v3981_v46 = vsel %vm3980_vm13, %v3731_v59, %v3727_v58  ;;  %v3995_v29 = vsel %vm3982_vm14, %v3767_v62, %v3994_v30  ;;  %v3047_v43 = vmul.f32 %v9250_v28, %v3008_v40 }
 0x1ca   : > { %v9312_v42 = vpop.permute.xlu0 %2908  ;;  %v3983_v25 = vsel %vm3982_vm14, %v3735_v16, %v3981_v46  ;;  %v9322_v36 = vsel %vm3984_vm15, %v3771_v21, %v3995_v29  ;;  %v4090_v41 = vrot.slane %v3213_v45, %v9316_v6  ;;  %v3090_v14 = vadd.f32 %v9256_v39, %v3051_v60 }
 0x1cb   : > { %v2889_v63 = vpop.permute.xlu1 %2888  ;;  %v9319_v55 = vsel %vm3984_vm15, %v3739_v54, %v3983_v25  ;;  %11736 = vst [vmem:[#allocation27_spill] sm:$0xff] %v9322_v36  ;;  %v3086_v22 = vadd.f32 %v9256_v39, %v3047_v43  ;;  %v2780_v9 = vmul.f32 %v9237_v3, %v9231_v5  ;;  %v4086_v26 = vrot.slane %v9273_v34, %v9316_v6 }
 0x1cc   : > { %11735 = vst [vmem:[#allocation21_spill] sm:$0xff] %v9319_v55  ;;  %v3122_v45 = vmax.f32 %v3090_v14, 0.0  ;;  %v2776_v48 = vmul.f32 %v9244_v53, %v9202_v13  ;;  %v4062_v12 = vrot.slane %v9285_v15, %v9316_v6  ;;  %v2778_v13 = vmul.f32 %v9198_v52, %v9265_v27 }
 0x1cd   : > { %v6668_v31 = vpop.f32.mrb[8].mxu0  ;;  %v3118_v61 = vmax.f32 %v3086_v22, 0.0  ;;  %v4314_v5 = vsel %vm3980_vm13, %v4090_v41, %v4086_v26  ;;  %v2782_v53 = vmul.f32 %v9229_v38, %v9260_v44  ;;  %v4066_v16 = vrot.slane %v9298_v7, %v9316_v6 }
 0x1ce   : > { %v9326_v56 = vpop.permute.xlu0 %2692  ;;  %v1679_v37 = vpop.f32.mrb[9].mxu0  ;;  %v2785_v23 = vmul.f32 %v6668_v31, %v9235_v20  ;;  %v4307_v20 = vsel %vm3980_vm13, %v4058_v32, %v4054_v18  ;;  %v9353_v59 = vrot.slane %v3122_v45, %v9262_v35  ;;  %v4098_v21 = vrot.slane %v9289_v33, %v9316_v6 }
 0x1cf   : > { %v2673_v1 = vpop.permute.xlu1 %2672  ;;  %v6669_v50 = vpop.f32.mrb[10].mxu0  ;;  %v2783_v19 = vmul.f32 %v9227_v49, %v1679_v37  ;;  %v4094_v49 = vrot.slane %v9279_v8, %v9316_v6  ;;  %v3452_v3 = vcombine.high %v3118_v61, %v3118_v61  ;;  %v9350_v34 = vrot.slane %v3118_v61, %v9262_v35 }
 0x1d0   : > { %v1682_v47 = vpop.f32.mrb[11].mxu0  ;;  %v2824_v8 = vadd.f32 %v9242_v11, %v2785_v23  ;;  %v2786_v30 = vmul.f32 %v6669_v50, %v2673_v1  ;;  %v4308_v46 = vsel %vm3982_vm14, %v4062_v12, %v4307_v20  ;;  %v3486_v27 = vcombine.high %v3122_v45, %v3122_v45 }
 0x1d1   : > { %v2822_v15 = vadd.f32 %v9242_v11, %v2783_v19  ;;  %v2784_v57 = vmul.f32 %v9275_v10, %v1682_v47  ;;  %v4315_v52 = vsel %vm3982_vm14, %v4094_v49, %v4314_v5  ;;  %v2819_v44 = vadd.f32 %v9242_v11, %v2780_v9 }
 0x1d2   : > { %v9370_v4 = vrot.slane %v3452_v3, %v9262_v35  ;;  %v3467_v7 = vcombine.high %v9350_v34, %v9350_v34  ;;  %v3501_v33 = vcombine.high %v9353_v59, %v9353_v59  ;;  %v2815_v10 = vadd.f32 %v9242_v11, %v2776_v48 }
 0x1d3   : > { %v9339_v62 = vpop.permute.xlu0 %2918  ;;  %v2899_v58 = vpop.permute.xlu1 %2898  ;;  %v3014_v25 = vmul.f32 %v2889_v63, %v2822_v15  ;;  %v2817_v40 = vadd.f32 %v9242_v11, %v2778_v13  ;;  %v2821_v0 = vadd.f32 %v9242_v11, %v2782_v53  ;;  %v2823_v60 = vadd.f32 %v9242_v11, %v2784_v57 }
 0x1d4   : > { %v3016_v29 = vmul.f32 %v2899_v58, %v2824_v8  ;;  %v9381_v31 = vadd.f32 %v9242_v11, %v2786_v30  ;;  %v9384_v32 = vsel %vm3984_vm15, %v4066_v16, %v4308_v46  ;;  %v9387_v1 = vsel %vm3984_vm15, %v4098_v21, %v4315_v52 }
 0x1d5   : > { %v4390_v63 = vrot.slane %v9350_v34, %v9270_v51  ;;  %v4726_v37 = vrot.slane %v9350_v34, %v9316_v6  ;;  %v9394_v41 = vrot.slane %v3486_v27, %v9262_v35  ;;  %v4422_v22 = vrot.slane %v9353_v59, %v9270_v51 }
 0x1d6   : > { %v9400_v50 = vcombine.high %v9370_v4, %v9370_v4  ;;  %v4394_v18 = vrot.slane %v3467_v7, %v9270_v51  ;;  %v4426_v23 = vrot.slane %v3501_v33, %v9270_v51  ;;  %v4758_v19 = vrot.slane %v9353_v59, %v9316_v6 }
 0x1d7   : > { %v2874_v54 = vpop.permute.xlu0 %2873  ;;  %v3053_v47 = vmul.f32 %v9250_v28, %v3014_v25  ;;  %v3055_v9 = vmul.f32 %v9250_v28, %v3016_v29  ;;  %v4398_v45 = vrot.slane %v9370_v4, %v9270_v51  ;;  %v4730_v48 = vrot.slane %v3467_v7, %v9316_v6 }
 0x1d8   : > { %v2854_v38 = vpop.permute.xlu1 %2853  ;;  %v3011_v61 = vmul.f32 %v2874_v54, %v2819_v44  ;;  %v4734_v12 = vrot.slane %v9370_v4, %v9316_v6  ;;  %v9417_v58 = vcombine.high %v9394_v41, %v9394_v41  ;;  %v4402_v13 = vrot.slane %v9400_v50, %v9270_v51 }
 0x1d9   : > { %v3007_v26 = vmul.f32 %v2854_v38, %v2815_v10  ;;  %v3092_v5 = vadd.f32 %v9256_v39, %v3053_v47  ;;  %v3094_v3 = vadd.f32 %v9256_v39, %v3055_v9  ;;  %v4643_v53 = vsel %vm3980_vm13, %v4394_v18, %v4390_v63 }
 0x1da   : > { %v4430_v15 = vrot.slane %v9394_v41, %v9270_v51  ;;  %v4650_v8 = vsel %vm3980_vm13, %v4426_v23, %v4422_v22  ;;  %v4762_v16 = vrot.slane %v3501_v33, %v9316_v6  ;;  %v3050_v57 = vmul.f32 %v9250_v28, %v3011_v61 }
 0x1db   : > { %v2884_v43 = vpop.permute.xlu0 %2883  ;;  %v3046_v34 = vmul.f32 %v9250_v28, %v3007_v26  ;;  %v3124_v21 = vmax.f32 %v3092_v5, 0.0  ;;  %v3126_v30 = vmax.f32 %v3094_v3, 0.0  ;;  %v4979_v46 = vsel %vm3980_vm13, %v4730_v48, %v4726_v37 }
 0x1dc   : > { %v2864_v14 = vpop.permute.xlu1 %2863  ;;  %v3013_v27 = vmul.f32 %v2884_v43, %v2821_v0  ;;  %v4644_v25 = vsel %vm3982_vm14, %v4398_v45, %v4643_v53  ;;  %v4434_v29 = vrot.slane %v9417_v58, %v9270_v51  ;;  %v4766_v43 = vrot.slane %v9394_v41, %v9316_v6 }
 0x1dd   : > { %v3009_v20 = vmul.f32 %v2864_v14, %v2817_v40  ;;  %v3232_v44 = vcombine.high %v3124_v21, %v3124_v21  ;;  %v9437_v4 = vrot.slane %v3124_v21, %v9262_v35  ;;  %v3527_v7 = vrot.slane %v3126_v30, %v9262_v35 }
 0x1de   : > { %v3085_v33 = vadd.f32 %v9256_v39, %v3046_v34  ;;  %v4651_v40 = vsel %vm3982_vm14, %v4430_v15, %v4650_v8  ;;  %v3520_v0 = vcombine.high %v3126_v30, %v3126_v30  ;;  %v4986_v63 = vsel %vm3980_vm13, %v4762_v16, %v4758_v19 }
 0x1df   : > { %v9413_v49 = vpop.permute.xlu0 %2913  ;;  %v3048_v52 = vmul.f32 %v9250_v28, %v3009_v20  ;;  %v3247_v37 = vcombine.high %v9437_v4, %v9437_v4  ;;  %v3089_v22 = vadd.f32 %v9256_v39, %v3050_v57  ;;  %v3535_v14 = vcombine.high %v3527_v7, %v3527_v7 }
 0x1e0   : > { %v2894_v59 = vpop.permute.xlu1 %2893  ;;  %v3052_v23 = vmul.f32 %v9250_v28, %v3013_v27  ;;  %v9456_v9 = vrot.slane %v3232_v44, %v9262_v35  ;;  %v3791_v26 = vrot.slane %v9437_v4, %v9270_v51  ;;  %v3117_v19 = vmax.f32 %v3085_v33, 0.0 }
 0x1e1   : > { %v3087_v18 = vadd.f32 %v9256_v39, %v3048_v52  ;;  %v3015_v47 = vmul.f32 %v2894_v59, %v2823_v60  ;;  %v3795_v41 = vrot.slane %v3247_v37, %v9270_v51  ;;  %v9464_v45 = vsel %vm3982_vm14, %v4734_v12, %v4979_v46 }
 0x1e2   : > { %v3534_v20 = vrot.slane %v3520_v0, %v9262_v35  ;;  %v9472_v5 = vsel %vm3984_vm15, %v4402_v13, %v4644_v25  ;;  %v9475_v3 = vsel %vm3982_vm14, %v4766_v43, %v4986_v63  ;;  %v4458_v59 = vrot.slane %v3535_v14, %v9270_v51 }
 0x1e3   : > { %v9434_v38 = vpop.permute.xlu0 %2923  ;;  %v9478_v34 = vsel %vm3980_vm13, %v3795_v41, %v3791_v26  ;;  %v3121_v12 = vmax.f32 %v3089_v22, 0.0  ;;  %v3119_v53 = vmax.f32 %v3087_v18, 0.0  ;;  %v3091_v15 = vadd.f32 %v9256_v39, %v3052_v23 }
 0x1e4   : > { %v9441_v10 = vpop.permute.xlu1 %2903  ;;  %11738 = vst [vmem:[#allocation18_spill] sm:$0xff] %v9478_v34  ;;  %v3054_v8 = vmul.f32 %v9250_v28, %v3015_v47  ;;  %v9484_v16 = vsel %vm3984_vm15, %v4434_v29, %v4651_v40  ;;  %v9488_v13 = vcombine.high %v9456_v9, %v9456_v9  ;;  %v4454_v21 = vrot.slane %v3527_v7, %v9270_v51 }
 0x1e5   : > { %v4794_v30 = vrot.slane %v3535_v14, %v9316_v6  ;;  %v3181_v57 = vcombine.high %v3117_v19, %v3117_v19  ;;  %v4122_v52 = vrot.slane %v3247_v37, %v9316_v6  ;;  %v9495_v27 = vcombine.high %v3534_v20, %v3534_v20 }
 0x1e6   : > { %v4462_v44 = vrot.slane %v3534_v20, %v9270_v51  ;;  %v9499_v33 = vrot.slane %v3117_v19, %v9262_v35  ;;  %v4657_v25 = vsel %vm3980_vm13, %v4458_v59, %v4454_v21  ;;  %v4790_v29 = vrot.slane %v3527_v7, %v9316_v6 }
 0x1e7   : > { %v9469_v60 = vpop.permute.xlu0 %2717  ;;  %v3215_v40 = vcombine.high %v3121_v12, %v3121_v12  ;;  %v9504_v0 = vrot.slane %v3121_v12, %v9262_v35  ;;  %v4118_v43 = vrot.slane %v9437_v4, %v9316_v6  ;;  %v4798_v63 = vrot.slane %v3534_v20, %v9316_v6 }
 0x1e8   : > { %v9461_v61 = vpop.permute.xlu1 %2697  ;;  %11737 = vst [vmem:[#allocation22_spill] sm:$0xff] %v9469_v60  ;;  %11739 = vst [vmem:[#allocation28_spill] sm:$0xff] %v9499_v33  ;;  %v9510_v37 = vrot.slane %v3181_v57, %v9262_v35  ;;  %v3469_v22 = vcombine.high %v3119_v53, %v3119_v53  ;;  %v4993_v47 = vsel %vm3980_vm13, %v4794_v30, %v4790_v29  ;;  %v3123_v26 = vmax.f32 %v3091_v15, 0.0 }
 0x1e9   : > { %11740 = vst [vmem:[#allocation24_spill] sm:$0xff] %v9504_v0  ;;  %v9524_v19 = vsel %vm3980_vm13, %v4122_v52, %v4118_v43  ;;  %v9529_v59 = vsel %vm3982_vm14, %v4462_v44, %v4657_v25  ;;  %v9533_v12 = vcombine.high %v9499_v33, %v9499_v33  ;;  %v9540_v30 = vrot.slane %v3215_v40, %v9262_v35 }
 0x1ea   : > { %11741 = vst [vmem:[#allocation29_spill] sm:$0xff] %v9510_v37  ;;  %v9544_v57 = vcombine.high %v9504_v0, %v9504_v0  ;;  %v9547_v52 = vrot.slane %v3119_v53, %v9262_v35  ;;  %v9552_v25 = vsel %vm3982_vm14, %v4798_v63, %v4993_v47  ;;  %v9556_v29 = vcombine.high %v9510_v37, %v9510_v37 }
 0x1eb   : > { %v9512_v14 = vpop.permute.xlu0 %2727  ;;  %11744 = vst [vmem:[#allocation20_spill] sm:$0xff] %v9533_v12  ;;  %11745 = vst [vmem:[#allocation14_spill] sm:$0xff] %v9540_v30  ;;  %v4070_v40 = vrot.slane %v9499_v33, %v9316_v6  ;;  %v9561_v43 = vrot.slane %v3469_v22, %v9262_v35  ;;  %v3503_v15 = vcombine.high %v3123_v26, %v3123_v26 }
 0x1ec   : > { %v9492_v46 = vpop.permute.xlu1 %2707  ;;  %11742 = vst [vmem:[#allocation26_spill] sm:$0xff] %v9512_v14  ;;  %11746 = vst [vmem:[#allocation19_spill] sm:$0xff] %v9544_v57  ;;  %v9565_v53 = vcombine.high %v9547_v52, %v9547_v52  ;;  %v3093_v23 = vadd.f32 %v9256_v39, %v3054_v8  ;;  %v3017_v63 = vmul.f32 %v9441_v10, %v9381_v31 }
 0x1ed   : > { %v6672_v18 = vpop.f32.mrb[12].mxu0  ;;  %11747 = vst [vmem:[#allocation13_spill] sm:$0xff] %v9556_v29  ;;  %v4074_v7 = vrot.slane %v9533_v12, %v9316_v6  ;;  %v4078_v20 = vrot.slane %v9510_v37, %v9316_v6  ;;  %v4102_v22 = vrot.slane %v9504_v0, %v9316_v6  ;;  %v9579_v48 = vrot.slane %v3123_v26, %v9262_v35 }
 0x1ee   : > { %v9521_v41 = vpop.f32.mrb[13].mxu0  ;;  %v9585_v8 = vcombine.high %v9540_v30, %v9540_v30  ;;  %v4106_v31 = vrot.slane %v9544_v57, %v9316_v6  ;;  %v4110_v10 = vrot.slane %v9540_v30, %v9316_v6  ;;  %v4406_v34 = vrot.slane %v9547_v52, %v9270_v51 }
 0x1ef   : > { %v9535_v21 = vpop.f32.mrb[14].mxu0  ;;  %v9581_v54 = vpop.permute.xlu0 %2757  ;;  %v9595_v36 = vcombine.high %v9561_v43, %v9561_v43  ;;  %v4414_v26 = vrot.slane %v9561_v43, %v9270_v51  ;;  %v4410_v57 = vrot.slane %v9565_v53, %v9270_v51  ;;  %v9606_v30 = vrot.slane %v3503_v15, %v9262_v35 }
 0x1f0   : > { %v9519_v4 = vpop.permute.xlu1 %2737  ;;  %v9549_v44 = vpop.f32.mrb[15].mxu0  ;;  %11749 = vst [vmem:[#allocation23_spill] sm:$0xff] %v9581_v54  ;;  %11750 = vst [vmem:[#allocation12_spill] sm:$0xff] %v9585_v8  ;;  %v3125_v0 = vmax.f32 %v3093_v23, 0.0  ;;  %v9613_v60 = vcombine.high %v9579_v48, %v9579_v48  ;;  %v4082_v54 = vrot.slane %v9556_v29, %v9316_v6  ;;  %v4310_v55 = vsel %vm3986_vm1, %v4070_v40, %v9384_v32 }
 0x1f1   : > { %11743 = vst [vmem:[#allocation15_spill] sm:$0xff] %v9519_v4  ;;  %v3056_v4 = vmul.f32 %v9250_v28, %v3017_v63  ;;  %v4317_v14 = vsel %vm3986_vm1, %v4102_v22, %v9387_v1  ;;  %v4114_v63 = vrot.slane %v9585_v8, %v9316_v6  ;;  %v4311_v37 = vsel %vm3988_vm2, %v4074_v7, %v4310_v55 }
 0x1f2   : > { %v3249_v15 = vcombine.high %v3125_v0, %v3125_v0  ;;  %v9626_v12 = vrot.slane %v3125_v0, %v9262_v35  ;;  %v4312_v33 = vsel %vm3990_vm4, %v4078_v20, %v4311_v37  ;;  %v4318_v29 = vsel %vm3988_vm2, %v4106_v31, %v4317_v14 }
 0x1f3   : > { %v3095_v23 = vadd.f32 %v9256_v39, %v3056_v4  ;;  %v2789_v32 = vmul.f32 %v6672_v18, %v9233_v2  ;;  %v9631_v40 = vpop.permute.xlu0 %2767  ;;  %v9637_v4 = vcombine.high %v9606_v30, %v9606_v30  ;;  %v4438_v55 = vrot.slane %v9579_v48, %v9270_v51 }
 0x1f4   : > { %v9570_v47 = vpop.permute.xlu1 %2747  ;;  %11751 = vst [vmem:[#allocation17_spill] sm:$0xff] %v9631_v40  ;;  %v9642_v0 = vrot.slane %v3249_v15, %v9262_v35  ;;  %v4313_v2 = vsel %vm3992_vm5, %v4082_v54, %v4312_v33  ;;  %v4319_v18 = vsel %vm3990_vm4, %v4110_v10, %v4318_v29  ;;  %v4442_v20 = vrot.slane %v9613_v60, %v9270_v51 }
 0x1f5   : > { %11748 = vst [vmem:[#allocation16_spill] sm:$0xff] %v9570_v47  ;;  %v3127_v14 = vmax.f32 %v3095_v23, 0.0  ;;  %v2828_v7 = vadd.f32 %v9242_v11, %v2789_v32  ;;  %v4446_v22 = vrot.slane %v9606_v30, %v9270_v51  ;;  %v9659_v23 = vcombine.high %v9626_v12, %v9626_v12 }
 0x1f6   : > { %v4320_v29 = vsel %vm3992_vm5, %v4114_v63, %v4319_v18  ;;  %v4646_v31 = vsel %vm3986_vm1, %v4406_v34, %v9472_v5  ;;  %v9674_v8 = vcombine.high %v9642_v0, %v9642_v0  ;;  %v4418_v63 = vrot.slane %v9595_v36, %v9270_v51 }
 0x1f7   : > { %v3537_v54 = vcombine.high %v3127_v14, %v3127_v14  ;;  %v9662_v33 = vrot.slane %v3127_v14, %v9262_v35  ;;  %v6779_v32 = vpack.i.bf16 %v4320_v29, %v4313_v2  ;;  %v3020_v1 = vmul.f32 %v9339_v62, %v2828_v7  ;;  %v9682_v18 = vpop.permute.xlu0 %2722 }
 0x1f8   : > { %v9609_v47 = vpop.permute.xlu1 %2702  ;;  %11752 = vst [vmem:[#allocation25_spill] sm:$0xff] %v9674_v8  ;;  %v4450_v2 = vrot.slane %v9637_v4, %v9270_v51  ;;  %11753 = vst [vmem:[#allocation30_spill] sm:$0xff] %v9682_v18  ;;  %v4647_v5 = vsel %vm3988_vm2, %v4410_v57, %v4646_v31  ;;  %v4653_v34 = vsel %vm3986_vm1, %v4438_v55, %v9484_v16 }
 0x1f9   : > { %6780 = vrot.lane.b32.xlu1 %v6779_v32, %s7190_s18  ;;  %v3059_v62 = vmul.f32 %v9250_v28, %v3020_v1  ;;  %v2787_v7 = vmul.f32 %v9225_v17, %v9521_v41  ;;  %v9696_v10 = vrot.slane %v3537_v54, %v9262_v35  ;;  %v9700_v1 = vcombine.high %v9662_v33, %v9662_v33 }
 0x1fa   : > { %v4648_v17 = vsel %vm3990_vm4, %v4414_v26, %v4647_v5  ;;  %v4654_v41 = vsel %vm3988_vm2, %v4442_v20, %v4653_v34  ;;  %v2790_v32 = vmul.f32 %v9535_v21, %v9326_v56  ;;  %v2788_v26 = vmul.f32 %v9268_v24, %v9549_v44 }
 0x1fb   : > { %v3098_v16 = vadd.f32 %v9256_v39, %v3059_v62  ;;  %v4649_v55 = vsel %vm3992_vm5, %v4418_v63, %v4648_v17  ;;  %v4655_v31 = vsel %vm3990_vm4, %v4446_v22, %v4654_v41  ;;  %v2826_v54 = vadd.f32 %v9242_v11, %v2787_v7  ;;  %v9725_v21 = vpop.permute.xlu0 %2948 }
 0x1fc   : > { %v9644_v37 = vpop.permute.xlu1 %2928  ;;  %v4656_v57 = vsel %vm3992_vm5, %v4450_v2, %v4655_v31  ;;  %v9721_v20 = vcombine.high %v9696_v10, %v9696_v10  ;;  %v2829_v56 = vadd.f32 %v9242_v11, %v2790_v32  ;;  %11755 = vst [vmem:[#allocation32_spill] sm:$0xff] %v9725_v21  ;;  %v2827_v2 = vadd.f32 %v9242_v11, %v2788_v26 }
 0x1fd   : > { %v3130_v29 = vmax.f32 %v3098_v16, 0.0  ;;  %v6784_v22 = vpack.i.bf16 %v4656_v57, %v4649_v55  ;;  %v3018_v63 = vmul.f32 %v9312_v42, %v2826_v54  ;;  %v11756_v24 = vrot.slane %v9400_v50, %v9316_v6 }
 0x1fe   : > { %v3021_v57 = vmul.f32 %v9434_v38, %v2829_v56  ;;  %v11758_v31 = vrot.slane %v9565_v53, %v9316_v6  ;;  %v11776_v18 = vrot.slane %v9700_v1, %v9270_v51 }
 0x1ff   : > { %v3554_v5 = vcombine.high %v3130_v29, %v3130_v29  ;;  %v9728_v34 = vrot.slane %v3130_v29, %v9262_v35  ;;  %v4981_v44 = vsel %vm3984_vm15, %v11756_v24, %v9464_v45  ;;  %6785 = vrot.lane.b32.xlu1 %v6784_v22, %s7191_s29  ;;  %v3057_v42 = vmul.f32 %v9250_v28, %v3018_v63  ;;  %v9779_v24 = vpop.permute.xlu0 %2732 }
 0x200   : > { %v9670_v15 = vpop.permute.xlu1 %2712  ;;  %v11757_v29 = vrot.slane %v9547_v52, %v9316_v6  ;;  %v3060_v55 = vmul.f32 %v9250_v28, %v3021_v57  ;;  %v3019_v52 = vmul.f32 %v9413_v49, %v2827_v2  ;;  %v4754_v22 = vrot.slane %v9595_v36, %v9316_v6  ;;  %11759 = vst [vmem:[#allocation33_spill] sm:$0xff] %v9779_v24 }
 0x201   : > { %v9750_v17 = vrot.slane %v3554_v5, %v9262_v35  ;;  %v9754_v41 = vcombine.high %v9728_v34, %v9728_v34  ;;  %v3096_v38 = vadd.f32 %v9256_v39, %v3057_v42  ;;  %v4786_v63 = vrot.slane %v9637_v4, %v9316_v6 }
 0x202   : > { %v4982_v16 = vsel %vm3986_vm1, %v11757_v29, %v4981_v44  ;;  %v3099_v5 = vadd.f32 %v9256_v39, %v3060_v55  ;;  %v3058_v2 = vmul.f32 %v9250_v28, %v3019_v52  ;;  %v4486_v44 = vrot.slane %v9728_v34, %v9270_v51 }
 0x203   : > { %v4983_v54 = vsel %vm3988_vm2, %v11758_v31, %v4982_v16  ;;  %v9767_v26 = vcombine.high %v9750_v17, %v9750_v17  ;;  %v4490_v49 = vrot.slane %v9754_v41, %v9270_v51  ;;  %v3128_v53 = vmax.f32 %v3096_v38, 0.0  ;;  %v9831_v50 = vpop.permute.xlu0 %2762 }
 0x204   : > { %v9717_v62 = vpop.permute.xlu1 %2742  ;;  %v4494_v36 = vrot.slane %v9750_v17, %v9270_v51  ;;  %v11760_v42 = vrot.slane %v9417_v58, %v9316_v6  ;;  %v3131_v38 = vmax.f32 %v3099_v5, 0.0  ;;  %v3097_v55 = vadd.f32 %v9256_v39, %v3058_v2  ;;  %11766 = vst [vmem:[#allocation37_spill] sm:$0xff] %v9831_v50 }
 0x205   : > { %11754 = vst [vmem:[#allocation31_spill] sm:$0xff] %v9717_v62  ;;  %v3266_v29 = vcombine.high %v3128_v53, %v3128_v53  ;;  %v3273_v16 = vrot.slane %v3128_v53, %v9262_v35  ;;  %v11761_v45 = vrot.slane %v9561_v43, %v9316_v6  ;;  %v4498_v2 = vrot.slane %v9767_v26, %v9270_v51 }
 0x206   : > { %v4988_v57 = vsel %vm3984_vm15, %v11760_v42, %v9475_v3  ;;  %v11762_v3 = vrot.slane %v9579_v48, %v9316_v6  ;;  %v4664_v42 = vsel %vm3980_vm13, %v4490_v49, %v4486_v44  ;;  %v3571_v43 = vcombine.high %v3131_v38, %v3131_v38 }
 0x207   : > { %v4984_v58 = vsel %vm3990_vm4, %v11761_v45, %v4983_v54  ;;  %v9812_v14 = vrot.slane %v3266_v29, %v9262_v35  ;;  %v3281_v32 = vcombine.high %v3273_v16, %v3273_v16  ;;  %v9817_v45 = vrot.slane %v3131_v38, %v9262_v35 }
 0x208   : > { %v9773_v56 = vpop.permute.xlu1 %2938  ;;  %v4989_v53 = vsel %vm3986_vm1, %v11762_v3, %v4988_v57  ;;  %v3129_v48 = vmax.f32 %v3097_v55, 0.0  ;;  %v4985_v54 = vsel %vm3992_vm5, %v4754_v22, %v4984_v58  ;;  %v3823_v44 = vrot.slane %v3273_v16, %v9270_v51 }
 0x209   : > { %11763 = vst [vmem:[#allocation34_spill] sm:$0xff] %v9812_v14  ;;  %v9826_v49 = vcombine.high %v9812_v14, %v9812_v14  ;;  %v3827_v29 = vrot.slane %v3281_v32, %v9270_v51  ;;  %v4154_v4 = vrot.slane %v3281_v32, %v9316_v6  ;;  %v9836_v22 = vrot.slane %v3571_v43, %v9262_v35 }
 0x20a   : > { %v9840_v55 = vcombine.high %v9817_v45, %v9817_v45  ;;  %v4482_v58 = vrot.slane %v9721_v20, %v9270_v51  ;;  %v4150_v32 = vrot.slane %v3273_v16, %v9316_v6  ;;  %v4158_v50 = vrot.slane %v9812_v14, %v9316_v6 }
 0x20b   : > { %11765 = vst [vmem:[#allocation36_spill] sm:$0xff] %v9826_v49  ;;  %v9845_v7 = vsel %vm3980_vm13, %v3827_v29, %v3823_v44  ;;  %v11768_v43 = vrot.slane %v9495_v27, %v9270_v51  ;;  %v4502_v40 = vrot.slane %v9817_v45, %v9270_v51  ;;  %v9858_v62 = vrot.slane %v3129_v48, %v9262_v35 }
 0x20c   : > { %v9820_v57 = vpop.permute.xlu1 %2968  ;;  %11767 = vst [vmem:[#allocation38_spill] sm:$0xff] %v9845_v7  ;;  %v11770_v44 = vrot.slane %v9613_v60, %v9316_v6  ;;  %v4162_v29 = vrot.slane %v9826_v49, %v9316_v6  ;;  %v4328_v7 = vsel %vm3980_vm13, %v4154_v4, %v4150_v32  ;;  %v9873_v14 = vcombine.high %v9836_v22, %v9836_v22 }
 0x20d   : > { %v6676_v52 = vpop.f32.mrb[16].mxu0  ;;  %11764 = vst [vmem:[#allocation35_spill] sm:$0xff] %v9820_v57  ;;  %v4659_v38 = vsel %vm3984_vm15, %v11768_v43, %v9529_v59  ;;  %v3283_v57 = vcombine.high %v3129_v48, %v3129_v48  ;;  %11769 = vst [vmem:[#allocation39_spill] sm:$0xff] %v9858_v62  ;;  %v11771_v59 = vrot.slane %v9606_v30, %v9316_v6 }
 0x20e   : > { %v9806_v5 = vpop.f32.mrb[17].mxu0  ;;  %v4990_v16 = vsel %vm3988_vm2, %v11770_v44, %v4989_v53  ;;  %v9880_v60 = vcombine.high %v9858_v62, %v9858_v62  ;;  %v4506_v53 = vrot.slane %v9840_v55, %v9270_v51  ;;  %v4510_v4 = vrot.slane %v9836_v22, %v9270_v51 }
 0x20f   : > { %v9814_v31 = vpop.f32.mrb[18].mxu0  ;;  %v4991_v43 = vsel %vm3990_vm4, %v11771_v59, %v4990_v16  ;;  %v9876_v48 = vrot.slane %v3283_v57, %v9262_v35  ;;  %v4166_v32 = vrot.slane %v9858_v62, %v9316_v6  ;;  %v9891_v16 = vpop.permute.xlu0 %2958  ;;  %v11775_v57 = vrot.slane %v9662_v33, %v9270_v51 }
 0x210   : > { %v9822_v3 = vpop.f32.mrb[19].mxu0  ;;  %11773 = vst [vmem:[#allocation41_spill] sm:$0xff] %v9880_v60  ;;  %v9886_v30 = vpop.permute.xlu1 %2752  ;;  %v4992_v44 = vsel %vm3992_vm5, %v4786_v63, %v4991_v43  ;;  %v4665_v49 = vsel %vm3982_vm14, %v4494_v36, %v4664_v42  ;;  %v2793_v62 = vmul.f32 %v6676_v52, %v9492_v46  ;;  %v4514_v63 = vrot.slane %v9873_v14, %v9270_v51 }
 0x211   : > { %11772 = vst [vmem:[#allocation40_spill] sm:$0xff] %v9876_v48  ;;  %11774 = vst [vmem:[#allocation42_spill] sm:$0xff] %v9886_v30  ;;  %v4660_v59 = vsel %vm3986_vm1, %v11775_v57, %v4659_v38  ;;  %v6789_v21 = vpack.i.bf16 %v4992_v44, %v4985_v54  ;;  %v4666_v24 = vsel %vm3984_vm15, %v4498_v2, %v4665_v49 }
 0x212   : > { %v4661_v30 = vsel %vm3988_vm2, %v11776_v18, %v4660_v59  ;;  %v11777_v43 = vrot.slane %v9696_v10, %v9270_v51  ;;  %v4667_v36 = vsel %vm3986_vm1, %v4502_v40, %v4666_v24  ;;  %v9913_v42 = vcombine.high %v9876_v48, %v9876_v48  ;;  %v7017_v18 = vld [vmem:[%s11484_s6] sm:$0xff]  }
 0x213   : > { %6790 = vrot.lane.b32.xlu1 %v6789_v21, %s11626_s0  ;;  %v4668_v52 = vsel %vm3988_vm2, %v4506_v53, %v4667_v36  ;;  %v2832_v2 = vadd.f32 %v9242_v11, %v2793_v62  ;;  %v4146_v54 = vrot.slane %v9674_v8, %v9316_v6  ;;  %v4170_v24 = vrot.slane %v9880_v60, %v9316_v6 }
 0x214   : > { %v4662_v38 = vsel %vm3990_vm4, %v11777_v43, %v4661_v30  ;;  %11778 = vst [vmem:[#allocation43_spill] sm:$0xff] %v9913_v42  ;;  %v4669_v40 = vsel %vm3990_vm4, %v4510_v4, %v4668_v52  ;;  %v4174_v49 = vrot.slane %v9876_v48, %v9316_v6  ;;  %v11779_v21 = vrot.slane %v9456_v9, %v9316_v6  ;;  %v9941_v57 = vpop.permute.xlu1 %2978  ;;  %v9943_v43 = vpop.permute.xlu0 %2988 }
 0x215   : > { %v4663_v46 = vsel %vm3992_vm5, %v4482_v58, %v4662_v38  ;;  %6690 = vmatprep.subr.bf16.mxu1 %v7017_v18  ;;  %v4670_v62 = vsel %vm3992_vm5, %v4514_v63, %v4669_v40  ;;  %v3024_v53 = vmul.f32 %v9773_v56, %v2832_v2  ;;  %v11780_v4 = vrot.slane %v9488_v13, %v9316_v6 }
 0x216   : > { %v4322_v58 = vsel %vm3982_vm14, %v11779_v21, %v9524_v19  ;;  %v4329_v44 = vsel %vm3982_vm14, %v4158_v50, %v4328_v7  ;;  %6691 = vmatpush3.bf16.msra.mxu1 %v7017_v18  ;;  %v6794_v59 = vpack.i.bf16 %v4670_v62, %v4663_v46  ;;  %11781 = vst [vmem:[#allocation44_spill] sm:$0xff] %v9943_v43 }
 0x217   : > { %v4323_v30 = vsel %vm3984_vm15, %v11780_v4, %v4322_v58  ;;  %v11782_v19 = vrot.slane %v9626_v12, %v9316_v6  ;;  %v4330_v56 = vsel %vm3984_vm15, %v4162_v29, %v4329_v44  ;;  %v2791_v38 = vmul.f32 %v9461_v61, %v9806_v5 }
 0x218   : > { %v3063_v36 = vmul.f32 %v9250_v28, %v3024_v53  ;;  %v4178_v7 = vrot.slane %v9913_v42, %v9316_v6  ;;  %v11783_v50 = vrot.slane %v9659_v23, %v9316_v6  ;;  %v4331_v46 = vsel %vm3986_vm1, %v4166_v32, %v4330_v56  ;;  %6795 = vrot.lane.b32.xlu0 %v6794_v59, %s7191_s29  ;;  %v2934_v44 = vpop.permute.xlu1 %2933 }
 0x219   : > { %v4324_v63 = vsel %vm3986_vm1, %v11782_v19, %v4323_v30  ;;  %v11784_v29 = vrot.slane %v9642_v0, %v9316_v6  ;;  %v4332_v61 = vsel %vm3988_vm2, %v4170_v24, %v4331_v46  ;;  %v2830_v5 = vadd.f32 %v9242_v11, %v2791_v38 }
 0x21a   : > { %v4325_v18 = vsel %vm3988_vm2, %v11783_v50, %v4324_v63  ;;  %v2792_v2 = vmul.f32 %v9609_v47, %v9822_v3  ;;  %v11785_v40 = vrot.slane %v9728_v34, %v9316_v6  ;;  %v11786_v32 = vrot.slane %v9754_v41, %v9316_v6 }
 0x21b   : > { %v4326_v52 = vsel %vm3990_vm4, %v11784_v29, %v4325_v18  ;;  %v4838_v58 = vrot.slane %v9817_v45, %v9316_v6  ;;  %v3102_v62 = vadd.f32 %v9256_v39, %v3063_v36  ;;  %v4333_v24 = vsel %vm3990_vm4, %v4174_v49, %v4332_v61 }
 0x21c   : > { %v5000_v21 = vsel %vm3980_vm13, %v11786_v32, %v11785_v40  ;;  %v4327_v53 = vsel %vm3992_vm5, %v4146_v54, %v4326_v52  ;;  %v4334_v4 = vsel %vm3992_vm5, %v4178_v7, %v4333_v24  ;;  %v3022_v47 = vmul.f32 %v9644_v37, %v2830_v5  ;;  %v9992_v54 = vpop.permute.xlu0 %2772  ;;  %v7018_v52 = vld [vmem:[%s11484_s6 + $0x8] sm:$0xff]   ;;  %v11793_v32 = vld [vmem:[#allocation28_spill] sm:$0xff] }
 0x21d   : > { %v4818_v34 = vrot.slane %v9721_v20, %v9316_v6  ;;  %v3134_v3 = vmax.f32 %v3102_v62, 0.0  ;;  %v6799_v41 = vpack.i.bf16 %v4334_v4, %v4327_v53  ;;  %v4842_v30 = vrot.slane %v9840_v55, %v9316_v6  ;;  %6692 = vmatprep.subr.bf16.mxu1 %v7018_v52 }
 0x21e   : > { %v11787_v45 = vrot.slane %v9495_v27, %v9316_v6  ;;  %v3061_v59 = vmul.f32 %v9250_v28, %v3022_v47  ;;  %v11788_v37 = vrot.slane %v9662_v33, %v9316_v6  ;;  %v11789_v19 = vrot.slane %v9750_v17, %v9316_v6  ;;  %6693 = vmatpush3.bf16.msra.mxu1 %v7018_v52 }
 0x21f   : > { %v2831_v63 = vadd.f32 %v9242_v11, %v2792_v2  ;;  %v3588_v27 = vcombine.high %v3134_v3, %v3134_v3  ;;  %6800 = vrot.lane.b32.xlu0 %v6799_v41, %s7190_s18  ;;  %v11790_v56 = vrot.slane %v9700_v1, %v9316_v6  ;;  %v11791_v38 = vrot.slane %v9767_v26, %v9316_v6  ;;  %v11795_v41 = vld [vmem:[#allocation29_spill] sm:$0xff] }
 0x220   : > { %v4995_v49 = vsel %vm3984_vm15, %v11787_v45, %v9552_v25  ;;  %v5001_v55 = vsel %vm3982_vm14, %v11789_v19, %v5000_v21  ;;  %v10005_v25 = vrot.slane %v3134_v3, %v9262_v35  ;;  %v3100_v36 = vadd.f32 %v9256_v39, %v3061_v59  ;;  %v10049_v47 = vpop.permute.xlu0 %2998 }
 0x221   : > { %v4996_v20 = vsel %vm3986_vm1, %v11788_v37, %v4995_v49  ;;  %v5002_v17 = vsel %vm3984_vm15, %v11791_v38, %v5001_v55  ;;  %v11792_v7 = vrot.slane %v9696_v10, %v9316_v6  ;;  %v3023_v46 = vmul.f32 %v2934_v44, %v2831_v63  ;;  %v2944_v37 = vpop.permute.xlu1 %2943 }
 0x222   : > { %v4997_v33 = vsel %vm3988_vm2, %v11790_v56, %v4996_v20  ;;  %v5003_v18 = vsel %vm3986_vm1, %v4838_v58, %v5002_v17  ;;  %v10026_v29 = vcombine.high %v10005_v25, %v10005_v25  ;;  %v4846_v26 = vrot.slane %v9836_v22, %v9316_v6 }
 0x223   : > { %v4998_v50 = vsel %vm3990_vm4, %v11792_v7, %v4997_v33  ;;  %v10034_v10 = vrot.slane %v3588_v27, %v9262_v35  ;;  %v3132_v61 = vmax.f32 %v3100_v36, 0.0  ;;  %v5004_v2 = vsel %vm3988_vm2, %v4842_v30, %v5003_v18 }
 0x224   : > { %v4999_v5 = vsel %vm3992_vm5, %v4818_v34, %v4998_v50  ;;  %v2794_v22 = vmul.f32 %v9814_v31, %v9670_v15  ;;  %v3062_v58 = vmul.f32 %v9250_v28, %v3023_v46  ;;  %v4522_v62 = vrot.slane %v10026_v29, %v9270_v51  ;;  %v11794_v34 = vld [vmem:[#allocation20_spill] sm:$0xff] }
 0x225   : > { %v3300_v24 = vcombine.high %v3132_v61, %v3132_v61  ;;  %v3307_v53 = vrot.slane %v3132_v61, %v9262_v35  ;;  %v5005_v4 = vsel %vm3990_vm4, %v4846_v26, %v5004_v2  ;;  %v4518_v28 = vrot.slane %v10005_v25, %v9270_v51  ;;  %v11798_v2 = vld [vmem:[#allocation26_spill] sm:$0xff] }
 0x226   : > { %v4850_v31 = vrot.slane %v9873_v14, %v9316_v6  ;;  %v11796_v30 = vmov 0   ;;  %v10062_v45 = vcombine.high %v10034_v10, %v10034_v10  ;;  %v4854_v49 = vrot.slane %v10005_v25, %v9316_v6 }
 0x227   : > { %5680 = vmatprep.subr.bf16.mxu1 %v11796_v30  ;;  %v10067_v44 = vrot.slane %v3300_v24, %v9262_v35  ;;  %v3315_v59 = vcombine.high %v3307_v53, %v3307_v53  ;;  %v4526_v20 = vrot.slane %v10034_v10, %v9270_v51  ;;  %v3101_v14 = vadd.f32 %v9256_v39, %v3062_v58  ;;  %v11799_v24 = vld [vmem:[#allocation22_spill] sm:$0xff] }
 0x228   : > { %v5006_v19 = vsel %vm3992_vm5, %v4850_v31, %v5005_v4  ;;  %v2833_v55 = vadd.f32 %v9242_v11, %v2794_v22  ;;  %v4671_v63 = vsel %vm3980_vm13, %v4522_v62, %v4518_v28  ;;  %v4858_v27 = vrot.slane %v10026_v29, %v9316_v6  ;;  %v2954_v29 = vpop.permute.xlu0 %2953  ;;  %v11800_v4 = vld [vmem:[#allocation33_spill] sm:$0xff] }
 0x229   : > { %v3855_v25 = vrot.slane %v3307_v53, %v9270_v51  ;;  %v3859_v56 = vrot.slane %v3315_v59, %v9270_v51  ;;  %v4186_v38 = vrot.slane %v3315_v59, %v9316_v6  ;;  %v6804_v17 = vpack.i.bf16 %v5006_v19, %v4999_v5 }
 0x22a   : > { %v3133_v36 = vmax.f32 %v3101_v14, 0.0  ;;  %v3025_v7 = vmul.f32 %v2944_v37, %v2833_v55  ;;  %v4862_v39 = vrot.slane %v10034_v10, %v9316_v6  ;;  %v10084_v11 = vcombine.high %v10067_v44, %v10067_v44  ;;  %v10097_v10 = vld [vmem:[%s11482_s4] ss:$0 sm:$0xff]  ;;  %v11801_v14 = vld [vmem:[#allocation30_spill] sm:$0xff] }
 0x22b   : > { %v10087_v18 = vsel %vm3980_vm13, %v3859_v56, %v3855_v25  ;;  %v4182_v46 = vrot.slane %v3307_v53, %v9316_v6  ;;  %6805 = vrot.lane.b32.xlu0 %v6804_v17, %s11626_s0  ;;  %v4530_v62 = vrot.slane %v10062_v45, %v9270_v51  ;;  %v4672_v31 = vsel %vm3982_vm14, %v4526_v20, %v4671_v63  ;;  %v10116_v25 = vld [vmem:[%s11483_s5] ss:$0 sm:$0xff] }
 0x22c   : > { %11797 = vst [vmem:[#allocation28_spill] sm:$0xff] %v10087_v18  ;;  %v3317_v52 = vcombine.high %v3133_v36, %v3133_v36  ;;  %v10092_v61 = vrot.slane %v3133_v36, %v9262_v35  ;;  %v3064_v5 = vmul.f32 %v10097_v10, %v3025_v7  ;;  %v4190_v59 = vrot.slane %v10067_v44, %v9316_v6  ;;  %v10122_v20 = vld [vmem:[%s11481_s3] ss:$0 sm:$0xff] }
 0x22d   : > { %v4335_v37 = vsel %vm3980_vm13, %v4186_v38, %v4182_v46  ;;  %v5007_v36 = vsel %vm3980_vm13, %v4858_v27, %v4854_v49  ;;  %v4194_v7 = vrot.slane %v10084_v11, %v9316_v6 }
 0x22e   : > { %v10110_v19 = vrot.slane %v3317_v52, %v9262_v35  ;;  %v3103_v56 = vadd.f32 %v10116_v25, %v3064_v5  ;;  %v11802_v5 = vld [vmem:[#allocation32_spill] sm:$0xff] }
 0x230   : > { %v6680_v33 = vpop.f32.mrb[20].mxu0  ;;  %v3135_v46 = vmax.f32 %v3103_v56, 0.0 }
 0x231   : > { %v1727_v50 = vpop.f32.mrb[21].mxu0  ;;  %v2797_v22 = vmul.f32 %v6680_v33, %v11798_v2 }
 0x232   : > { %v6681_v26 = vpop.f32.mrb[22].mxu0  ;;  %v2795_v53 = vmul.f32 %v11799_v24, %v1727_v50  ;;  %v10134_v50 = vcombine.high %v10092_v61, %v10092_v61  ;;  %v4336_v24 = vsel %vm3982_vm14, %v4190_v59, %v4335_v37 }
 0x233   : > { %v1730_v58 = vpop.f32.mrb[23].mxu0  ;;  %v2798_v28 = vmul.f32 %v6681_v26, %v11800_v4  ;;  %v2836_v63 = vadd.f32 %v10122_v20, %v2797_v22  ;;  %v2964_v26 = vpop.permute.xlu0 %2963  ;;  %v4673_v22 = vsel %vm3984_vm15, %v4530_v62, %v4672_v31  ;;  %v10146_v4 = vrot.slane %v3135_v46, %v9262_v35 }
 0x234   : > { %v2796_v55 = vmul.f32 %v11801_v14, %v1730_v58  ;;  %v2834_v33 = vadd.f32 %v10122_v20, %v2795_v53  ;;  %v10141_v58 = vcombine.high %v10110_v19, %v10110_v19  ;;  %v3605_v53 = vcombine.high %v3135_v46, %v3135_v46 }
 0x235   : > { %v2837_v38 = vadd.f32 %v10122_v20, %v2798_v28  ;;  %v3028_v52 = vmul.f32 %v9891_v16, %v2836_v63  ;;  %v4198_v62 = vrot.slane %v10092_v61, %v9316_v6  ;;  %v10160_v59 = vcombine.high %v10146_v4, %v10146_v4 }
 0x236   : > { %v3026_v2 = vmul.f32 %v11802_v5, %v2834_v33  ;;  %v2835_v27 = vadd.f32 %v10122_v20, %v2796_v55  ;;  %v10156_v55 = vrot.slane %v3605_v53, %v9262_v35  ;;  %v4534_v37 = vrot.slane %v10146_v4, %v9270_v51 }
 0x237   : > { %v3029_v49 = vmul.f32 %v2964_v26, %v2837_v38  ;;  %v3067_v28 = vmul.f32 %v10097_v10, %v3028_v52  ;;  %v4337_v63 = vsel %vm3984_vm15, %v4194_v7, %v4336_v24  ;;  %v4538_v52 = vrot.slane %v10160_v59, %v9270_v51 }
 0x238   : > { %v3065_v16 = vmul.f32 %v10097_v10, %v3026_v2  ;;  %v3027_v56 = vmul.f32 %v2954_v29, %v2835_v27  ;;  %v10176_v2 = vsel %vm3982_vm14, %v4862_v39, %v5007_v36  ;;  %v10180_v7 = vcombine.high %v10156_v55, %v10156_v55 }
 0x239   : > { %v3068_v14 = vmul.f32 %v10097_v10, %v3029_v49  ;;  %v3106_v33 = vadd.f32 %v10116_v25, %v3067_v28 }
 0x23a   : > { %v3104_v38 = vadd.f32 %v10116_v25, %v3065_v16  ;;  %v3066_v29 = vmul.f32 %v10097_v10, %v3027_v56  ;;  %v4674_v16 = vsel %vm3986_vm1, %v4534_v37, %v4673_v22 }
 0x23b   : > { %v3107_v46 = vadd.f32 %v10116_v25, %v3068_v14  ;;  %v3138_v49 = vmax.f32 %v3106_v33, 0.0  ;;  %v4338_v14 = vsel %vm3986_vm1, %v4198_v62, %v4337_v63  ;;  %v4542_v33 = vrot.slane %v10156_v55, %v9270_v51 }
 0x23c   : > { %v3136_v27 = vmax.f32 %v3104_v38, 0.0  ;;  %v3105_v28 = vadd.f32 %v10116_v25, %v3066_v29  ;;  %v4675_v29 = vsel %vm3988_vm2, %v4538_v52, %v4674_v16  ;;  %v4546_v63 = vrot.slane %v10180_v7, %v9270_v51 }
 0x23d   : > { %v3139_v24 = vmax.f32 %v3107_v46, 0.0  ;;  %v3622_v56 = vcombine.high %v3138_v49, %v3138_v49  ;;  %v3629_v39 = vrot.slane %v3138_v49, %v9262_v35 }
 0x23e   : > { %v3334_v36 = vcombine.high %v3136_v27, %v3136_v27  ;;  %v3341_v40 = vrot.slane %v3136_v27, %v9262_v35  ;;  %v3137_v15 = vmax.f32 %v3105_v28, 0.0 }
 0x23f   : > { %v10197_v22 = vrot.slane %v3622_v56, %v9262_v35  ;;  %v3637_v62 = vcombine.high %v3629_v39, %v3629_v39  ;;  %v3639_v37 = vcombine.high %v3139_v24, %v3139_v24  ;;  %v10205_v1 = vrot.slane %v3139_v24, %v9262_v35 }
 0x240   : > { %v10202_v49 = vrot.slane %v3334_v36, %v9262_v35  ;;  %v3349_v27 = vcombine.high %v3341_v40, %v3341_v40  ;;  %v4550_v52 = vrot.slane %v3629_v39, %v9270_v51  ;;  %v4886_v21 = vrot.slane %v3629_v39, %v9316_v6 }
 0x241   : > { %v10209_v3 = vcombine.high %v10197_v22, %v10197_v22  ;;  %v4554_v16 = vrot.slane %v3637_v62, %v9270_v51  ;;  %v4890_v56 = vrot.slane %v3637_v62, %v9316_v6  ;;  %v3887_v24 = vrot.slane %v3341_v40, %v9270_v51 }
 0x242   : > { %v10217_v36 = vcombine.high %v10202_v49, %v10202_v49  ;;  %v3891_v28 = vrot.slane %v3349_v27, %v9270_v51  ;;  %v4558_v46 = vrot.slane %v10197_v22, %v9270_v51  ;;  %v4214_v62 = vrot.slane %v3341_v40, %v9316_v6 }
 0x243   : > { %v4562_v38 = vrot.slane %v10209_v3, %v9270_v51  ;;  %v4678_v39 = vsel %vm3980_vm13, %v4554_v16, %v4550_v52  ;;  %v4218_v26 = vrot.slane %v3349_v27, %v9316_v6  ;;  %v10236_v31 = vsel %vm3980_vm13, %v4890_v56, %v4886_v21 }
 0x244   : > { %v10232_v5 = vsel %vm3980_vm13, %v3891_v28, %v3887_v24  ;;  %v4222_v30 = vrot.slane %v10202_v49, %v9316_v6  ;;  %v10241_v53 = vrot.slane %v3639_v37, %v9262_v35  ;;  %v10245_v40 = vcombine.high %v10205_v1, %v10205_v1 }
 0x245   : > { %11803 = vst [vmem:[#allocation20_spill] sm:$0xff] %v10232_v5  ;;  %v4226_v52 = vrot.slane %v10217_v36, %v9316_v6  ;;  %v4566_v16 = vrot.slane %v10205_v1, %v9270_v51  ;;  %v3351_v27 = vcombine.high %v3137_v15, %v3137_v15  ;;  %v10252_v21 = vrot.slane %v3137_v15, %v9262_v35 }
 0x246   : > { %v4342_v56 = vsel %vm3980_vm13, %v4218_v26, %v4214_v62  ;;  %v4902_v37 = vrot.slane %v10205_v1, %v9316_v6  ;;  %v10259_v24 = vcombine.high %v10241_v53, %v10241_v53  ;;  %v4676_v28 = vsel %vm3990_vm4, %v4542_v33, %v4675_v29 }
 0x247   : > { %v10263_v17 = vrot.slane %v3351_v27, %v9262_v35  ;;  %v10267_v42 = vcombine.high %v10252_v21, %v10252_v21  ;;  %v4570_v15 = vrot.slane %v10245_v40, %v9270_v51  ;;  %v4574_v26 = vrot.slane %v10241_v53, %v9270_v51 }
 0x248   : > { %v4230_v1 = vrot.slane %v10252_v21, %v9316_v6  ;;  %v4677_v62 = vsel %vm3992_vm5, %v4546_v63, %v4676_v28  ;;  %v4679_v33 = vsel %vm3982_vm14, %v4558_v46, %v4678_v39  ;;  %v11806_v29 = vrot.slane %v10134_v50, %v9316_v6 }
 0x249   : > { %11804 = vst [vmem:[#allocation29_spill] sm:$0xff] %v10263_v17  ;;  %11805 = vst [vmem:[#allocation26_spill] sm:$0xff] %v10267_v42  ;;  %v4578_v8 = vrot.slane %v10259_v24, %v9270_v51  ;;  %v4680_v48 = vsel %vm3984_vm15, %v4562_v38, %v4679_v33  ;;  %v10286_v60 = vcombine.high %v10263_v17, %v10263_v17  ;;  %v2974_v38 = vpop.permute.xlu1 %2973 }
 0x24a   : > { %v4339_v27 = vsel %vm3988_vm2, %v11806_v29, %v4338_v14  ;;  %v4234_v5 = vrot.slane %v10267_v42, %v9316_v6  ;;  %v4681_v63 = vsel %vm3986_vm1, %v4566_v16, %v4680_v48  ;;  %v4238_v46 = vrot.slane %v10263_v17, %v9316_v6  ;;  %v11809_v17 = vld [vmem:[#allocation16_spill] sm:$0xff] }
 0x24b   : > { %11807 = vst [vmem:[#allocation22_spill] sm:$0xff] %v10286_v60  ;;  %v11808_v14 = vrot.slane %v10110_v19, %v9316_v6  ;;  %v4343_v28 = vsel %vm3982_vm14, %v4222_v30, %v4342_v56  ;;  %v4682_v33 = vsel %vm3988_vm2, %v4570_v15, %v4681_v63  ;;  %v4242_v18 = vrot.slane %v10286_v60, %v9316_v6 }
 0x24c   : > { %v4344_v42 = vsel %vm3984_vm15, %v4226_v52, %v4343_v28  ;;  %v4882_v48 = vrot.slane %v10180_v7, %v9316_v6  ;;  %v4683_v16 = vsel %vm3990_vm4, %v4574_v26, %v4682_v33  ;;  %v11811_v52 = vld [vmem:[#allocation15_spill] sm:$0xff]  ;;  %v4906_v7 = vrot.slane %v10245_v40, %v9316_v6 }
 0x24d   : > { %v4340_v39 = vsel %vm3990_vm4, %v11808_v14, %v4339_v27  ;;  %v11810_v27 = vrot.slane %v10141_v58, %v9316_v6  ;;  %v4345_v56 = vsel %vm3986_vm1, %v4230_v1, %v4344_v42  ;;  %v4684_v63 = vsel %vm3992_vm5, %v4578_v8, %v4683_v16  ;;  %v11813_v1 = vld [vmem:[#allocation31_spill] sm:$0xff] }
 0x24e   : > { %v4346_v14 = vsel %vm3988_vm2, %v4234_v5, %v4345_v56  ;;  %v6809_v26 = vpack.i.bf16 %v4684_v63, %v4677_v62  ;;  %v4910_v16 = vrot.slane %v10241_v53, %v9316_v6  ;;  %v11815_v56 = vld [vmem:[#allocation35_spill] sm:$0xff]  ;;  %v11816_v53 = vrot.slane %v10146_v4, %v9316_v6 }
 0x24f   : > { %v6684_v29 = vpop.f32.mrb[24].mxu0  ;;  %v4341_v30 = vsel %vm3992_vm5, %v11810_v27, %v4340_v39  ;;  %v4347_v33 = vsel %vm3990_vm4, %v4238_v46, %v4346_v14  ;;  %v2984_v46 = vpop.permute.xlu1 %2983 }
 0x250   : > { %v2801_v43 = vmul.f32 %v6684_v29, %v11809_v17  ;;  %v1743_v15 = vpop.f32.mrb[25].mxu0  ;;  %v11812_v29 = vld [vmem:[#allocation42_spill] sm:$0xff]  ;;  %v4348_v42 = vsel %vm3992_vm5, %v4242_v18, %v4347_v33  ;;  %6810 = vrot.lane.b32.xlu1 %v6809_v26, %s7191_s29  ;;  %v11819_v26 = vrot.slane %v10209_v3, %v9316_v6 }
 0x251   : > { %v2799_v28 = vmul.f32 %v11811_v52, %v1743_v15  ;;  %v6685_v60 = vpop.f32.mrb[26].mxu0  ;;  %v6814_v62 = vpack.i.bf16 %v4348_v42, %v4341_v30  ;;  %v11821_v42 = vld [vmem:[#allocation24_spill] sm:$0xff] }
 0x252   : > { %v2840_v17 = vadd.f32 %v10122_v20, %v2801_v43  ;;  %v2802_v39 = vmul.f32 %v6685_v60, %v11812_v29  ;;  %v1746_v27 = vpop.f32.mrb[27].mxu0  ;;  %v11814_v60 = vrot.slane %v10062_v45, %v9316_v6 }
 0x253   : > { %v2838_v8 = vadd.f32 %v10122_v20, %v2799_v28  ;;  %v2800_v5 = vmul.f32 %v11813_v1, %v1746_v27 }
 0x254   : > { %v3032_v40 = vmul.f32 %v9941_v57, %v2840_v17  ;;  %v2841_v43 = vadd.f32 %v10122_v20, %v2802_v39  ;;  %v5009_v18 = vsel %vm3984_vm15, %v11814_v60, %v10176_v2  ;;  %v11817_v57 = vrot.slane %v10197_v22, %v9316_v6  ;;  %6815 = vrot.lane.b32.xlu1 %v6814_v62, %s7190_s18 }
 0x255   : > { %v3030_v15 = vmul.f32 %v11815_v56, %v2838_v8  ;;  %v2839_v63 = vadd.f32 %v10122_v20, %v2800_v5  ;;  %v5010_v14 = vsel %vm3986_vm1, %v11816_v53, %v5009_v18  ;;  %v11818_v2 = vrot.slane %v10160_v59, %v9316_v6 }
 0x256   : > { %v5015_v30 = vsel %vm3982_vm14, %v11817_v57, %v10236_v31  ;;  %v3071_v45 = vmul.f32 %v10097_v10, %v3032_v40  ;;  %v3033_v52 = vmul.f32 %v2984_v46, %v2841_v43  ;;  %v4914_v22 = vrot.slane %v10259_v24, %v9316_v6  ;;  %v11825_v43 = vld [vmem:[#allocation14_spill] sm:$0xff] }
 0x257   : > { %v5011_v28 = vsel %vm3988_vm2, %v11818_v2, %v5010_v14  ;;  %v5016_v4 = vsel %vm3984_vm15, %v11819_v26, %v5015_v30  ;;  %v3069_v17 = vmul.f32 %v10097_v10, %v3030_v15  ;;  %v11820_v31 = vrot.slane %v10156_v55, %v9316_v6  ;;  %v11829_v26 = vld [vmem:[#allocation36_spill] sm:$0xff] }
 0x258   : > { %v5017_v29 = vsel %vm3986_vm1, %v4902_v37, %v5016_v4  ;;  %v3110_v59 = vadd.f32 %v10116_v25, %v3071_v45  ;;  %v3031_v39 = vmul.f32 %v2974_v38, %v2839_v63  ;;  %v3775_v8 = vrot.slane %v11821_v42, %v9270_v51  ;;  %v11822_v37 = vld [vmem:[#allocation19_spill] sm:$0xff]  ;;  %v11823_v38 = vld [vmem:[#allocation21_spill] sm:$0xff] }
 0x259   : > { %v5012_v33 = vsel %vm3990_vm4, %v11820_v31, %v5011_v28  ;;  %v5018_v27 = vsel %vm3988_vm2, %v4906_v7, %v5017_v29  ;;  %v3108_v24 = vadd.f32 %v10116_v25, %v3069_v17  ;;  %v3072_v55 = vmul.f32 %v10097_v10, %v3033_v52  ;;  %v11830_v17 = vld [vmem:[#allocation39_spill] sm:$0xff] }
 0x25a   : > { %v5013_v3 = vsel %vm3992_vm5, %v4882_v48, %v5012_v33  ;;  %v5019_v1 = vsel %vm3990_vm4, %v4910_v16, %v5018_v27  ;;  %v3779_v5 = vrot.slane %v11822_v37, %v9270_v51  ;;  %v3142_v40 = vmax.f32 %v3110_v59, 0.0  ;;  %v11831_v27 = vld [vmem:[#allocation13_spill] sm:$0xff] }
 0x25b   : > { %v5020_v62 = vsel %vm3992_vm5, %v4914_v22, %v5019_v1  ;;  %v11824_v48 = vrot.slane %v11793_v32, %v9270_v51  ;;  %v3783_v60 = vrot.slane %v11825_v43, %v9270_v51  ;;  %v3140_v18 = vmax.f32 %v3108_v24, 0.0  ;;  %v11833_v43 = vld [vmem:[#allocation18_spill] sm:$0xff] }
 0x25c   : > { %v6819_v46 = vpack.i.bf16 %v5020_v62, %v5013_v3  ;;  %v11826_v16 = vrot.slane %v11794_v34, %v9270_v51  ;;  %v3656_v15 = vcombine.high %v3142_v40, %v3142_v40  ;;  %v3663_v63 = vrot.slane %v3142_v40, %v9262_v35 }
 0x25d   : > { %v3987_v7 = vsel %vm3986_vm1, %v11824_v48, %v11823_v38  ;;  %v3070_v53 = vmul.f32 %v10097_v10, %v3031_v39  ;;  %v11827_v32 = vrot.slane %v11795_v41, %v9270_v51  ;;  %v3807_v57 = vrot.slane %v9626_v12, %v9270_v51  ;;  %v11828_v41 = vld [vmem:[#allocation34_spill] sm:$0xff] }
 0x25e   : > { %v3989_v56 = vsel %vm3988_vm2, %v11826_v16, %v3987_v7  ;;  %v3368_v30 = vcombine.high %v3140_v18, %v3140_v18  ;;  %v3375_v45 = vrot.slane %v3140_v18, %v9262_v35  ;;  %v3111_v34 = vadd.f32 %v10116_v25, %v3072_v55  ;;  %6820 = vrot.lane.b32.xlu1 %v6819_v46, %s11626_s0 }
 0x25f   : > { %v3991_v14 = vsel %vm3990_vm4, %v11827_v32, %v3989_v56  ;;  %v3811_v52 = vrot.slane %v9659_v23, %v9270_v51  ;;  %v3815_v2 = vrot.slane %v9642_v0, %v9270_v51  ;;  %v3831_v28 = vrot.slane %v11828_v41, %v9270_v51  ;;  %v11832_v41 = vld [vmem:[#allocation27_spill] sm:$0xff]  ;;  %v11840_v0 = vld [vmem:[#allocation37_spill] sm:$0xff] }
 0x260   : > { %v3835_v4 = vrot.slane %v11829_v26, %v9270_v51  ;;  %v3839_v22 = vrot.slane %v11830_v17, %v9270_v51  ;;  %v10407_v33 = vrot.slane %v3656_v15, %v9262_v35  ;;  %v3383_v29 = vcombine.high %v3375_v45, %v3375_v45 }
 0x261   : > { %v3671_v39 = vcombine.high %v3663_v63, %v3663_v63  ;;  %v3109_v3 = vadd.f32 %v10116_v25, %v3070_v53  ;;  %v3755_v42 = vrot.slane %v11831_v27, %v9270_v51  ;;  %v10415_v24 = vrot.slane %v3368_v30, %v9262_v35 }
 0x262   : > { %v3919_v55 = vrot.slane %v3375_v45, %v9270_v51  ;;  %v3923_v1 = vrot.slane %v3383_v29, %v9270_v51  ;;  %v3143_v37 = vmax.f32 %v3111_v34, 0.0  ;;  %v10433_v18 = vcombine.high %v10407_v33, %v10407_v33 }
 0x263   : > { %v4586_v16 = vrot.slane %v3671_v39, %v9270_v51  ;;  %v4922_v56 = vrot.slane %v3671_v39, %v9316_v6  ;;  %v3141_v15 = vmax.f32 %v3109_v3, 0.0  ;;  %v10441_v53 = vsel %vm3992_vm5, %v3755_v42, %v3991_v14 }
 0x264   : > { %v10436_v46 = vsel %vm3980_vm13, %v3923_v1, %v3919_v55  ;;  %v4582_v32 = vrot.slane %v3663_v63, %v9270_v51  ;;  %v10446_v30 = vcombine.high %v10415_v24, %v10415_v24  ;;  %v3673_v34 = vcombine.high %v3143_v37, %v3143_v37 }
 0x265   : > { %v3997_v26 = vsel %vm3986_vm1, %v3775_v8, %v11832_v41  ;;  %v4590_v17 = vrot.slane %v10407_v33, %v9270_v51  ;;  %v4918_v27 = vrot.slane %v3663_v63, %v9316_v6  ;;  %v4246_v39 = vrot.slane %v3375_v45, %v9316_v6 }
 0x266   : > { %v4250_v14 = vrot.slane %v3383_v29, %v9316_v6  ;;  %v4594_v3 = vrot.slane %v10433_v18, %v9270_v51  ;;  %v4926_v42 = vrot.slane %v10407_v33, %v9316_v6  ;;  %v10462_v8 = vrot.slane %v3143_v37, %v9262_v35 }
 0x267   : > { %v4685_v1 = vsel %vm3980_vm13, %v4586_v16, %v4582_v32  ;;  %v4930_v63 = vrot.slane %v10433_v18, %v9316_v6  ;;  %v10468_v45 = vsel %vm3980_vm13, %v4922_v56, %v4918_v27  ;;  %v3998_v29 = vsel %vm3988_vm2, %v3779_v5, %v3997_v26  ;;  %v11835_v26 = vld [vmem:[#allocation38_spill] sm:$0xff] }
 0x268   : > { %v4254_v41 = vrot.slane %v10415_v24, %v9316_v6  ;;  %v4258_v38 = vrot.slane %v10446_v30, %v9316_v6  ;;  %v10476_v55 = vrot.slane %v3673_v34, %v9262_v35  ;;  %v3999_v37 = vsel %vm3990_vm4, %v3783_v60, %v3998_v29 }
 0x269   : > { %v4349_v16 = vsel %vm3980_vm13, %v4250_v14, %v4246_v39  ;;  %v3385_v32 = vcombine.high %v3141_v15, %v3141_v15  ;;  %v11834_v56 = vrot.slane %v9456_v9, %v9270_v51  ;;  %v4009_v27 = vsel %vm3982_vm14, %v3831_v28, %v11835_v26  ;;  %v2994_v9 = vpop.permute.xlu0 %2993 }
 0x26a   : > { %v10489_v62 = vcombine.high %v10462_v8, %v10462_v8  ;;  %v10492_v34 = vrot.slane %v3141_v15, %v9262_v35  ;;  %v11836_v60 = vrot.slane %v9488_v13, %v9270_v51  ;;  %v4010_v14 = vsel %vm3984_vm15, %v3835_v4, %v4009_v27  ;;  %v6688_v29 = vpop.f32.mrb[28].mxu0 }
 0x26b   : > { %v4002_v5 = vsel %vm3982_vm14, %v11834_v56, %v11833_v43  ;;  %v4598_v43 = vrot.slane %v10462_v8, %v9270_v51  ;;  %v10506_v15 = vsel %vm3986_vm1, %v3839_v22, %v4010_v14  ;;  %v4686_v56 = vsel %vm3982_vm14, %v4590_v17, %v4685_v1  ;;  %v1759_v26 = vpop.f32.mrb[29].mxu0  ;;  %v11838_v22 = vld [vmem:[#allocation23_spill] sm:$0xff] }
 0x26c   : > { %v4003_v39 = vsel %vm3984_vm15, %v11836_v60, %v4002_v5  ;;  %v11837_v5 = vld [vmem:[#allocation17_spill] sm:$0xff]  ;;  %v10518_v12 = vcombine.high %v10476_v55, %v10476_v55  ;;  %v2803_v17 = vmul.f32 %v11838_v22, %v1759_v26  ;;  %v6689_v1 = vpop.f32.mrb[30].mxu0  ;;  %v4687_v23 = vsel %vm3984_vm15, %v4594_v3, %v4686_v56 }
 0x26d   : > { %v4004_v28 = vsel %vm3986_vm1, %v3807_v57, %v4003_v39  ;;  %v2805_v4 = vmul.f32 %v6688_v29, %v11837_v5  ;;  %v10521_v57 = vrot.slane %v3385_v32, %v9262_v35  ;;  %v2806_v29 = vmul.f32 %v6689_v1, %v9992_v54  ;;  %v1762_v32 = vpop.f32.mrb[31].mxu0  ;;  %v3004_v22 = vpop.permute.xlu0 %3003  ;;  %v11841_v1 = vld [vmem:[#allocation44_spill] sm:$0xff] }
 0x26e   : > { %v4005_v27 = vsel %vm3988_vm2, %v3811_v52, %v4004_v28  ;;  %v11839_v52 = vld [vmem:[#allocation12_spill] sm:$0xff]  ;;  %v4602_v28 = vrot.slane %v10489_v62, %v9270_v51  ;;  %v2842_v5 = vadd.f32 %v10122_v20, %v2803_v17  ;;  %v2804_v26 = vmul.f32 %v11840_v0, %v1762_v32  ;;  %v6781_v0 = vpop.permute.xlu1 %6780 }
 0x26f   : > { %v10528_v60 = vsel %vm3990_vm4, %v3815_v2, %v4005_v27  ;;  %v3787_v39 = vrot.slane %v11839_v52, %v9270_v51  ;;  %v2844_v14 = vadd.f32 %v10122_v20, %v2805_v4  ;;  %v4606_v2 = vrot.slane %v10476_v55, %v9270_v51 }
 0x270   : > { %v4688_v3 = vsel %vm3986_vm1, %v4598_v43, %v4687_v23  ;;  %v2845_v4 = vadd.f32 %v10122_v20, %v2806_v29  ;;  %v4610_v54 = vrot.slane %v10518_v12, %v9270_v51  ;;  %v10549_v17 = vcombine.high %v10492_v34, %v10492_v34 }
 0x271   : > { %v3036_v56 = vmul.f32 %v10049_v47, %v2844_v14  ;;  %v4689_v27 = vsel %vm3988_vm2, %v4602_v28, %v4688_v3  ;;  %v3034_v52 = vmul.f32 %v11841_v1, %v2842_v5  ;;  %v2843_v32 = vadd.f32 %v10122_v20, %v2804_v26 }
 0x272   : > { %v4690_v43 = vsel %vm3990_vm4, %v4606_v2, %v4689_v27  ;;  %v3037_v23 = vmul.f32 %v3004_v22, %v2845_v4  ;;  %v10560_v29 = vcombine.high %v10521_v57, %v10521_v57  ;;  %v4262_v28 = vrot.slane %v10492_v34, %v9316_v6 }
 0x273   : > { %v3075_v47 = vmul.f32 %v10097_v10, %v3036_v56  ;;  %v10556_v14 = vsel %vm3992_vm5, %v4610_v54, %v4690_v43  ;;  %v3073_v5 = vmul.f32 %v10097_v10, %v3034_v52  ;;  %v3035_v3 = vmul.f32 %v2994_v9, %v2843_v32 }
 0x274   : > { %v4350_v20 = vsel %vm3982_vm14, %v4254_v41, %v4349_v16  ;;  %v4000_v26 = vsel %vm3992_vm5, %v3787_v39, %v3999_v37  ;;  %v3076_v56 = vmul.f32 %v10097_v10, %v3037_v23  ;;  %v4266_v27 = vrot.slane %v10549_v17, %v9316_v6 }
 0x275   : > { %v3114_v2 = vadd.f32 %v10116_v25, %v3075_v47  ;;  %v3112_v4 = vadd.f32 %v10116_v25, %v3073_v5  ;;  %v3074_v54 = vmul.f32 %v10097_v10, %v3035_v3  ;;  %v4351_v9 = vsel %vm3984_vm15, %v4258_v38, %v4350_v20  ;;  %v6786_v20 = vpop.permute.xlu1 %6785 }
 0x276   : > { %v6782_v41 = vunpack.i.l.bf16 %v6781_v0  ;;  %v4270_v37 = vrot.slane %v10521_v57, %v9316_v6  ;;  %v4274_v39 = vrot.slane %v10560_v29, %v9316_v6  ;;  %v6783_v22 = vunpack.i.h.bf16 %v6781_v0 }
 0x277   : > { %v3146_v16 = vmax.f32 %v3114_v2, 0.0  ;;  %v3144_v1 = vmax.f32 %v3112_v4, 0.0  ;;  %v4352_v10 = vsel %vm3986_vm1, %v4262_v28, %v4351_v9  ;;  %v3115_v38 = vadd.f32 %v10116_v25, %v3076_v56 }
 0x278   : > { %v4353_v47 = vsel %vm3988_vm2, %v4266_v27, %v4352_v10  ;;  %v3113_v3 = vadd.f32 %v10116_v25, %v3074_v54  ;;  %v5060_v28 = vsel %vm5059_vm6, %v10441_v53, %v6782_v41  ;;  %v6788_v9 = vunpack.i.h.bf16 %v6786_v20 }
 0x279   : > { %v3690_v32 = vcombine.high %v3146_v16, %v3146_v16  ;;  %v3697_v43 = vrot.slane %v3146_v16, %v9262_v35  ;;  %v3402_v23 = vcombine.high %v3144_v1, %v3144_v1  ;;  %v3409_v5 = vrot.slane %v3144_v1, %v9262_v35 }
 0x27a   : > { %v4354_v0 = vsel %vm3990_vm4, %v4270_v37, %v4353_v47  ;;  %v6787_v27 = vunpack.i.l.bf16 %v6786_v20  ;;  %v5061_v25 = vsel %vm5059_vm6, %v4000_v26, %v6783_v22  ;;  %v3145_v47 = vmax.f32 %v3113_v3, 0.0 }
 0x27b   : > { %v10593_v2 = vrot.slane %v3690_v32, %v9262_v35  ;;  %v3705_v4 = vcombine.high %v3697_v43, %v3697_v43  ;;  %v10598_v16 = vrot.slane %v3402_v23, %v9262_v35  ;;  %v3417_v1 = vcombine.high %v3409_v5, %v3409_v5 }
 0x27c   : > { %v4614_v37 = vrot.slane %v3697_v43, %v9270_v51  ;;  %v4950_v10 = vrot.slane %v3697_v43, %v9316_v6  ;;  %v3147_v32 = vmax.f32 %v3115_v38, 0.0  ;;  %v10611_v23 = vsel %vm5068_vm7, %v5060_v28, %v6787_v27 }
 0x27d   : > { %v10603_v54 = vcombine.high %v10593_v2, %v10593_v2  ;;  %v4618_v53 = vrot.slane %v3705_v4, %v9270_v51  ;;  %v10614_v26 = vsel %vm5068_vm7, %v5061_v25, %v6788_v9  ;;  %v4622_v22 = vrot.slane %v10593_v2, %v9270_v51 }
 0x27e   : > { %v4954_v20 = vrot.slane %v3705_v4, %v9316_v6  ;;  %v10622_v40 = vcombine.high %v10598_v16, %v10598_v16  ;;  %v3951_v43 = vrot.slane %v3409_v5, %v9270_v51  ;;  %v3955_v38 = vrot.slane %v3417_v1, %v9270_v51 }
 0x27f   : > { %v4692_v7 = vsel %vm3980_vm13, %v4618_v53, %v4614_v37  ;;  %v4626_v3 = vrot.slane %v10603_v54, %v9270_v51  ;;  %v4958_v28 = vrot.slane %v10593_v2, %v9316_v6  ;;  %v4962_v9 = vrot.slane %v10603_v54, %v9316_v6 }
 0x280   : > { %v4282_v4 = vrot.slane %v3417_v1, %v9316_v6  ;;  %v10634_v27 = vsel %vm3980_vm13, %v3955_v38, %v3951_v43  ;;  %v3707_v25 = vcombine.high %v3147_v32, %v3147_v32  ;;  %v3714_v53 = vrot.slane %v3147_v32, %v9262_v35 }
 0x281   : > { %v3419_v37 = vcombine.high %v3145_v47, %v3145_v47  ;;  %v4278_v59 = vrot.slane %v3409_v5, %v9316_v6  ;;  %v10639_v48 = vrot.slane %v3145_v47, %v9262_v35  ;;  %v4693_v31 = vsel %vm3982_vm14, %v4622_v22, %v4692_v7 }
 0x282   : > { %v4355_v2 = vsel %vm3992_vm5, %v4274_v39, %v4354_v0  ;;  %v4286_v54 = vrot.slane %v10598_v16, %v9316_v6  ;;  %v4290_v1 = vrot.slane %v10622_v40, %v9316_v6  ;;  %v3721_v43 = vrot.slane %v3707_v25, %v9262_v35 }
 0x283   : > { %v3722_v38 = vcombine.high %v3714_v53, %v3714_v53  ;;  %v4356_v32 = vsel %vm3980_vm13, %v4282_v4, %v4278_v59  ;;  %v4630_v5 = vrot.slane %v3714_v53, %v9270_v51  ;;  %v10651_v47 = vrot.slane %v3419_v37, %v9262_v35 }
 0x284   : > { %v10655_v7 = vcombine.high %v10639_v48, %v10639_v48  ;;  %v5028_v39 = vsel %vm3980_vm13, %v4954_v20, %v4950_v10  ;;  %v3723_v0 = vcombine.high %v3721_v43, %v3721_v43  ;;  %v4694_v41 = vsel %vm3984_vm15, %v4626_v3, %v4693_v31 }
 0x285   : > { %v4634_v22 = vrot.slane %v3722_v38, %v9270_v51  ;;  %v4966_v25 = vrot.slane %v3714_v53, %v9316_v6  ;;  %v4638_v59 = vrot.slane %v3721_v43, %v9270_v51  ;;  %v4695_v4 = vsel %vm3986_vm1, %v4630_v5, %v4694_v41 }
 0x286   : > { %v10665_v37 = vcombine.high %v10651_v47, %v10651_v47  ;;  %v4294_v56 = vrot.slane %v10639_v48, %v9316_v6  ;;  %v4642_v10 = vrot.slane %v3723_v0, %v9270_v51  ;;  %v4357_v52 = vsel %vm3982_vm14, %v4286_v54, %v4356_v32 }
 0x287   : > { %v4696_v20 = vsel %vm3988_vm2, %v4634_v22, %v4695_v4  ;;  %v4298_v3 = vrot.slane %v10655_v7, %v9316_v6  ;;  %v4302_v41 = vrot.slane %v10651_v47, %v9316_v6  ;;  %v4358_v53 = vsel %vm3984_vm15, %v4290_v1, %v4357_v52 }
 0x288   : > { %v4697_v31 = vsel %vm3990_vm4, %v4638_v59, %v4696_v20  ;;  %v4306_v13 = vrot.slane %v10665_v37, %v9316_v6  ;;  %v4359_v22 = vsel %vm3986_vm1, %v4294_v56, %v4358_v53  ;;  %v5022_v54 = vsel %vm3982_vm14, %v4926_v42, %v10468_v45 }
 0x289   : > { %v4698_v5 = vsel %vm3992_vm5, %v4642_v10, %v4697_v31  ;;  %v4360_v59 = vsel %vm3988_vm2, %v4298_v3, %v4359_v22  ;;  %v5023_v52 = vsel %vm3984_vm15, %v4930_v63, %v5022_v54  ;;  %v5029_v1 = vsel %vm3982_vm14, %v4958_v28, %v5028_v39  ;;  %v6791_v39 = vpop.permute.xlu1 %6790 }
 0x28a   : > { %v6824_v32 = vpack.i.bf16 %v4698_v5, %v10556_v14  ;;  %v4361_v4 = vsel %vm3990_vm4, %v4302_v41, %v4360_v59  ;;  %v4970_v56 = vrot.slane %v3722_v38, %v9316_v6  ;;  %v11842_v33 = vrot.slane %v10462_v8, %v9316_v6  ;;  %v11846_v41 = vld [vmem:[#allocation28_spill] sm:$0xff] }
 0x28b   : > { %v5030_v45 = vsel %vm3984_vm15, %v4962_v9, %v5029_v1  ;;  %v4362_v14 = vsel %vm3992_vm5, %v4306_v13, %v4361_v4  ;;  %v4974_v18 = vrot.slane %v3721_v43, %v9316_v6  ;;  %v11843_v63 = vrot.slane %v10489_v62, %v9316_v6  ;;  %v11848_v5 = vld [vmem:[#allocation20_spill] sm:$0xff]  ;;  %v11851_v1 = vld [vmem:[#allocation26_spill] sm:$0xff] }
 0x28c   : > { %v5024_v42 = vsel %vm3986_vm1, %v11842_v33, %v5023_v52  ;;  %6825 = vrot.lane.b32.xlu0 %v6824_v32, %s7191_s29  ;;  %v5031_v38 = vsel %vm3986_vm1, %v4966_v25, %v5030_v45  ;;  %v6829_v10 = vpack.i.bf16 %v4362_v14, %v4355_v2  ;;  %v4978_v8 = vrot.slane %v3723_v0, %v9316_v6 }
 0x28d   : > { %v5025_v28 = vsel %vm3988_vm2, %v11843_v63, %v5024_v42  ;;  %v11844_v9 = vrot.slane %v10476_v55, %v9316_v6  ;;  %v5032_v13 = vsel %vm3988_vm2, %v4970_v56, %v5031_v38  ;;  %v6793_v31 = vunpack.i.h.bf16 %v6791_v39 }
 0x28e   : > { %v6792_v43 = vunpack.i.l.bf16 %v6791_v39  ;;  %v11845_v62 = vrot.slane %v10518_v12, %v9316_v6  ;;  %v5033_v25 = vsel %vm3990_vm4, %v4974_v18, %v5032_v13  ;;  %v3959_v2 = vrot.slane %v10598_v16, %v9270_v51 }
 0x28f   : > { %v5026_v20 = vsel %vm3990_vm4, %v11844_v9, %v5025_v28  ;;  %v5034_v0 = vsel %vm3992_vm5, %v4978_v8, %v5033_v25  ;;  %v11847_v55 = vrot.slane %v10067_v44, %v9270_v51  ;;  %v11849_v22 = vrot.slane %v10202_v49, %v9270_v51  ;;  %v11860_v25 = vld [vmem:[#allocation25_spill] sm:$0xff] }
 0x290   : > { %v5027_v3 = vsel %vm3992_vm5, %v11845_v62, %v5026_v20  ;;  %v5077_v54 = vsel %vm1525_vm11, %v10611_v23, %v6792_v43  ;;  %v5078_v16 = vsel %vm1525_vm11, %v10614_v26, %v6793_v31  ;;  %6830 = vrot.lane.b32.xlu0 %v6829_v10, %s7190_s18  ;;  %v11850_v44 = vrot.slane %v10084_v11, %v9270_v51  ;;  %v11858_v20 = vld [vmem:[#allocation41_spill] sm:$0xff]  ;;  %v11859_v62 = vld [vmem:[#allocation40_spill] sm:$0xff] }
 0x291   : > { %v4016_v53 = vsel %vm3982_vm14, %v11847_v55, %v11846_v41  ;;  %v4023_v12 = vsel %vm3982_vm14, %v11849_v22, %v11848_v5  ;;  %v6834_v32 = vpack.i.bf16 %v5034_v0, %v5027_v3  ;;  %v5085_v52 = vpack.c.bf16 %v5078_v16, %v5077_v54 }
 0x292   : > { %v4017_v59 = vsel %vm3984_vm15, %v11850_v44, %v4016_v53  ;;  %v3907_v49 = vrot.slane %v11851_v1, %v9270_v51  ;;  %v11852_v4 = vrot.slane %v10092_v61, %v9270_v51  ;;  %v11853_v26 = vrot.slane %v10217_v36, %v9270_v51  ;;  %v11861_v53 = vld [vmem:[#allocation43_spill] sm:$0xff] }
 0x293   : > { %v3931_v33 = vrot.slane %v10446_v30, %v9270_v51  ;;  %v3963_v11 = vrot.slane %v10622_v40, %v9270_v51  ;;  %v11854_v42 = vrot.slane %v10134_v50, %v9270_v51  ;;  %v11855_v61 = vrot.slane %v10252_v21, %v9270_v51  ;;  %6694 = vmatprep.mubr.msk.bf16.mxu1 %vm5105_vm8, %v5085_v52  ;;  %v6796_v21 = vpop.permute.xlu0 %6795 }
 0x294   : > { %v4018_v23 = vsel %vm3986_vm1, %v11852_v4, %v4017_v59  ;;  %v4024_v56 = vsel %vm3984_vm15, %v11853_v26, %v4023_v12  ;;  %v11856_v36 = vrot.slane %v10110_v19, %v9270_v51  ;;  %6835 = vrot.lane.b32.xlu0 %v6834_v32, %s11626_s0  ;;  %v3935_v50 = vrot.slane %v10492_v34, %v9270_v51  ;;  %s7119_s0 = sshll.u32 %s7200_s27, 4  ;;  %s7120_s0 = int_to_ptr.vmem [resolvable:$false] %s7119_s0 }
 0x295   : > { %v4019_v45 = vsel %vm3988_vm2, %v11854_v42, %v4018_v23  ;;  %v4025_v14 = vsel %vm3986_vm1, %v11855_v61, %v4024_v56  ;;  %v3967_v40 = vrot.slane %v10639_v48, %v9270_v51  ;;  %v11857_v63 = vrot.slane %v10415_v24, %v9270_v51  ;;  %v11862_v56 = vld [vmem:[#allocation29_spill] sm:$0xff]  ;;  %v11863_v61 = vld [vmem:[#allocation22_spill] sm:$0xff]  ;;  %s7121_s20 = scalar_lea.vmem %s7120_s0, 512 }
 0x296   : > { %v4020_v30 = vsel %vm3990_vm4, %v11856_v36, %v4019_v45  ;;  %v4026_v18 = vsel %vm3988_vm2, %v3907_v49, %v4025_v14  ;;  %v4037_v19 = vsel %vm3982_vm14, %v3959_v2, %v10634_v27  ;;  %v3939_v38 = vrot.slane %v10549_v17, %v9270_v51 }
 0x297   : > { %v4030_v28 = vsel %vm3982_vm14, %v11857_v63, %v10436_v46  ;;  %v3971_v39 = vrot.slane %v10655_v7, %v9270_v51  ;;  %v4038_v48 = vsel %vm3984_vm15, %v3963_v11, %v4037_v19  ;;  %v3943_v10 = vrot.slane %v10521_v57, %v9270_v51 }
 0x298   : > { %v4031_v34 = vsel %vm3984_vm15, %v3931_v33, %v4030_v28  ;;  %v3975_v24 = vrot.slane %v10651_v47, %v9270_v51  ;;  %v4039_v27 = vsel %vm3986_vm1, %v3967_v40, %v4038_v48  ;;  %v3947_v17 = vrot.slane %v10560_v29, %v9270_v51 }
 0x299   : > { %v4032_v46 = vsel %vm3986_vm1, %v3935_v50, %v4031_v34  ;;  %v3979_v7 = vrot.slane %v10665_v37, %v9270_v51  ;;  %v4040_v9 = vsel %vm3988_vm2, %v3971_v39, %v4039_v27  ;;  %v3843_v57 = vrot.slane %v11858_v20, %v9270_v51  ;;  %v6801_v37 = vpop.permute.xlu0 %6800 }
 0x29a   : > { %v4033_v8 = vsel %vm3988_vm2, %v3939_v38, %v4032_v46  ;;  %v4041_v47 = vsel %vm3990_vm4, %v3975_v24, %v4040_v9  ;;  %v3847_v3 = vrot.slane %v11859_v62, %v9270_v51  ;;  %v3819_v2 = vrot.slane %v11860_v25, %v9270_v51 }
 0x29b   : > { %v4034_v13 = vsel %vm3990_vm4, %v3943_v10, %v4033_v8  ;;  %v10808_v43 = vsel %vm3992_vm5, %v3979_v7, %v4041_v47  ;;  %v4012_v29 = vsel %vm3988_vm2, %v3843_v57, %v10506_v15  ;;  %v6803_v41 = vunpack.i.h.bf16 %v6801_v37 }
 0x29c   : > { %v10805_v31 = vsel %vm3992_vm5, %v3947_v17, %v4034_v13  ;;  %v4013_v0 = vsel %vm3990_vm4, %v3847_v3, %v4012_v29  ;;  %v6802_v55 = vunpack.i.l.bf16 %v6801_v37  ;;  %v3851_v5 = vrot.slane %v11861_v53, %v9270_v51  ;;  %v10910_v53 = vld [vmem:[%s11485_s7] ss:$0 sm:$0xff] }
 0x29d   : > { %v4007_v22 = vsel %vm3992_vm5, %v3819_v2, %v10528_v60  ;;  %v6798_v16 = vunpack.i.h.bf16 %v6796_v21  ;;  %v6797_v32 = vunpack.i.l.bf16 %v6796_v21  ;;  %v6806_v44 = vpop.permute.xlu0 %6805  ;;  %v3911_v33 = vrot.slane %v11862_v56, %v9270_v51  ;;  %v7022_v56 = vld [vmem:[%s11487_s9 + $0x18] sm:$0xff]  }
 0x29e   : > { %v4014_v12 = vsel %vm3992_vm5, %v3851_v5, %v4013_v0  ;;  %v5062_v54 = vsel %vm5059_vm6, %v4007_v22, %v6802_v55  ;;  %v6808_v59 = vunpack.i.h.bf16 %v6806_v44  ;;  %v6807_v52 = vunpack.i.l.bf16 %v6806_v44  ;;  %v7021_v55 = vld [vmem:[%s11487_s9 + $0x10] sm:$0xff]   ;;  %v10915_v22 = vld [vmem:[%s11486_s8] ss:$0 sm:$0xff] }
 0x29f   : > { %v5063_v15 = vsel %vm5059_vm6, %v4014_v12, %v6803_v41  ;;  %v5071_v1 = vsel %vm5068_vm7, %v5062_v54, %v6797_v32  ;;  %v3883_v11 = vrot.slane %v10141_v58, %v9270_v51  ;;  %v4027_v42 = vsel %vm3990_vm4, %v3911_v33, %v4026_v18  ;;  %v7020_v41 = vld [vmem:[%s11487_s9 + $0x8] sm:$0xff]  }
 0x2a0   : > { %v5072_v49 = vsel %vm5068_vm7, %v5063_v15, %v6798_v16  ;;  %v5079_v4 = vsel %vm1525_vm11, %v5071_v1, %v6807_v52  ;;  %v3915_v14 = vrot.slane %v11863_v61, %v9270_v51  ;;  %v7192_v17 = vmov 0.0  }
 0x2a1   : > { %v5080_v23 = vsel %vm1525_vm11, %v5072_v49, %v6808_v59  ;;  %v4021_v40 = vsel %vm3992_vm5, %v3883_v11, %v4020_v30  ;;  %5228 = vst.msk [vmem:[#allocation2 + $0x30] sm:$0xff] %vm5068_vm7, %v7192_v17  ;;  %5221 = vst.msk [vmem:[#allocation2] sm:$0xff] %vm5068_vm7, %v7192_v17  ;;  %6702 = vmatprep.subr.bf16.mxu0 %v7192_v17  ;;  %vm5579_vm1 = vcmask 916480  }
 0x2a2   : > { %v5086_v60 = vpack.c.bf16 %v5080_v23, %v5079_v4  ;;  %v4028_v21 = vsel %vm3992_vm5, %v3915_v14, %v4027_v42  ;;  %5229 = vst.msk [vmem:[#allocation2 + $0x38] sm:$0x3] %vm5222_vm9, %v7192_v17  ;;  %5223 = vst.msk [vmem:[#allocation2 + $0x8] sm:$0x3] %vm5222_vm9, %v7192_v17 }
 0x2a3   : > { %5224 = vst.msk [vmem:[#allocation2 + $0x10] sm:$0xff] %vm5068_vm7, %v7192_v17  ;;  %5226 = vst.msk [vmem:[#allocation2 + $0x20] sm:$0xff] %vm5068_vm7, %v7192_v17 }
 0x2a4   : > { %6695 = vmatmul.mubr.msk.bf16.vlgmr.msra.gmra.mrb[0].mxu1 %vm5105_vm8, %v5086_v60  ;;  %5225 = vst.msk [vmem:[#allocation2 + $0x18] sm:$0x3] %vm5222_vm9, %v7192_v17  ;;  %5227 = vst.msk [vmem:[#allocation2 + $0x28] sm:$0x3] %vm5222_vm9, %v7192_v17 }
 0x2a5   : > { %5230 = vst.msk [vmem:[#allocation2 + $0x40] sm:$0xff] %vm5068_vm7, %v7192_v17  ;;  %5232 = vst.msk [vmem:[#allocation2 + $0x50] sm:$0xff] %vm5068_vm7, %v7192_v17 }
 0x2a6   : > { %5231 = vst.msk [vmem:[#allocation2 + $0x48] sm:$0x3] %vm5222_vm9, %v7192_v17  ;;  %5233 = vst.msk [vmem:[#allocation2 + $0x58] sm:$0x3] %vm5222_vm9, %v7192_v17 }
 0x2a7   : > { %5234 = vst.msk [vmem:[#allocation2 + $0x60] sm:$0xff] %vm5068_vm7, %v7192_v17  ;;  %5236 = vst.msk [vmem:[#allocation2 + $0x70] sm:$0xff] %vm5068_vm7, %v7192_v17 }
 0x2a8   : > { %5235 = vst.msk [vmem:[#allocation2 + $0x68] sm:$0x3] %vm5222_vm9, %v7192_v17  ;;  %5237 = vst.msk [vmem:[#allocation2 + $0x78] sm:$0x3] %vm5222_vm9, %v7192_v17  ;;  %v10933_v11 = vld [vmem:[#allocation2] sm:$0xff] }
 0x2a9   : > { %5238 = vst.msk [vmem:[#allocation2 + $0x80] sm:$0xff] %vm5068_vm7, %v7192_v17  ;;  %5240 = vst.msk [vmem:[#allocation2 + $0x90] sm:$0xff] %vm5068_vm7, %v7192_v17  ;;  %v5252_v42 = vld [vmem:[#allocation2 + $0x8] sm:$0x3] }
 0x2aa   : > { %5239 = vst.msk [vmem:[#allocation2 + $0x88] sm:$0x3] %vm5222_vm9, %v7192_v17  ;;  %5241 = vst.msk [vmem:[#allocation2 + $0x98] sm:$0x3] %vm5222_vm9, %v7192_v17 }
 0x2c2   : > { %v6811_v26 = vpop.permute.xlu1 %6810 }
 0x2c3   : > { %v6813_v19 = vunpack.i.h.bf16 %v6811_v26  ;;  %v6812_v38 = vunpack.i.l.bf16 %v6811_v26 }
 0x2c6   : > { %v6816_v45 = vpop.permute.xlu1 %6815 }
 0x2c7   : > { %v6818_v36 = vunpack.i.h.bf16 %v6816_v45  ;;  %v6817_v50 = vunpack.i.l.bf16 %v6816_v45  ;;  %v7023_v45 = vld [vmem:[%s11487_s9 + $0x20] sm:$0xff]  }
 0x2c9   : > { %v5065_v63 = vsel %vm5059_vm6, %v4028_v21, %v6818_v36  ;;  %v5064_v28 = vsel %vm5059_vm6, %v4021_v40, %v6817_v50  ;;  %v5287_v36 = vrot.slane %v10933_v11, 1  ;;  %v5288_v21 = vrot.slane %v5252_v42, 1 }
 0x2ca   : > { %v5073_v18 = vsel %vm5068_vm7, %v5064_v28, %v6812_v38  ;;  %v5074_v48 = vsel %vm5068_vm7, %v5065_v63, %v6813_v19  ;;  %v5335_v63 = vrot.slane %v10933_v11, 2  ;;  %v5336_v28 = vrot.slane %v5252_v42, 2 }
 0x2d0   : > { %v6821_v39 = vpop.permute.xlu1 %6820 }
 0x2d1   : > { %v6823_v58 = vunpack.i.h.bf16 %v6821_v39  ;;  %v6822_v34 = vunpack.i.l.bf16 %v6821_v39 }
 0x2d3   : > { %v5081_v10 = vsel %vm1525_vm11, %v5073_v18, %v6822_v34  ;;  %v5082_v24 = vsel %vm1525_vm11, %v5074_v48, %v6823_v58  ;;  %v7024_v18 = vld [vmem:[%s11487_s9 + $0x28] sm:$0xff]  }
 0x2d4   : > { %v5087_v30 = vpack.c.bf16 %v5082_v24, %v5081_v10 }
 0x2d6   : > { %6698 = vmatprep.mubr.msk.bf16.mxu1 %vm5105_vm8, %v5087_v30 }
 0x2fe   : > { %v6826_v46 = vpop.permute.xlu0 %6825 }
 0x2ff   : > { %v6828_v57 = vunpack.i.h.bf16 %v6826_v46  ;;  %v6827_v13 = vunpack.i.l.bf16 %v6826_v46 }
 0x302   : > { %v6831_v27 = vpop.permute.xlu0 %6830 }
 0x303   : > { %v6833_v7 = vunpack.i.h.bf16 %v6831_v27  ;;  %v6832_v8 = vunpack.i.l.bf16 %v6831_v27 }
 0x305   : > { %v5067_v9 = vsel %vm5059_vm6, %v10808_v43, %v6833_v7  ;;  %v5066_v20 = vsel %vm5059_vm6, %v10805_v31, %v6832_v8  ;;  %v7019_v31 = vld [vmem:[%s11487_s9] sm:$0xff]   ;;  %v11864_v43 = vmov 0  }
 0x306   : > { %v6836_v47 = vpop.permute.xlu0 %6835  ;;  %v5075_v62 = vsel %vm5068_vm7, %v5066_v20, %v6827_v13  ;;  %v5076_v3 = vsel %vm5068_vm7, %v5067_v9, %v6828_v57  ;;  %5681 = vmatpush1.bf16.msra.mxu1 %v7019_v31  ;;  %v5289_v20 = vsel %vm975_vm0, %v5287_v36, %v5288_v21 }
 0x307   : > { %v6838_v29 = vunpack.i.h.bf16 %v6836_v47  ;;  %v6837_v37 = vunpack.i.l.bf16 %v6836_v47  ;;  %5682 = vmatprep.subr.bf16.mxu1 %v11864_v43 }
 0x309   : > { %v5083_v25 = vsel %vm1525_vm11, %v5075_v62, %v6837_v37  ;;  %v5084_v2 = vsel %vm1525_vm11, %v5076_v3, %v6838_v29  ;;  %v5337_v37 = vsel %vm1607_vm3, %v5335_v63, %v5336_v28  ;;  %v7025_v3 = vld [vmem:[%s11487_s9 + $0x30] sm:$0xff]   ;;  %vm5561_vm11 = vcmask 654336  }
 0x30a   : > { %v5088_v0 = vpack.c.bf16 %v5084_v2, %v5083_v25  ;;  %5683 = vmatpush1.bf16.msra.mxu1 %v7020_v41 }
 0x30b   : > { %5684 = vmatprep.subr.bf16.mxu1 %v11864_v43 }
 0x30c   : > { %6699 = vmatmul.mubr.msk.bf16.gmra.mrb[4].mxu1 %vm5105_vm8, %v5088_v0 }
 0x30e   : > { %5685 = vmatpush1.bf16.msra.mxu1 %v7021_v55 }
 0x30f   : > { %5686 = vmatprep.subr.bf16.mxu1 %v11864_v43 }
 0x312   : > { %5687 = vmatpush1.bf16.msra.mxu1 %v7022_v56 }
 0x313   : > { %5688 = vmatprep.subr.bf16.mxu1 %v11864_v43 }
 0x316   : > { %5689 = vmatpush1.bf16.msra.mxu1 %v7023_v45 }
 0x317   : > { %5690 = vmatprep.subr.bf16.mxu1 %v11864_v43 }
 0x31a   : > { %5691 = vmatpush1.bf16.msra.mxu1 %v7024_v18 }
 0x31b   : > { %5692 = vmatprep.subr.bf16.mxu1 %v11864_v43 }
 0x31e   : > { %5693 = vmatpush1.bf16.msra.mxu1 %v7025_v3 }
 0x31f   : > { %5694 = vmatprep.subr.bf16.mxu1 %v11864_v43 }
 0x377   : > { %v6696_v5 = vpop.f32.mrb[0].mxu1 }
 0x378   : > { %v5192_v12 = vmul.f32 %v6696_v5, %v10910_v53  ;;  %v5152_v15 = vpop.f32.mrb[1].mxu1 }
 0x379   : > { %v5190_v54 = vmul.f32 %v10910_v53, %v5152_v15  ;;  %v6697_v16 = vpop.f32.mrb[2].mxu1 }
 0x37a   : > { %v5207_v32 = vadd.f32 %v10915_v22, %v5192_v12  ;;  %v5193_v44 = vmul.f32 %v6697_v16, %v10910_v53  ;;  %v5155_v59 = vpop.f32.mrb[3].mxu1 }
 0x37b   : > { %v5205_v52 = vadd.f32 %v10915_v22, %v5190_v54  ;;  %v5191_v1 = vmul.f32 %v10910_v53, %v5155_v59 }
 0x37c   : > { %v5215_v49 = vmax.f32 %v5207_v32, 0.0  ;;  %v5208_v4 = vadd.f32 %v10915_v22, %v5193_v44 }
 0x37d   : > { %v5213_v23 = vmax.f32 %v5205_v52, 0.0  ;;  %v5206_v60 = vadd.f32 %v10915_v22, %v5191_v1  ;;  %v7026_v1 = vld [vmem:[%s11487_s9 + $0x38] sm:$0xff]  }
 0x37e   : > { %5245 = vst.msk [vmem:[#allocation2 + $0x31] sm:$0xff] %vm5068_vm7, %v5215_v49  ;;  %v5216_v26 = vmax.f32 %v5208_v4, 0.0  ;;  %5695 = vmatpush1.bf16.msra.mxu1 %v7026_v1 }
 0x37f   : > { %5243 = vst.msk [vmem:[#allocation2 + $0x11] sm:$0xff] %vm5068_vm7, %v5213_v23  ;;  %v5214_v33 = vmax.f32 %v5206_v60, 0.0  ;;  %v7027_v60 = vld [vmem:[%s11487_s9 + $0x40] sm:$0xff]   ;;  %5696 = vmatprep.subr.bf16.mxu1 %v11864_v43 }
 0x380   : > { %5246 = vst.msk [vmem:[#allocation2 + $0x41] sm:$0xff] %vm5068_vm7, %v5216_v26 }
 0x381   : > { %5244 = vst.msk [vmem:[#allocation2 + $0x21] sm:$0xff] %vm5068_vm7, %v5214_v33 }
 0x382   : > { %5697 = vmatpush1.bf16.msra.mxu1 %v7027_v60 }
 0x385   : > { %v10938_v61 = vld [vmem:[#allocation2 + $0x30] sm:$0xff]  ;;  %v5258_v14 = vld [vmem:[#allocation2 + $0x38] sm:$0x3] }
 0x386   : > { %v10941_v50 = vld [vmem:[#allocation2 + $0x10] sm:$0xff]  ;;  %v5254_v40 = vld [vmem:[#allocation2 + $0x18] sm:$0x3]  ;;  %v5344_v38 = vrot.slane %v10938_v61, 2  ;;  %v5345_v39 = vrot.slane %v5258_v14, 2  ;;  %v5296_v0 = vrot.slane %v10938_v61, 1 }
 0x387   : > { %v10944_v19 = vld [vmem:[#allocation2 + $0x40] sm:$0xff]  ;;  %v5290_v58 = vrot.slane %v10941_v50, 1  ;;  %v5291_v34 = vrot.slane %v5254_v40, 1  ;;  %v5338_v30 = vrot.slane %v10941_v50, 2  ;;  %v5260_v46 = vld [vmem:[#allocation2 + $0x48] sm:$0x3] }
 0x388   : > { %v6839_v48 = vpack.i.bf16 %v10944_v19, %v10938_v61  ;;  %v10954_v10 = vld [vmem:[#allocation2 + $0x20] sm:$0xff]  ;;  %v5256_v24 = vld [vmem:[#allocation2 + $0x28] sm:$0x3]  ;;  %v5339_v9 = vrot.slane %v5254_v40, 2  ;;  %v5299_v13 = vrot.slane %v10944_v19, 1  ;;  %v5346_v29 = vsel %vm1607_vm3, %v5344_v38, %v5345_v39 }
 0x389   : > { %v6844_v27 = vpack.i.bf16 %v10954_v10, %v10941_v50  ;;  %v5341_v7 = vrot.slane %v10954_v10, 2  ;;  %v5342_v8 = vrot.slane %v5256_v24, 2  ;;  %v5292_v57 = vsel %vm975_vm0, %v5290_v58, %v5291_v34 }
 0x38a   : > { %6840 = vrot.lane.b32.xlu0 %v6839_v48, %s7193_s19  ;;  %v5300_v62 = vrot.slane %v5260_v46, 1  ;;  %v6849_v25 = vpack.i.bf16 %v10938_v61, %v10954_v10  ;;  %v5297_v31 = vrot.slane %v5258_v14, 1  ;;  %v6854_v41 = vpack.i.bf16 %v5292_v57, %v5289_v20 }
 0x38b   : > { %6845 = vrot.lane.b32.xlu1 %v6844_v27, %s7193_s19  ;;  %v5343_v47 = vsel %vm1607_vm3, %v5341_v7, %v5342_v8  ;;  %v5340_v55 = vsel %vm1607_vm3, %v5338_v30, %v5339_v9  ;;  %v5347_v5 = vrot.slane %v10944_v19, 2  ;;  %v5348_v12 = vrot.slane %v5260_v46, 2 }
 0x38c   : > { %v5589_v2 = vpack.c.bf16 %v5346_v29, %v5343_v47  ;;  %v10980_v15 = vsel %vm975_vm0, %v5299_v13, %v5300_v62  ;;  %v6859_v54 = vpack.i.bf16 %v5340_v55, %v5337_v37  ;;  %v5298_v16 = vsel %vm975_vm0, %v5296_v0, %v5297_v31 }
 0x38d   : > { %v6864_v32 = vpack.i.bf16 %v10980_v15, %v5298_v16  ;;  %v10987_v44 = vsel %vm1607_vm3, %v5347_v5, %v5348_v12  ;;  %v5293_v59 = vrot.slane %v10954_v10, 1  ;;  %v5294_v52 = vrot.slane %v5256_v24, 1 }
 0x38e   : > { %6850 = vrot.lane.b32.xlu0 %v6849_v25, %s7194_s2  ;;  %6604 = vmatprep.mubr.msk.bf16.mxu1 %vm5068_vm7, %v5589_v2  ;;  %v6869_v49 = vpack.i.bf16 %v10987_v44, %v5346_v29  ;;  %v6879_v4 = vpack.i.bf16 %v5343_v47, %v5340_v55  ;;  %v6894_v33 = vpack.i.bf16 %v5346_v29, %v5343_v47 }
 0x38f   : > { %6855 = vrot.lane.b32.xlu1 %v6854_v41, %s7191_s29  ;;  %v5295_v23 = vsel %vm975_vm0, %v5293_v59, %v5294_v52 }
 0x390   : > { %v6874_v26 = vpack.i.bf16 %v5295_v23, %v5292_v57  ;;  %v6884_v56 = vpack.i.bf16 %v5298_v16, %v5295_v23 }
 0x392   : > { %6860 = vrot.lane.b32.xlu0 %v6859_v54, %s7195_s17 }
 0x393   : > { %6865 = vrot.lane.b32.xlu1 %v6864_v32, %s7196_s24 }
 0x396   : > { %6870 = vrot.lane.b32.xlu0 %v6869_v49, %s7197_s30 }
 0x397   : > { %6880 = vrot.lane.b32.xlu1 %v6879_v4, %s7197_s30 }
 0x39a   : > { %6875 = vrot.lane.b32.xlu0 %v6874_v26, %s7196_s24 }
 0x39b   : > { %6885 = vrot.lane.b32.xlu1 %v6884_v56, %s7198_s23 }
 0x39e   : > { %6890 = vrot.lane.b32.xlu0 %v6884_v56, %s7191_s29 }
 0x39f   : > { %6895 = vrot.lane.b32.xlu1 %v6894_v33, %s7195_s17 }
 0x3df   : > { %v6700_v42 = vpop.f32.mrb[4].mxu1 }
 0x3e0   : > { %v5196_v45 = vmul.f32 %v6700_v42, %v10910_v53  ;;  %v5168_v14 = vpop.f32.mrb[5].mxu1 }
 0x3e1   : > { %v5194_v43 = vmul.f32 %v10910_v53, %v5168_v14  ;;  %v6701_v36 = vpop.f32.mrb[6].mxu1 }
 0x3e2   : > { %v5211_v40 = vadd.f32 %v10915_v22, %v5196_v45  ;;  %v5197_v21 = vmul.f32 %v6701_v36, %v10910_v53  ;;  %v5171_v63 = vpop.f32.mrb[7].mxu1 }
 0x3e3   : > { %v5209_v28 = vadd.f32 %v10915_v22, %v5194_v43  ;;  %v5195_v38 = vmul.f32 %v10910_v53, %v5171_v63 }
 0x3e4   : > { %v5219_v39 = vmax.f32 %v5211_v40, 0.0  ;;  %v5212_v58 = vadd.f32 %v10915_v22, %v5197_v21  ;;  %v11075_v40 = vld [vmem:[#allocation2 + $0x90] sm:$0xff]  ;;  %v11077_v21 = vld [vmem:[#allocation2 + $0x98] sm:$0x3] }
 0x3e5   : > { %v5217_v34 = vmax.f32 %v5209_v28, 0.0  ;;  %v5210_v18 = vadd.f32 %v10915_v22, %v5195_v38 }
 0x3e6   : > { %5249 = vst.msk [vmem:[#allocation2 + $0x71] sm:$0xff] %vm5068_vm7, %v5219_v39  ;;  %v5220_v48 = vmax.f32 %v5212_v58, 0.0  ;;  %v5489_v39 = vrot.slane %v11075_v40, 1  ;;  %v5490_v58 = vrot.slane %v11077_v21, 1 }
 0x3e7   : > { %5247 = vst.msk [vmem:[#allocation2 + $0x51] sm:$0xff] %vm5068_vm7, %v5217_v34  ;;  %v5218_v24 = vmax.f32 %v5210_v18, 0.0 }
 0x3e8   : > { %5250 = vst.msk [vmem:[#allocation2 + $0x81] sm:$0xff] %vm5068_vm7, %v5220_v48 }
 0x3e9   : > { %5248 = vst.msk [vmem:[#allocation2 + $0x61] sm:$0xff] %vm5068_vm7, %v5218_v24 }
 0x3ed   : > { %v11023_v27 = vld [vmem:[#allocation2 + $0x70] sm:$0xff]  ;;  %v5266_v13 = vld [vmem:[#allocation2 + $0x78] sm:$0x3] }
 0x3ee   : > { %v11019_v30 = vld [vmem:[#allocation2 + $0x50] sm:$0xff]  ;;  %v5262_v46 = vld [vmem:[#allocation2 + $0x58] sm:$0x3]  ;;  %v5356_v25 = vrot.slane %v11023_v27, 2  ;;  %v5357_v41 = vrot.slane %v5266_v13, 2  ;;  %v5308_v54 = vrot.slane %v11023_v27, 1 }
 0x3ef   : > { %v6899_v53 = vpack.i.bf16 %v11019_v30, %v10944_v19  ;;  %v11025_v7 = vld [vmem:[#allocation2 + $0x80] sm:$0xff]  ;;  %v5302_v9 = vrot.slane %v11019_v30, 1  ;;  %v5303_v20 = vrot.slane %v5262_v46, 1  ;;  %v5268_v47 = vld [vmem:[#allocation2 + $0x88] sm:$0x3]  ;;  %v5350_v55 = vrot.slane %v11019_v30, 2 }
 0x3f0   : > { %v6904_v22 = vpack.i.bf16 %v11025_v7, %v11023_v27  ;;  %v11029_v8 = vld [vmem:[#allocation2 + $0x60] sm:$0xff]  ;;  %v5264_v57 = vld [vmem:[#allocation2 + $0x68] sm:$0x3]  ;;  %v5409_v62 = vrot.slane %v11025_v7, 1  ;;  %v5410_v31 = vrot.slane %v5268_v47, 1  ;;  %v5351_v5 = vrot.slane %v5262_v46, 2 }
 0x3f1   : > { %6900 = vrot.lane.b32.xlu1 %v6899_v53, %s7194_s2  ;;  %v5353_v29 = vrot.slane %v11029_v8, 2  ;;  %v6909_v37 = vpack.i.bf16 %v11029_v8, %v11019_v30  ;;  %v5354_v3 = vrot.slane %v5264_v57, 2  ;;  %v6914_v2 = vpack.i.bf16 %v11023_v27, %v11029_v8 }
 0x3f2   : > { %6905 = vrot.lane.b32.xlu0 %v6904_v22, %s7193_s19  ;;  %v5304_v0 = vsel %vm975_vm0, %v5302_v9, %v5303_v20  ;;  %v5309_v16 = vrot.slane %v5266_v13, 1  ;;  %v11051_v59 = vsel %vm1607_vm3, %v5356_v25, %v5357_v41  ;;  %v5411_v52 = vsel %vm975_vm0, %v5409_v62, %v5410_v31 }
 0x3f3   : > { %v11045_v12 = vsel %vm1607_vm3, %v5353_v29, %v5354_v3  ;;  %v6924_v32 = vpack.i.bf16 %v5304_v0, %v10980_v15  ;;  %v11058_v49 = vsel %vm1607_vm3, %v5350_v55, %v5351_v5  ;;  %v5305_v4 = vrot.slane %v11029_v8, 1 }
 0x3f4   : > { %v5593_v1 = vpack.c.bf16 %v11051_v59, %v11045_v12  ;;  %v5306_v23 = vrot.slane %v5264_v57, 1  ;;  %v5310_v15 = vsel %vm975_vm0, %v5308_v54, %v5309_v16  ;;  %v6929_v26 = vpack.i.bf16 %v11058_v49, %v10987_v44 }
 0x3f5   : > { %6910 = vrot.lane.b32.xlu1 %v6909_v37, %s7193_s19  ;;  %v6934_v60 = vpack.i.bf16 %v5411_v52, %v5310_v15  ;;  %v6944_v33 = vpack.i.bf16 %v11045_v12, %v11058_v49  ;;  %v5436_v14 = vrot.slane %v11025_v7, 2  ;;  %v5437_v43 = vrot.slane %v5268_v47, 2 }
 0x3f6   : > { %6915 = vrot.lane.b32.xlu0 %v6914_v2, %s7194_s2  ;;  %v5307_v56 = vsel %vm975_vm0, %v5305_v4, %v5306_v23  ;;  %v6964_v18 = vpack.i.bf16 %v11051_v59, %v11045_v12  ;;  %v5491_v46 = vsel %vm975_vm0, %v5489_v39, %v5490_v58  ;;  %v6969_v20 = vpack.i.bf16 %v11075_v40, %v11025_v7 }
 0x3f7   : > { %v6939_v42 = vpack.i.bf16 %v5307_v56, %v5304_v0  ;;  %v6949_v63 = vpack.i.bf16 %v5310_v15, %v5307_v56  ;;  %v11081_v38 = vsel %vm1607_vm3, %v5436_v14, %v5437_v43  ;;  %v6974_v47 = vpack.i.bf16 %v5491_v46, %v5411_v52 }
 0x3f8   : > { %v6959_v48 = vpack.i.bf16 %v11081_v38, %v11051_v59  ;;  %vm5543_vm0 = vcmask 392192  }
 0x3f9   : > { %6925 = vrot.lane.b32.xlu1 %v6924_v32, %s7191_s29 }
 0x3fa   : > { %6920 = vrot.lane.b32.xlu0 %v6924_v32, %s7198_s23 }
 0x3fc   : > { %v11070_v45 = vpop.permute.xlu0 %6840 }
 0x3fd   : > { %6935 = vrot.lane.b32.xlu1 %v6934_v60, %s7196_s24  ;;  %v6846_v36 = vpop.permute.xlu1 %6845  ;;  %v6843_v41 = vunpack.i.h.bf16 %v11070_v45 }
 0x3fe   : > { %6930 = vrot.lane.b32.xlu0 %v6929_v26, %s7195_s17  ;;  %v6848_v2 = vunpack.i.h.bf16 %v6846_v36  ;;  %v6847_v0 = vunpack.i.l.bf16 %v6846_v36 }
 0x400   : > { %v6851_v28 = vpop.permute.xlu0 %6850 }
 0x401   : > { %6945 = vrot.lane.b32.xlu1 %v6944_v33, %s7197_s30  ;;  %v6856_v34 = vpop.permute.xlu1 %6855  ;;  %v6853_v4 = vunpack.i.h.bf16 %v6851_v28  ;;  %v6852_v23 = vunpack.i.l.bf16 %v6851_v28 }
 0x402   : > { %6940 = vrot.lane.b32.xlu0 %v6939_v42, %s7196_s24  ;;  %v6858_v22 = vunpack.i.h.bf16 %v6856_v34  ;;  %v6857_v9 = vunpack.i.l.bf16 %v6856_v34  ;;  %s554_s24 = sand.u32 1, %s7169_s25  }
 0x403   : > { %s6527_s26 = sshll.u32 %s554_s24, 4 }
 0x404   : > { %v6861_v24 = vpop.permute.xlu0 %6860  ;;  %v5528_v62 = vsel %vm5068_vm7, %v10941_v50, %v6858_v22  ;;  %v5527_v3 = vsel %vm5068_vm7, %v10933_v11, %v6857_v9  ;;  %v5591_v11 = vpack.c.bf16 %v11058_v49, %v10987_v44  ;;  %s556_s22 = scalar_lea.vmem [#allocation3], %s6527_s26 }
 0x405   : > { %6950 = vrot.lane.b32.xlu1 %v6949_v63, %s7198_s23  ;;  %v11092_v53 = vpop.permute.xlu1 %6865  ;;  %v6863_v57 = vunpack.i.h.bf16 %v6861_v24  ;;  %v6862_v13 = vunpack.i.l.bf16 %v6861_v24  ;;  %s6449_s21 = sshll.u32 %s556_s22, 4  ;;  %s11433_s21 = int_to_ptr.vmem [resolvable:$true] %s6449_s21 }
 0x406   : > { %6955 = vrot.lane.b32.xlu0 %v6949_v63, %s7191_s29  ;;  %v6868_v22 = vunpack.i.h.bf16 %v11092_v53  ;;  %v6867_v9 = vunpack.i.l.bf16 %v11092_v53  ;;  %s7115_s26 = scalar_lea.vmem %s11433_s21, 256  ;;  %p7122_p0 = scmp.lt.s32.totalorder %s11433_s21, %s7120_s0 }
 0x407   : > { %v5535_v25 = vsel %vm5105_vm8, %v5527_v3, %v6862_v13  ;;  %v5536_v7 = vsel %vm5105_vm8, %v5528_v62, %v6863_v57  ;;  %p7116_p11 = scmp.ne.s32.totalorder %s11433_s21, %s7115_s26  ;;  %p7123_p1 = scmp.lt.s32.totalorder %s7121_s20, %s7115_s26 }
 0x408   : > { %v6871_v29 = vpop.permute.xlu0 %6870  ;;  %v5544_v32 = vsel %vm5543_vm0, %v5535_v25, %v6847_v0  ;;  %v5545_v52 = vsel %vm5543_vm0, %v5536_v7, %v6848_v2 }
 0x409   : > { %6965 = vrot.lane.b32.xlu1 %v6964_v18, %s7195_s17  ;;  %v6881_v37 = vpop.permute.xlu1 %6880  ;;  %v6842_v18 = vunpack.i.l.bf16 %v11070_v45  ;;  %v6873_v13 = vunpack.i.h.bf16 %v6871_v29  ;;  %p7117_p12 = pnand %p7116_p11, %p7330_p5  ;;  %p7124_p2 = por %p7123_p1, %p7122_p0 }
 0x40a   : > { %6960 = vrot.lane.b32.xlu0 %v6959_v48, %s7197_s30  ;;  %v6883_v54 = vunpack.i.h.bf16 %v6881_v37  ;;  %v6882_v16 = vunpack.i.l.bf16 %v6881_v37 }
 0x40b   : > { %p7118_p13 = pneg %p7117_p12 }
 0x40c   : > { %v6876_v31 = vpop.permute.xlu0 %6875 }
 0x40d   : > { %6970 = vrot.lane.b32.xlu1 %v6969_v20, %s7194_s2  ;;  %v6878_v55 = vunpack.i.h.bf16 %v6876_v31  ;;  %v6877_v5 = vunpack.i.l.bf16 %v6876_v31  ;;  %v6886_v50 = vpop.permute.xlu1 %6885  ;;  %p7125_p3 = pnand %p7124_p2, %p7118_p13 }
 0x40e   : > { %6975 = vrot.lane.b32.xlu0 %v6974_v47, %s7198_s23  ;;  %v6888_v33 = vunpack.i.h.bf16 %v6886_v50  ;;  %v6887_v42 = vunpack.i.l.bf16 %v6886_v50  ;;  %v6872_v47 = vunpack.i.l.bf16 %v6871_v29  ;;  %s6624_s23 = sshll.u32 %s7313_s28, 8  ;;  %s11436_s28 = scalar_lea.sflag [#allocation4], %s554_s24 }
 0x40f   : > { %v5554_v15 = vsel %vm5552_vm10, %v5545_v52, %v6878_v55  ;;  %v5553_v60 = vsel %vm5552_vm10, %v5544_v32, %v6877_v5 }
 0x410   : > { %v5563_v26 = vsel %vm5561_vm11, %v5554_v15, %v6883_v54  ;;  %v5562_v56 = vsel %vm5561_vm11, %v5553_v60, %v6882_v16  ;;  %v6891_v14 = vpop.permute.xlu0 %6890  ;;  %v5516_v60 = vrot.slane %v11075_v40, 2 }
 0x411   : > { %v5571_v44 = vsel %vm5570_vm12, %v5562_v56, %v6852_v23  ;;  %v5572_v49 = vsel %vm5570_vm12, %v5563_v26, %v6853_v4  ;;  %v6893_v43 = vunpack.i.h.bf16 %v6891_v14  ;;  %v6892_v36 = vunpack.i.l.bf16 %v6891_v14  ;;  %v6896_v63 = vpop.permute.xlu1 %6895 }
 0x412   : > { %v5580_v28 = vsel %vm5579_vm1, %v5571_v44, %v6887_v42  ;;  %v5581_v39 = vsel %vm5579_vm1, %v5572_v49, %v6888_v33  ;;  %v6898_v58 = vunpack.i.h.bf16 %v6896_v63  ;;  %v6897_v34 = vunpack.i.l.bf16 %v6896_v63 }
 0x413   : > { %v5588_v48 = vpack.c.bf16 %v5581_v39, %v5580_v28  ;;  %v5530_v24 = vsel %vm5068_vm7, %v10938_v61, %v6893_v43  ;;  %v5529_v46 = vsel %vm5068_vm7, %v10954_v10, %v6892_v36  ;;  %v5517_v33 = vrot.slane %v11077_v21, 2 }
 0x414   : > { %v5537_v20 = vsel %vm5105_vm8, %v5529_v46, %v6897_v34  ;;  %v5538_v57 = vsel %vm5105_vm8, %v5530_v24, %v6898_v58 }
 0x415   : > { %v5546_v37 = vsel %vm5543_vm0, %v5537_v20, %v6842_v18  ;;  %v5547_v45 = vsel %vm5543_vm0, %v5538_v57, %v6843_v41  ;;  %5713 = vmatmul.mubr.bf16.vlgmr.msra.gmra.mrb[8].mxu1 %v5588_v48 }
 0x416   : > { %6605 = vmatprep.mubr.msk.bf16.mxu1 %vm5068_vm7, %v5591_v11  ;;  %v5555_v61 = vsel %vm5552_vm10, %v5546_v37, %v6867_v9  ;;  %v5556_v10 = vsel %vm5552_vm10, %v5547_v45, %v6868_v22 }
 0x417   : > { %v5564_v62 = vsel %vm5561_vm11, %v5555_v61, %v6872_v47  ;;  %v5565_v53 = vsel %vm5561_vm11, %v5556_v10, %v6873_v13 }
 0x463   : > { %v6901_v3 = vpop.permute.xlu1 %6900 }
 0x464   : > { %v11134_v25 = vpop.permute.xlu0 %6905  ;;  %v6903_v2 = vunpack.i.h.bf16 %v6901_v3  ;;  %v6902_v0 = vunpack.i.l.bf16 %v6901_v3 }
 0x466   : > { %v5574_v50 = vsel %vm5570_vm12, %v5565_v53, %v6903_v2  ;;  %v5573_v11 = vsel %vm5570_vm12, %v5564_v62, %v6902_v0  ;;  %v6908_v2 = vunpack.i.h.bf16 %v11134_v25  ;;  %v6907_v0 = vunpack.i.l.bf16 %v11134_v25 }
 0x467   : > { %v6911_v7 = vpop.permute.xlu1 %6910 }
 0x468   : > { %v6916_v29 = vpop.permute.xlu0 %6915  ;;  %v6913_v40 = vunpack.i.h.bf16 %v6911_v7  ;;  %v6912_v36 = vunpack.i.l.bf16 %v6911_v7 }
 0x469   : > { %v6918_v18 = vunpack.i.h.bf16 %v6916_v29  ;;  %v6917_v48 = vunpack.i.l.bf16 %v6916_v29 }
 0x46b   : > { %v6926_v31 = vpop.permute.xlu1 %6925 }
 0x46c   : > { %v6921_v41 = vpop.permute.xlu0 %6920  ;;  %v6928_v54 = vunpack.i.h.bf16 %v6926_v31  ;;  %v6927_v16 = vunpack.i.l.bf16 %v6926_v31 }
 0x46d   : > { %v6923_v55 = vunpack.i.h.bf16 %v6921_v41  ;;  %v6922_v5 = vunpack.i.l.bf16 %v6921_v41 }
 0x46e   : > { %v5532_v42 = vsel %vm5068_vm7, %v11019_v30, %v6928_v54  ;;  %v5531_v14 = vsel %vm5068_vm7, %v10944_v19, %v6927_v16  ;;  %v5518_v30 = vsel %vm1607_vm3, %v5516_v60, %v5517_v33  ;;  %vm7199_vm3 = vmmov 0  }
 0x46f   : > { %v11138_v32 = vpop.permute.xlu1 %6935  ;;  %v5582_v52 = vsel %vm5579_vm1, %v5573_v11, %v6922_v5  ;;  %v5583_v4 = vsel %vm5579_vm1, %v5574_v50, %v6923_v55  ;;  %v5595_v29 = vpack.c.bf16 %v5518_v30, %v11081_v38  ;;  %6710 = vmatprep.mubr.msk.bf16.mxu0 %vm7199_vm3, %v7192_v17 }
 0x470   : > { %v6931_v23 = vpop.permute.xlu0 %6930  ;;  %v5590_v15 = vpack.c.bf16 %v5583_v4, %v5582_v52  ;;  %v6938_v55 = vunpack.i.h.bf16 %v11138_v32  ;;  %v6937_v5 = vunpack.i.l.bf16 %v11138_v32 }
 0x471   : > { %v6933_v26 = vunpack.i.h.bf16 %v6931_v23  ;;  %v6932_v56 = vunpack.i.l.bf16 %v6931_v23 }
 0x472   : > { %5721 = vmatmul.mubr.bf16.gmra.mrb[12].mxu1 %v5590_v15 }
 0x473   : > { %v5539_v44 = vsel %vm5105_vm8, %v5531_v14, %v6932_v56  ;;  %v5540_v49 = vsel %vm5105_vm8, %v5532_v42, %v6933_v26  ;;  %v6946_v43 = vpop.permute.xlu1 %6945  ;;  %6606 = vmatprep.mubr.msk.bf16.mxu1 %vm5068_vm7, %v5593_v1 }
 0x474   : > { %v6941_v21 = vpop.permute.xlu0 %6940  ;;  %v6948_v39 = vunpack.i.h.bf16 %v6946_v43  ;;  %v6947_v19 = vunpack.i.l.bf16 %v6946_v43  ;;  %v5548_v58 = vsel %vm5543_vm0, %v5539_v44, %v6912_v36  ;;  %v5549_v34 = vsel %vm5543_vm0, %v5540_v49, %v6913_v40  ;;  %v11190_v43 = vld [vmem:[%s11488_s10] ss:$0 sm:$0xff] }
 0x475   : > { %v6943_v63 = vunpack.i.h.bf16 %v6941_v21  ;;  %v6942_v28 = vunpack.i.l.bf16 %v6941_v21  ;;  %v11195_v36 = vld [vmem:[%s11489_s11] ss:$0 sm:$0xff] }
 0x477   : > { %v5558_v24 = vsel %vm5552_vm10, %v5549_v34, %v6943_v63  ;;  %v5557_v12 = vsel %vm5552_vm10, %v5548_v58, %v6942_v28  ;;  %v6951_v59 = vpop.permute.xlu1 %6950 }
 0x478   : > { %v5567_v1 = vsel %vm5561_vm11, %v5558_v24, %v6948_v39  ;;  %v5566_v46 = vsel %vm5561_vm11, %v5557_v12, %v6947_v19  ;;  %v6953_v22 = vunpack.i.h.bf16 %v6951_v59  ;;  %v6952_v9 = vunpack.i.l.bf16 %v6951_v59  ;;  %v6956_v20 = vpop.permute.xlu0 %6955 }
 0x479   : > { %v6958_v57 = vunpack.i.h.bf16 %v6956_v20  ;;  %v6957_v13 = vunpack.i.l.bf16 %v6956_v20  ;;  %v5575_v47 = vsel %vm5570_vm12, %v5566_v46, %v6917_v48  ;;  %v5576_v37 = vsel %vm5570_vm12, %v5567_v1, %v6918_v18 }
 0x47a   : > { %v5584_v45 = vsel %vm5579_vm1, %v5575_v47, %v6952_v9  ;;  %v5585_v61 = vsel %vm5579_vm1, %v5576_v37, %v6953_v22  ;;  %v7028_v47 = vld [vmem:[%s11490_s12] sm:$0xff]  }
 0x47b   : > { %v6966_v10 = vpop.permute.xlu1 %6965  ;;  %v5592_v62 = vpack.c.bf16 %v5585_v61, %v5584_v45  ;;  %v5534_v31 = vsel %vm5068_vm7, %v11023_v27, %v6958_v57  ;;  %v5533_v41 = vsel %vm5068_vm7, %v11029_v8, %v6957_v13  ;;  %6703 = vmatpush3.bf16.msra.mxu0 %v7028_v47 }
 0x47c   : > { %v6968_v53 = vunpack.i.h.bf16 %v6966_v10  ;;  %v6967_v3 = vunpack.i.l.bf16 %v6966_v10  ;;  %v6961_v7 = vpop.permute.xlu0 %6960  ;;  %6704 = vmatprep.subr.bf16.mxu0 %v7192_v17 }
 0x47d   : > { %5729 = vmatmul.mubr.bf16.gmra.mrb[16].mxu1 %v5592_v62  ;;  %v6963_v54 = vunpack.i.h.bf16 %v6961_v7  ;;  %v6962_v27 = vunpack.i.l.bf16 %v6961_v7 }
 0x47e   : > { %v5541_v50 = vsel %vm5105_vm8, %v5533_v41, %v6967_v3  ;;  %v5542_v11 = vsel %vm5105_vm8, %v5534_v31, %v6968_v53  ;;  %6607 = vmatprep.mubr.msk.bf16.mxu1 %vm5068_vm7, %v5595_v29  ;;  %v7029_v29 = vld [vmem:[%s11490_s12 + $0x8] sm:$0xff]  }
 0x47f   : > { %v5550_v38 = vsel %vm5543_vm0, %v5541_v50, %v6907_v0  ;;  %v5551_v25 = vsel %vm5543_vm0, %v5542_v11, %v6908_v2  ;;  %v6971_v16 = vpop.permute.xlu1 %6970  ;;  %6705 = vmatpush3.bf16.msra.mxu0 %v7029_v29 }
 0x480   : > { %v5559_v8 = vsel %vm5552_vm10, %v5550_v38, %v6937_v5  ;;  %v5560_v52 = vsel %vm5552_vm10, %v5551_v25, %v6938_v55  ;;  %v6973_v4 = vunpack.i.h.bf16 %v6971_v16  ;;  %v6972_v23 = vunpack.i.l.bf16 %v6971_v16  ;;  %v6976_v32 = vpop.permute.xlu0 %6975  ;;  %6706 = vmatprep.subr.bf16.mxu0 %v7192_v17 }
 0x481   : > { %v5568_v15 = vsel %vm5561_vm11, %v5559_v8, %v6962_v27  ;;  %v5569_v60 = vsel %vm5561_vm11, %v5560_v52, %v6963_v54  ;;  %v6978_v26 = vunpack.i.h.bf16 %v6976_v32  ;;  %v6977_v56 = vunpack.i.l.bf16 %v6976_v32 }
 0x482   : > { %v5577_v33 = vsel %vm5570_vm12, %v5568_v15, %v6972_v23  ;;  %v5578_v42 = vsel %vm5570_vm12, %v5569_v60, %v6973_v4 }
 0x483   : > { %v5586_v14 = vsel %vm5579_vm1, %v5577_v33, %v6977_v56  ;;  %v5587_v44 = vsel %vm5579_vm1, %v5578_v42, %v6978_v26 }
 0x484   : > { %v5594_v49 = vpack.c.bf16 %v5587_v44, %v5586_v14 }
 0x486   : > { %5737 = vmatmul.mubr.bf16.gmra.mrb[20].mxu1 %v5594_v49  ;;  %v7030_v49 = vld [vmem:[%s11490_s12 + $0x10] sm:$0xff]  }
 0x487   : > { %6707 = vmatpush3.bf16.msra.mxu0 %v7030_v49 }
 0x488   : > { %6708 = vmatprep.subr.bf16.mxu0 %v7192_v17 }
 0x4e8   : > { %v5714_v40 = vpop.f32.mrb[8].mxu1 }
 0x4e9   : > { %v5752_v21 = vmul.f32 %v11190_v43, %v5714_v40  ;;  %v5716_v63 = vpop.f32.mrb[9].mxu1 }
 0x4ea   : > { %v5717_v28 = vpop.f32.mrb[10].mxu1 }
 0x4eb   : > { %v5767_v30 = vadd.f32 %v11195_v36, %v5752_v21  ;;  %v5753_v39 = vmul.f32 %v11190_v43, %v5717_v28  ;;  %v5719_v19 = vpop.f32.mrb[11].mxu1 }
 0x4ed   : > { %v5775_v58 = vmax.f32 %v5767_v30, 0.0  ;;  %v5768_v34 = vadd.f32 %v11195_v36, %v5753_v39 }
 0x4ef   : > { %v5787_v18 = vcombine.high %v5775_v58, %v5775_v58  ;;  %v5794_v48 = vrot.slane %v5775_v58, %v9262_v35  ;;  %v5776_v24 = vmax.f32 %v5768_v34, 0.0 }
 0x4f1   : > { %v5801_v12 = vrot.slane %v5787_v18, %v9262_v35  ;;  %v5802_v59 = vcombine.high %v5794_v48, %v5794_v48  ;;  %v6010_v1 = vrot.slane %v5794_v48, %v9316_v6  ;;  %v5859_v46 = vcombine.high %v5776_v24, %v5776_v24 }
 0x4f2   : > { %v5866_v22 = vrot.slane %v5776_v24, %v9262_v35  ;;  %v5930_v37 = vrot.slane %v5794_v48, %v9270_v51 }
 0x4f3   : > { %v5934_v9 = vrot.slane %v5802_v59, %v9270_v51  ;;  %v6014_v20 = vrot.slane %v5802_v59, %v9316_v6  ;;  %v5803_v57 = vcombine.high %v5801_v12, %v5801_v12  ;;  %v6018_v13 = vrot.slane %v5801_v12, %v9316_v6 }
 0x4f4   : > { %v5873_v45 = vrot.slane %v5859_v46, %v9262_v35  ;;  %v5874_v61 = vcombine.high %v5866_v22, %v5866_v22  ;;  %v6098_v10 = vrot.slane %v5866_v22, %v9270_v51  ;;  %v5938_v3 = vrot.slane %v5801_v12, %v9270_v51 }
 0x4f5   : > { %v6022_v62 = vrot.slane %v5803_v57, %v9316_v6  ;;  %v6071_v53 = vsel %vm3980_vm13, %v6014_v20, %v6010_v1  ;;  %v5942_v7 = vrot.slane %v5803_v57, %v9270_v51  ;;  %v6186_v55 = vrot.slane %v5866_v22, %v9316_v6 }
 0x4f6   : > { %v6102_v2 = vrot.slane %v5874_v61, %v9270_v51  ;;  %v6190_v0 = vrot.slane %v5874_v61, %v9316_v6  ;;  %v6072_v31 = vsel %vm3982_vm14, %v6018_v13, %v6071_v53  ;;  %v5875_v41 = vcombine.high %v5873_v45, %v5873_v45 }
 0x4f7   : > { %v6073_v5 = vsel %vm3984_vm15, %v6022_v62, %v6072_v31  ;;  %v6106_v50 = vrot.slane %v5873_v45, %v9270_v51  ;;  %v5991_v11 = vsel %vm3980_vm13, %v5934_v9, %v5930_v37  ;;  %v6194_v54 = vrot.slane %v5873_v45, %v9316_v6 }
 0x4f8   : > { %6083 = vrot.lane.b32.xlu1 %v6073_v5, %s7191_s29  ;;  %v6110_v38 = vrot.slane %v5875_v41, %v9270_v51  ;;  %v6159_v25 = vsel %vm3980_vm13, %v6102_v2, %v6098_v10  ;;  %v6247_v16 = vsel %vm3980_vm13, %v6190_v0, %v6186_v55  ;;  %v5992_v8 = vsel %vm3982_vm14, %v5938_v3, %v5991_v11 }
 0x4f9   : > { %v6160_v27 = vsel %vm3982_vm14, %v6106_v50, %v6159_v25  ;;  %v11237_v52 = vsel %vm3984_vm15, %v5942_v7, %v5992_v8  ;;  %v6198_v23 = vrot.slane %v5875_v41, %v9316_v6  ;;  %v6248_v32 = vsel %vm3982_vm14, %v6194_v54, %v6247_v16 }
 0x4fa   : > { %v6161_v4 = vsel %vm3984_vm15, %v6110_v38, %v6160_v27 }
 0x4fb   : > { %v6249_v15 = vsel %vm3984_vm15, %v6198_v23, %v6248_v32 }
 0x4fc   : > { %6171 = vrot.lane.b32.xlu1 %v6161_v4, %s7195_s17 }
 0x500   : > { %6259 = vrot.lane.b32.xlu1 %v6249_v15, %s7193_s19 }
 0x545   : > { %v5722_v60 = vpop.f32.mrb[12].mxu1 }
 0x546   : > { %v5754_v26 = vmul.f32 %v11190_v43, %v5722_v60  ;;  %v5724_v56 = vpop.f32.mrb[13].mxu1 }
 0x547   : > { %v5725_v33 = vpop.f32.mrb[14].mxu1 }
 0x548   : > { %v5769_v42 = vadd.f32 %v11195_v36, %v5754_v26  ;;  %v5755_v14 = vmul.f32 %v11190_v43, %v5725_v33  ;;  %v5727_v44 = vpop.f32.mrb[15].mxu1 }
 0x54a   : > { %v5777_v40 = vmax.f32 %v5769_v42, 0.0  ;;  %v5770_v21 = vadd.f32 %v11195_v36, %v5755_v14  ;;  %v7031_v42 = vld [vmem:[%s11490_s12 + $0x18] sm:$0xff]  }
 0x54b   : > { %6709 = vmatpush3.bf16.msra.mxu0 %v7031_v42 }
 0x54c   : > { %v5804_v63 = vcombine.high %v5777_v40, %v5777_v40  ;;  %v5811_v28 = vrot.slane %v5777_v40, %v9262_v35  ;;  %v5778_v30 = vmax.f32 %v5770_v21, 0.0 }
 0x54e   : > { %v5818_v39 = vrot.slane %v5804_v63, %v9262_v35  ;;  %v5819_v19 = vcombine.high %v5811_v28, %v5811_v28  ;;  %v5946_v58 = vrot.slane %v5811_v28, %v9270_v51  ;;  %v6026_v34 = vrot.slane %v5811_v28, %v9316_v6 }
 0x54f   : > { %v5876_v18 = vcombine.high %v5778_v30, %v5778_v30  ;;  %v5883_v48 = vrot.slane %v5778_v30, %v9262_v35 }
 0x550   : > { %v5950_v24 = vrot.slane %v5819_v19, %v9270_v51  ;;  %v6030_v12 = vrot.slane %v5819_v19, %v9316_v6  ;;  %v5730_v59 = vpop.f32.mrb[16].mxu1  ;;  %v11261_v1 = vcombine.high %v5818_v39, %v5818_v39  ;;  %v6034_v46 = vrot.slane %v5818_v39, %v9316_v6 }
 0x551   : > { %v5890_v22 = vrot.slane %v5876_v18, %v9262_v35  ;;  %v5891_v9 = vcombine.high %v5883_v48, %v5883_v48  ;;  %v6114_v20 = vrot.slane %v5883_v48, %v9270_v51  ;;  %v6202_v57 = vrot.slane %v5883_v48, %v9316_v6  ;;  %v5732_v13 = vpop.f32.mrb[17].mxu1 }
 0x552   : > { %v5756_v47 = vmul.f32 %v11190_v43, %v5730_v59  ;;  %v5733_v37 = vpop.f32.mrb[18].mxu1  ;;  %v6038_v45 = vrot.slane %v11261_v1, %v9316_v6  ;;  %v6074_v61 = vsel %vm3980_vm13, %v6030_v12, %v6026_v34  ;;  %v5954_v10 = vrot.slane %v5818_v39, %v9270_v51 }
 0x553   : > { %v6118_v62 = vrot.slane %v5891_v9, %v9270_v51  ;;  %v6206_v53 = vrot.slane %v5891_v9, %v9316_v6  ;;  %v5757_v3 = vmul.f32 %v11190_v43, %v5733_v37  ;;  %v5735_v7 = vpop.f32.mrb[19].mxu1  ;;  %v6075_v29 = vsel %vm3982_vm14, %v6034_v46, %v6074_v61 }
 0x554   : > { %v5771_v2 = vadd.f32 %v11195_v36, %v5756_v47  ;;  %v6076_v0 = vsel %vm3984_vm15, %v6038_v45, %v6075_v29  ;;  %v5892_v31 = vcombine.high %v5890_v22, %v5890_v22  ;;  %v6122_v41 = vrot.slane %v5890_v22, %v9270_v51 }
 0x555   : > { %v5772_v55 = vadd.f32 %v11195_v36, %v5757_v3  ;;  %6085 = vrot.lane.b32.xlu0 %v6076_v0, %s7191_s29  ;;  %v6162_v5 = vsel %vm3980_vm13, %v6118_v62, %v6114_v20  ;;  %v6210_v50 = vrot.slane %v5890_v22, %v9316_v6  ;;  %v6250_v11 = vsel %vm3980_vm13, %v6206_v53, %v6202_v57 }
 0x556   : > { %v5779_v38 = vmax.f32 %v5771_v2, 0.0  ;;  %v6126_v25 = vrot.slane %v5892_v31, %v9270_v51  ;;  %v6163_v54 = vsel %vm3982_vm14, %v6122_v41, %v6162_v5  ;;  %v6214_v27 = vrot.slane %v5892_v31, %v9316_v6 }
 0x557   : > { %v5780_v16 = vmax.f32 %v5772_v55, 0.0  ;;  %v6251_v8 = vsel %vm3982_vm14, %v6210_v50, %v6250_v11  ;;  %v5994_v4 = vsel %vm3980_vm13, %v5950_v24, %v5946_v58  ;;  %v5958_v21 = vrot.slane %v11261_v1, %v9270_v51 }
 0x558   : > { %v5821_v23 = vcombine.high %v5779_v38, %v5779_v38  ;;  %v11290_v32 = vrot.slane %v5779_v38, %v9262_v35  ;;  %v6164_v15 = vsel %vm3984_vm15, %v6126_v25, %v6163_v54  ;;  %v5995_v33 = vsel %vm3982_vm14, %v5954_v10, %v5994_v4 }
 0x559   : > { %v5893_v60 = vcombine.high %v5780_v16, %v5780_v16  ;;  %v5900_v26 = vrot.slane %v5780_v16, %v9262_v35  ;;  %6173 = vrot.lane.b32.xlu0 %v6164_v15, %s7195_s17  ;;  %v5738_v56 = vpop.f32.mrb[20].mxu1  ;;  %v6252_v40 = vsel %vm3984_vm15, %v6214_v27, %v6251_v8  ;;  %v5996_v55 = vsel %vm3984_vm15, %v5958_v21, %v5995_v33 }
 0x55a   : > { %v11300_v14 = vrot.slane %v5821_v23, %v9262_v35  ;;  %v11304_v44 = vcombine.high %v11290_v32, %v11290_v32  ;;  %v5740_v49 = vpop.f32.mrb[21].mxu1  ;;  %v6042_v63 = vrot.slane %v11290_v32, %v9316_v6  ;;  %v5758_v18 = vmul.f32 %v11190_v43, %v5738_v56 }
 0x55b   : > { %v5907_v28 = vrot.slane %v5893_v60, %v9262_v35  ;;  %v5908_v30 = vcombine.high %v5900_v26, %v5900_v26  ;;  %v6130_v39 = vrot.slane %v5900_v26, %v9270_v51  ;;  %v5741_v19 = vpop.f32.mrb[22].mxu1  ;;  %v6218_v34 = vrot.slane %v5900_v26, %v9316_v6 }
 0x55c   : > { %v6046_v58 = vrot.slane %v11304_v44, %v9316_v6  ;;  %v5759_v48 = vmul.f32 %v11190_v43, %v5741_v19  ;;  %v5743_v24 = vpop.f32.mrb[23].mxu1  ;;  %v11323_v1 = vcombine.high %v11300_v14, %v11300_v14  ;;  %v6050_v46 = vrot.slane %v11300_v14, %v9316_v6 }
 0x55d   : > { %v6134_v12 = vrot.slane %v5908_v30, %v9270_v51  ;;  %v6222_v59 = vrot.slane %v5908_v30, %v9316_v6  ;;  %6261 = vrot.lane.b32.xlu0 %v6252_v40, %s7193_s19  ;;  %v5773_v22 = vadd.f32 %v11195_v36, %v5758_v18  ;;  %v5909_v20 = vcombine.high %v5907_v28, %v5907_v28 }
 0x55e   : > { %v5774_v9 = vadd.f32 %v11195_v36, %v5759_v48  ;;  %v6077_v43 = vsel %vm3980_vm13, %v6046_v58, %v6042_v63  ;;  %v6054_v57 = vrot.slane %v11323_v1, %v9316_v6  ;;  %v6138_v47 = vrot.slane %v5907_v28, %v9270_v51 }
 0x55f   : > { %v6078_v13 = vsel %vm3982_vm14, %v6050_v46, %v6077_v43  ;;  %v6165_v37 = vsel %vm3980_vm13, %v6134_v12, %v6130_v39  ;;  %v5781_v45 = vmax.f32 %v5773_v22, 0.0  ;;  %v6142_v10 = vrot.slane %v5909_v20, %v9270_v51 }
 0x560   : > { %v5782_v61 = vmax.f32 %v5774_v9, 0.0  ;;  %v6079_v62 = vsel %vm3984_vm15, %v6054_v57, %v6078_v13  ;;  %v6166_v36 = vsel %vm3982_vm14, %v6138_v47, %v6165_v37  ;;  %v6226_v53 = vrot.slane %v5907_v28, %v9316_v6 }
 0x561   : > { %v6253_v3 = vsel %vm3980_vm13, %v6222_v59, %v6218_v34  ;;  %v5838_v7 = vcombine.high %v5781_v45, %v5781_v45  ;;  %v5845_v29 = vrot.slane %v5781_v45, %v9262_v35  ;;  %6087 = vrot.lane.b32.xlu1 %v6079_v62, %s7191_s29  ;;  %v5962_v31 = vrot.slane %v11290_v32, %v9270_v51 }
 0x562   : > { %v5910_v2 = vcombine.high %v5782_v61, %v5782_v61  ;;  %v5917_v0 = vrot.slane %v5782_v61, %v9262_v35  ;;  %v5966_v41 = vrot.slane %v11304_v44, %v9270_v51  ;;  %v6167_v11 = vsel %vm3984_vm15, %v6142_v10, %v6166_v36 }
 0x563   : > { %v5852_v5 = vrot.slane %v5838_v7, %v9262_v35  ;;  %v5853_v50 = vcombine.high %v5845_v29, %v5845_v29  ;;  %v6230_v38 = vrot.slane %v5909_v20, %v9316_v6  ;;  %v6254_v27 = vsel %vm3982_vm14, %v6226_v53, %v6253_v3 }
 0x564   : > { %v5924_v25 = vrot.slane %v5910_v2, %v9262_v35  ;;  %v5925_v54 = vcombine.high %v5917_v0, %v5917_v0  ;;  %v5970_v16 = vrot.slane %v11300_v14, %v9270_v51  ;;  %v6058_v8 = vrot.slane %v5845_v29, %v9316_v6 }
 0x565   : > { %v6062_v4 = vrot.slane %v5853_v50, %v9316_v6  ;;  %v6146_v23 = vrot.slane %v5917_v0, %v9270_v51  ;;  %6175 = vrot.lane.b32.xlu1 %v6167_v11, %s7195_s17  ;;  %v5854_v32 = vcombine.high %v5852_v5, %v5852_v5  ;;  %v5982_v15 = vrot.slane %v5853_v50, %v9270_v51 }
 0x566   : > { %v6150_v60 = vrot.slane %v5925_v54, %v9270_v51  ;;  %v6066_v35 = vrot.slane %v5852_v5, %v9316_v6  ;;  %v5926_v26 = vcombine.high %v5924_v25, %v5924_v25  ;;  %v6238_v56 = vrot.slane %v5925_v54, %v9316_v6 }
 0x567   : > { %v6070_v33 = vrot.slane %v5854_v32, %v9316_v6  ;;  %v6080_v42 = vsel %vm3980_vm13, %v6062_v4, %v6058_v8  ;;  %v6154_v14 = vrot.slane %v5924_v25, %v9270_v51  ;;  %v5978_v44 = vrot.slane %v5845_v29, %v9270_v51  ;;  %v6616_v8 = vld [vmem:[%s11492_s14] ss:$0 sm:$0xff] }
 0x568   : > { %v6255_v49 = vsel %vm3984_vm15, %v6230_v38, %v6254_v27  ;;  %v6081_v40 = vsel %vm3982_vm14, %v6066_v35, %v6080_v42  ;;  %v6168_v21 = vsel %vm3980_vm13, %v6150_v60, %v6146_v23  ;;  %v6234_v63 = vrot.slane %v5917_v0, %v9316_v6  ;;  %v6615_v27 = vld [vmem:[%s11491_s13] ss:$0 sm:$0xff] }
 0x569   : > { %6263 = vrot.lane.b32.xlu1 %v6255_v49, %s7193_s19  ;;  %v6082_v28 = vsel %vm3984_vm15, %v6070_v33, %v6081_v40  ;;  %v6158_v30 = vrot.slane %v5926_v26, %v9270_v51  ;;  %v5997_v39 = vsel %vm3980_vm13, %v5966_v41, %v5962_v31  ;;  %v6169_v19 = vsel %vm3982_vm14, %v6154_v14, %v6168_v21 }
 0x56a   : > { %6089 = vrot.lane.b32.xlu0 %v6082_v28, %s7191_s29  ;;  %v6242_v58 = vrot.slane %v5924_v25, %v9316_v6  ;;  %v5998_v34 = vsel %vm3982_vm14, %v5970_v16, %v5997_v39  ;;  %v5974_v18 = vrot.slane %v11323_v1, %v9270_v51  ;;  %v6256_v48 = vsel %vm3980_vm13, %v6238_v56, %v6234_v63 }
 0x56b   : > { %v5986_v24 = vrot.slane %v5852_v5, %v9270_v51  ;;  %v6000_v12 = vsel %vm3980_vm13, %v5982_v15, %v5978_v44  ;;  %v5990_v59 = vrot.slane %v5854_v32, %v9270_v51  ;;  %v6170_v22 = vsel %vm3984_vm15, %v6158_v30, %v6169_v19  ;;  %v6084_v51 = vpop.permute.xlu1 %6083 }
 0x56c   : > { %v5999_v46 = vsel %vm3984_vm15, %v5974_v18, %v5998_v34  ;;  %v6246_v9 = vrot.slane %v5926_v26, %v9316_v6  ;;  %v6257_v1 = vsel %vm3982_vm14, %v6242_v58, %v6256_v48  ;;  %v6271_v45 = vsel %vm5068_vm7, %v11237_v52, %v6084_v51 }
 0x56d   : > { %v6001_v43 = vsel %vm3982_vm14, %v5986_v24, %v6000_v12 }
 0x56e   : > { %6177 = vrot.lane.b32.xlu0 %v6170_v22, %s7195_s17  ;;  %v6002_v20 = vsel %vm3984_vm15, %v5990_v59, %v6001_v43  ;;  %v6258_v57 = vsel %vm3984_vm15, %v6246_v9, %v6257_v1  ;;  %v6617_v22 = vld [vmem:[%s11493_s15] ss:$0 sm:$0xff]  ;;  %s11865_s17 = sld [smem:[#allocation48_spill]] }
 0x56f   : > { %v6172_v13 = vpop.permute.xlu1 %6171  ;;  %v6618_v1 = vld [vmem:[%s11494_s16] ss:$0 sm:$0xff] }
 0x570   : > { %v6275_v61 = vsel %vm5105_vm8, %v6271_v45, %v6172_v13 }
 0x572   : > { %6265 = vrot.lane.b32.xlu0 %v6258_v57, %s7193_s19 }
 0x573   : > { %v6260_v6 = vpop.permute.xlu1 %6259 }
 0x574   : > { %v6279_v36 = vsel %vm5543_vm0, %v6275_v61, %v6260_v6  ;;  %s11430_s2 = scalar_lea.hbm %s11865_s17, %s6624_s23 }
 0x5c7   : > { %v6086_v47 = vpop.permute.xlu0 %6085 }
 0x5c8   : > { %v6272_v17 = vsel %vm5068_vm7, %v5996_v55, %v6086_v47 }
 0x5cb   : > { %v6174_v37 = vpop.permute.xlu0 %6173 }
 0x5cc   : > { %v6276_v10 = vsel %vm5105_vm8, %v6272_v17, %v6174_v37 }
 0x5cf   : > { %v6262_v62 = vpop.permute.xlu0 %6261 }
 0x5d0   : > { %v6280_v53 = vsel %vm5543_vm0, %v6276_v10, %v6262_v62 }
 0x5d1   : > { %v6287_v3 = vcombine.low %v6279_v36, %v6280_v53 }
 0x5d3   : > { %v6088_v7 = vpop.permute.xlu1 %6087 }
 0x5d4   : > { %v6273_v41 = vsel %vm5068_vm7, %v5999_v46, %v6088_v7 }
 0x5d7   : > { %v6176_v29 = vpop.permute.xlu1 %6175 }
 0x5d8   : > { %v6277_v55 = vsel %vm5105_vm8, %v6273_v41, %v6176_v29 }
 0x5db   : > { %v6264_v31 = vpop.permute.xlu1 %6263 }
 0x5dc   : > { %v6090_v2 = vpop.permute.xlu0 %6089  ;;  %v6281_v11 = vsel %vm5543_vm0, %v6277_v55, %v6264_v31 }
 0x5dd   : > { %v6274_v52 = vsel %vm5068_vm7, %v6002_v20, %v6090_v2 }
 0x5e0   : > { %v6178_v0 = vpop.permute.xlu0 %6177 }
 0x5e1   : > { %v6278_v5 = vsel %vm5105_vm8, %v6274_v52, %v6178_v0 }
 0x5e4   : > { %v6266_v50 = vpop.permute.xlu0 %6265 }
 0x5e5   : > { %v6282_v38 = vsel %vm5543_vm0, %v6278_v5, %v6266_v50 }
 0x5e6   : > { %v6288_v25 = vcombine.low %v6281_v11, %v6282_v38 }
 0x5e8   : > { %v6291_v54 = vpack.c.bf16 %v6288_v25, %v6287_v3 }
 0x5ea   : > { %6711 = vmatmul.mubr.msk.bf16.vlgmr.msra.gmra.mrb[32].mxu0 %vm5552_vm10, %v6291_v54 }
 0x6bd   : > { %v6361_v16 = vpop.f32.mrb[32].mxu0 }
 0x6be   : > { %v6375_v4 = vmul.f32 %v6615_v27, %v6361_v16  ;;  %v6712_v23 = vpop.f32.mrb[33].mxu0 }
 0x6bf   : > { %v6364_v32 = vpop.f32.mrb[34].mxu0 }
 0x6c0   : > { %v6384_v15 = vadd.f32 %v6616_v8, %v6375_v4  ;;  %v6376_v60 = vmul.f32 %v6615_v27, %v6364_v32  ;;  %v6713_v35 = vpop.f32.mrb[35].mxu0 }
 0x6c2   : > { %v6386_v26 = vmax.f32 %v6384_v15, 0.0  ;;  %v6385_v56 = vadd.f32 %v6616_v8, %v6376_v60 }
 0x6c4   : > { %v6387_v33 = vmax.f32 %v6385_v56, 0.0  ;;  %v6388_v42 = vsel %vm5105_vm8, %v6386_v26, 0.0 }
 0x6c5   : > { %6389 = vadd.xlane.f32.xlu1 %v6388_v42 }
 0x6c6   : > { %v6391_v14 = vsel %vm5105_vm8, %v6387_v33, 0.0 }
 0x6c7   : > { %6392 = vadd.xlane.f32.xlu0 %v6391_v14 }
 0x752   : > { %v6390_v44 = vpop.xlane.xlu1 %6389 }
 0x753   : > { %v6395_v49 = vmul.f32 0.03125, %v6390_v44 }
 0x754   : > { %v6393_v40 = vpop.xlane.xlu0 %6392 }
 0x755   : > { %v6397_v21 = vsub.f32 %v6386_v26, %v6395_v49  ;;  %v6396_v63 = vmul.f32 0.03125, %v6393_v40 }
 0x757   : > { %v6398_v28 = vsub.f32 %v6387_v33, %v6396_v63  ;;  %v6399_v30 = vmul.f32 %v6397_v21, %v6397_v21 }
 0x759   : > { %v6401_v39 = vsel %vm5105_vm8, %v6399_v30, 0.0  ;;  %v6400_v19 = vmul.f32 %v6398_v28, %v6398_v28 }
 0x75a   : > { %6402 = vadd.xlane.f32.xlu0 %v6401_v39 }
 0x75b   : > { %v6404_v58 = vsel %vm5105_vm8, %v6400_v19, 0.0 }
 0x75c   : > { %6405 = vadd.xlane.f32.xlu1 %v6404_v58 }
 0x7e7   : > { %v6403_v34 = vpop.xlane.xlu0 %6402 }
 0x7e8   : > { %v6407_v18 = vmul.f32 0.03125, %v6403_v34 }
 0x7e9   : > { %v6406_v48 = vpop.xlane.xlu1 %6405 }
 0x7ea   : > { %v6409_v24 = vadd.f32 1e-05, %v6407_v18  ;;  %v6408_v12 = vmul.f32 0.03125, %v6406_v48 }
 0x7ec   : > { %7096 = vrsqrt.f32 %v6409_v24  ;;  %v6410_v59 = vadd.f32 1e-05, %v6408_v12 }
 0x7ee   : > { %7098 = vrsqrt.f32 %v6410_v59 }
 0x7f6   : > { %v7097_v46 = vpop.eup %7096 }
 0x7f7   : > { %v6413_v9 = vmul.f32 %v7097_v46, %v6397_v21 }
 0x7f8   : > { %v7099_v43 = vpop.eup %7098 }
 0x7f9   : > { %v6422_v20 = vmul.f32 %v6617_v22, %v6413_v9  ;;  %v6414_v57 = vmul.f32 %v7099_v43, %v6398_v28 }
 0x7fb   : > { %v6431_v51 = vadd.f32 %v6618_v1, %v6422_v20  ;;  %v6423_v13 = vmul.f32 %v6617_v22, %v6414_v57 }
 0x7fd   : > { %v6432_v47 = vadd.f32 %v6618_v1, %v6423_v13  ;;  %6433 = vst.msk [vmem:[%s556_s22] sm:$0xff] %vm5105_vm8, %v6431_v51 }
 0x7ff   : > { %6434 = vst.msk [vmem:[%s556_s22 + $0x8] sm:$0xff] %vm5105_vm8, %v6432_v47 }
 0x800   : > { %7128 = shalt.err (!%p7125_p3)
}
 0x801   : > { %s7129_s24 = scalar_lea.hbm %s11430_s2, 256  ;;  %s7133_s22 = scalar_lea.hbm %s11865_s17, 512 }
 0x802   : > { %p7130_p4 = scmp.ne.s32.totalorder %s11430_s2, %s7129_s24  ;;  %p7134_p9 = scmp.lt.u32.totalorder %s11430_s2, %s11865_s17 }
 0x803   : > { %p7135_p10 = scmp.lt.u32.totalorder %s7133_s22, %s7129_s24  ;;  %p7137_p12 = scmp.lt.u32.totalorder %s7129_s24, %s11430_s2 }
 0x804   : > { %p7131_p7 = pnand %p7130_p4, %p7330_p5 }
 0x805   : > { %p7136_p11 = por %p7135_p10, %p7134_p9 }
 0x806   : > { %p7132_p8 = pneg %p7131_p7 }
 0x807   : > { %p7138_p13 = por %p7137_p12, %p7136_p11 }
 0x809   : > { %p7139_p0 = pnand %p7138_p13, %p7132_p8 }
 0x80b   : > { %7142 = shalt.err (!%p7139_p0)
}
 0x80c   : > { %s7201_s26 = smov 128  }
 0x80d   : > { %6716 = dma.vmem_to_hbm [thread:$0]  (%p7330_p5), %s11433_s21, 256, %s11430_s2, %s11436_s28, %s7201_s26, %s7201_s26, %s7190_s18  }
 0x80e PF: > { %s11866_s27 = sld [smem:[#allocation8_spill]]  ;;  %s11867_s0 = sld [smem:[#allocation6_spill]] }
 0x814   : > { %p6722_p1 = scmp.ge.s32.totalorder %s11866_s27, 2  ;;  %s6464_s30 = sand.u32 1, %s11867_s0  }
 0x815   : > { %s6465_s24 = scalar_lea.sflag [#allocation4], %s6464_s30 }
 0x816   : > { %p6719_p2 = pnand %p6722_p1, %p7334_p6 }
 0x818   : > { %7160 = dma.done.wait (!%p6719_p2), %s6465_s24, 256  }
 0x819   : > { %7162 = vsyncadd (!%p6719_p2), %s6465_s24, 4294967040  ;;  %s11869_s27 = sld [smem:[#allocation9_spill]]  ;;  %s11870_s23 = sld [smem:[#allocation7_spill]] }
 0x81a   : > { %s11871_s26 = sld [smem:[#allocation10_spill]]  ;;  %s11872_s24 = smov %s7169_s25 }
 0x81f   : > { %p27_p3 = scmp.ge.s32.totalorder %s11869_s27, 4   ;;  %s11873_s25 = smov %s11870_s23 }
 0x821   :  { %29 = sbr.rel (!%p27_p3) target bundleno = 8 (0x8), region = 127 }
 0x828   :  { %6470 = vsyncpa [#allocation4], 1 }
 0x829   :  { %6472 = vsyncpa [#allocation4 + $0x1], 1 }

</bundles_post_ra>
